<compile_context>
chip_gen: v7x
topology: tpu7x:2x2x1
jax: 0.10.0
libtpu: 0.0.40
codegen_flags: <defaults>
</compile_context>

<pallas_src>
import jax
import jax.numpy as jnp
from jax.experimental import pallas as pl
from jax.experimental.pallas import tpu as pltpu


def _round_up(x, m):
    return (x + m - 1) // m * m


# ----------------------------- fused kernel ---------------------------------

def _make_fused_kernel(R, Ht, Wt, Wc, Lt_pad, Lc_pad):
    """R = batch_tile * out_channels rows of every in-kernel array (f32)."""

    def kernel(wt_ref, bt_ref, wm_ref, bm_ref, xt_ref, xm_ref, out_ref, tpad_s):
        # ---- conv(template): ONE MXU matmul on the im2col operand -----------
        #   [R, Bt*K1] @ [Bt*K1, Lt_pad]; block-diagonal weight handles batch.
        tm = jnp.dot(wt_ref[...], xt_ref[0],
                     preferred_element_type=jnp.float32) + bt_ref[...]

        # ---- conv(tomatch): ONE MXU matmul, already replication-padded ------
        # The wrapper's clamped im2col makes column (r, c) of the operand the
        # patch of output position (min(r,Hm-1), min(c,Wm-1)), so this matmul
        # directly yields ReplicationPad2d((0,Wt-1,0,Ht-1))(conv(tomatch))
        # flattened with row stride Wc.  One dense store into VMEM scratch
        # (lane width Lf is a multiple of 128).
        tpad_s[...] = jnp.dot(wm_ref[...], xm_ref[0],
                              preferred_element_type=jnp.float32) + bm_ref[...]

        # ---- sparseCorr2d: Ht*Wt taps of lane-dense VPU MACs -----------------
        # Tap weights come straight from the live `tm` register value
        # (one-hot select + lane reduce) -- no tm scratch, no masked 1-lane
        # loads, no conv-phase -> corr-phase store/load dependency on tm.
        lane = jax.lax.broadcasted_iota(jnp.int32, (R, Lt_pad), 1)
        acc = jnp.zeros((R, Lc_pad), jnp.float32)
        for i in range(Ht):
            for j in range(Wt):
                t = i * Wt + j
                w = jnp.sum(jnp.where(lane == t, tm, 0.0),
                            axis=1, keepdims=True)                  # [R, 1]
                win = tpad_s[:, i * Wc + j:i * Wc + j + Lc_pad]     # [R, Lc_pad]
                acc = acc + w * win
        # TODO(synk): the Ht*Wt window loads could be further reduced to Ht
        # loads + pltpu.roll lane shifts; kept as proven ref slices here.
        out_ref[0] = acc        # single dense store, lane dim multiple of 128

    return kernel


# ----------------------------- host-side wrapper -----------------------------

def _im2col_same(x, kh, kw):
    """x: [B, C, H, W] -> patches [B, C, kh*kw, H, W] for a 'same' conv."""
    B, C, H, W = x.shape
    ph, pw = (kh - 1) // 2, (kw - 1) // 2
    xp = jnp.pad(x, ((0, 0), (0, 0), (ph, ph), (pw, pw)))
    taps = [xp[:, :, di:di + H, dj:dj + W]
            for di in range(kh) for dj in range(kw)]
    return jnp.stack(taps, axis=2)          # [B, C, kh*kw, H, W]


def dense_corr2d_light_forward(template, tomatch, w_t, b_t, w_m, b_m):
    B, Ct, Ht, Wt = template.shape
    _, Cm, Hm, Wm = tomatch.shape
    O, _, kh, kw = w_t.shape
    _, _, kh2, kw2 = w_m.shape
    assert kh % 2 == 1 and kw % 2 == 1 and kh2 % 2 == 1 and kw2 % 2 == 1, \
        "'same'-padding path assumes odd conv kernels"
    # TODO(synk): dilation != 1 not implemented (module default dilation=1).

    f32 = jnp.float32

    # Fold 2 batch elements per grid step so all 8 f32 sublanes are used.
    Bt = 2 if B % 2 == 0 else 1
    G = B // Bt
    R = Bt * O                               # rows of every in-kernel array

    K1 = Ct * kh * kw
    K2 = Cm * kh2 * kw2
    Wc = Wm + Wt - 1                         # corr-operand row stride
    Hc = Hm + Ht - 1                         # corr-operand rows
    Lt = Ht * Wt                             # template conv output flat length
    Lt_pad = _round_up(Lt, 128)
    Lc = Hm * Wc                             # corr output flat length (kept part)
    Lc_pad = _round_up(Lc, 128)              # lane-dense accumulator / output
    # Padded-tomatch operand length: covers every window read, multiple of 128.
    Lf = _round_up(max(Hc * Wc, (Ht - 1) * Wc + (Wt - 1) + Lc_pad), 128)

    # --- template conv operand: standard 'same' im2col, lane-padded ----------
    xt = _im2col_same(template.astype(f32), kh, kw).reshape(B, K1, Lt)
    xt = jnp.pad(xt, ((0, 0), (0, 0), (0, Lt_pad - Lt)))
    xt = xt.reshape(G, Bt * K1, Lt_pad)      # batch pair stacked on contraction

    # --- tomatch conv operand: clamped im2col => the conv output comes out
    #     already ReplicationPad2d-ed, on the Wc row stride -------------------
    taps_m = _im2col_same(tomatch.astype(f32), kh2, kw2)     # [B,Cm,T2,Hm,Wm]
    rows = jnp.minimum(jnp.arange(Hc), Hm - 1)
    cols = jnp.minimum(jnp.arange(Wc), Wm - 1)
    taps_m = taps_m[:, :, :, rows, :][:, :, :, :, cols]      # [B,Cm,T2,Hc,Wc]
    xm = taps_m.reshape(B, K2, Hc * Wc)
    xm = jnp.pad(xm, ((0, 0), (0, 0), (0, Lf - Hc * Wc)))
    xm = xm.reshape(G, Bt * K2, Lf)

    # --- lane-dense flattened weights; block-diagonal over the batch tile ----
    eye = jnp.eye(Bt, dtype=f32)
    wt_bd = jnp.kron(eye, w_t.reshape(O, K1).astype(f32))    # [R, Bt*K1]
    wm_bd = jnp.kron(eye, w_m.reshape(O, K2).astype(f32))    # [R, Bt*K2]
    bt_col = jnp.tile(b_t.astype(f32), Bt).reshape(R, 1)
    bm_col = jnp.tile(b_m.astype(f32), Bt).reshape(R, 1)

    kernel = _make_fused_kernel(R, Ht, Wt, Wc, Lt_pad, Lc_pad)

    out_flat = pl.pallas_call(
        kernel,
        out_shape=jax.ShapeDtypeStruct((G, R, Lc_pad), f32),
        grid_spec=pltpu.PrefetchScalarGridSpec(
            num_scalar_prefetch=0,
            grid=(G,),
            in_specs=[
                pl.BlockSpec((R, Bt * K1), lambda g: (0, 0)),
                pl.BlockSpec((R, 1), lambda g: (0, 0)),
                pl.BlockSpec((R, Bt * K2), lambda g: (0, 0)),
                pl.BlockSpec((R, 1), lambda g: (0, 0)),
                pl.BlockSpec((1, Bt * K1, Lt_pad), lambda g: (g, 0, 0)),
                pl.BlockSpec((1, Bt * K2, Lf), lambda g: (g, 0, 0)),
            ],
            out_specs=pl.BlockSpec((1, R, Lc_pad), lambda g: (g, 0, 0)),
            scratch_shapes=[
                pltpu.VMEM((R, Lf), f32),    # replication-padded conv(tomatch)
            ],
        ),
        compiler_params=pltpu.CompilerParams(
            dimension_semantics=("parallel",)),
    )(wt_bd, bt_col, wm_bd, bm_col, xt, xm)

    # Rows are (batch-in-tile, out-channel) major -> plain reshape recovers B;
    # then drop the lane padding and the Wt-1 scratch columns of each row.
    out = out_flat.reshape(B, O, Lc_pad)[:, :, :Lc].reshape(B, O, Hm, Wc)
    return out[:, :, :, :Wm]


_forward_jit = jax.jit(dense_corr2d_light_forward)


# ----------------------------- module wrapper --------------------------------

class DenseCorr2dLight:
    def __init__(self, template_channels, tomatch_channels, out_channels,
                 template_kernel=(3, 3), tomatch_kernel=(3, 3), *, key):
        k1, k2, k3, k4 = jax.random.split(key, 4)
        kh1, kw1 = template_kernel
        kh2, kw2 = tomatch_kernel
        bound1 = float(1.0 / (template_channels * kh1 * kw1) ** 0.5)
        bound2 = float(1.0 / (tomatch_channels * kh2 * kw2) ** 0.5)
        self.w_t = jax.random.uniform(k1, (out_channels, template_channels, kh1, kw1),
                                      jnp.float32, -bound1, bound1)
        self.b_t = jax.random.uniform(k2, (out_channels,), jnp.float32, -bound1, bound1)
        self.w_m = jax.random.uniform(k3, (out_channels, tomatch_channels, kh2, kw2),
                                      jnp.float32, -bound2, bound2)
        self.b_m = jax.random.uniform(k4, (out_channels,), jnp.float32, -bound2, bound2)

    def __call__(self, template, tomatch):
        return _forward_jit(template, tomatch, self.w_t, self.b_t,
                            self.w_m, self.b_m)


# ----------------------------- pure-JAX reference ----------------------------

def _reference(template, tomatch, w_t, b_t, w_m, b_m):
    def conv(x, w, b):
        y = jax.lax.conv_general_dilated(
            x, w, window_strides=(1, 1), padding="SAME",
            dimension_numbers=("NCHW", "OIHW", "NCHW"))
        return y + b[None, :, None, None]

    tm = conv(template, w_t, b_t)
    to = conv(tomatch, w_m, b_m)
    B, C, Ht, Wt = tm.shape
    _, _, Hm, Wm = to.shape
    tp = jnp.pad(to, ((0, 0), (0, 0), (0, Ht - 1), (0, Wt - 1)), mode="edge")
    out = jnp.zeros((B, C, Hm, Wm), jnp.float32)
    for i in range(Ht):
        for j in range(Wt):
            out = out + tm[:, :, i:i + 1, j:j + 1] * tp[:, :, i:i + Hm, j:j + Wm]
    return out


if __name__ == "__main__":
    key = jax.random.PRNGKey(0)
    k_mod, k_t, k_m = jax.random.split(key, 3)

    B = 2
    template_channels, tomatch_channels, out_channels = 4, 4, 4
    Ht, Wt = 8, 8      # template (correlation-kernel) spatial size
    Hm, Wm = 16, 16    # tomatch (impulse map) spatial size

    template = jax.random.normal(k_t, (B, template_channels, Ht, Wt), jnp.float32)
    tomatch = jax.random.normal(k_m, (B, tomatch_channels, Hm, Wm), jnp.float32)

    mod = DenseCorr2dLight(template_channels, tomatch_channels, out_channels, key=k_mod)
    out = jax.block_until_ready(mod(template, tomatch))

    ref = _reference(template, tomatch, mod.w_t, mod.b_t, mod.w_m, mod.b_m)
    assert out.shape == (B, out_channels, Hm, Wm), out.shape
    assert jnp.allclose(out, ref, rtol=1e-4, atol=1e-4), \
        float(jnp.max(jnp.abs(out - ref)))
    print("KERNEL_OK")
</pallas_src>

<mosaic_0001>
module attributes {stable_mosaic.version = 11 : i64} {
  func.func @kernel(%arg0: i32, %arg1: memref<8x72xf32, #tpu.memory_space<vmem>>, %arg2: memref<8x1xf32, #tpu.memory_space<vmem>>, %arg3: memref<8x72xf32, #tpu.memory_space<vmem>>, %arg4: memref<8x1xf32, #tpu.memory_space<vmem>>, %arg5: memref<1x72x128xf32, #tpu.memory_space<vmem>>, %arg6: memref<1x72x640xf32, #tpu.memory_space<vmem>>, %arg7: memref<1x8x384xf32, #tpu.memory_space<vmem>>, %arg8: memref<8x640xf32, #tpu.memory_space<vmem>>) attributes {dimension_semantics = [#tpu.dimension_semantics<parallel>], iteration_bounds = array<i64: 1>, scalar_prefetch = 0 : i64, scratch_operands = 1 : i64, tpu.core_type = #tpu.core_type<tc>, window_params = [{pipeline_mode = #tpu.pipeline_mode<synchronous>, transform_indices = @transform_0, window_bounds = array<i64: 8, 72>}, {pipeline_mode = #tpu.pipeline_mode<synchronous>, transform_indices = @transform_1, window_bounds = array<i64: 8, 1>}, {pipeline_mode = #tpu.pipeline_mode<synchronous>, transform_indices = @transform_2, window_bounds = array<i64: 8, 72>}, {pipeline_mode = #tpu.pipeline_mode<synchronous>, transform_indices = @transform_3, window_bounds = array<i64: 8, 1>}, {transform_indices = @transform_4, window_bounds = array<i64: 1, 72, 128>}, {transform_indices = @transform_5, window_bounds = array<i64: 1, 72, 640>}, {transform_indices = @transform_6, window_bounds = array<i64: 1, 8, 384>}]} {
    %c0 = arith.constant 0 : index
    %c0_0 = arith.constant 0 : index
    %0 = vector.load %arg1[%c0, %c0_0] : memref<8x72xf32, #tpu.memory_space<vmem>>, vector<8x72xf32>
    %c0_1 = arith.constant 0 : index
    %c0_2 = arith.constant 0 : index
    %c0_3 = arith.constant 0 : index
    %1 = vector.load %arg5[%c0_1, %c0_2, %c0_3] : memref<1x72x128xf32, #tpu.memory_space<vmem>>, vector<1x72x128xf32>
    %2 = vector.shape_cast %1 : vector<1x72x128xf32> to vector<72x128xf32>
    %cst = arith.constant dense<0.000000e+00> : vector<8x128xf32>
    %3 = tpu.matmul %0, %2, %cst {dimension_numbers = #tpu.dot_dimension_numbers<[1], [0], [0], [1], [0, 0, 1, 1], [], []>} : vector<8x72xf32>, vector<72x128xf32>, vector<8x128xf32> -> vector<8x128xf32>
    %c0_4 = arith.constant 0 : index
    %c0_5 = arith.constant 0 : index
    %4 = vector.load %arg2[%c0_4, %c0_5] : memref<8x1xf32, #tpu.memory_space<vmem>>, vector<8x1xf32>
    %5 = vector.broadcast %4 : vector<8x1xf32> to vector<8x128xf32>
    %6 = arith.addf %3, %5 : vector<8x128xf32>
    %c0_6 = arith.constant 0 : index
    %c0_7 = arith.constant 0 : index
    %7 = vector.load %arg3[%c0_6, %c0_7] : memref<8x72xf32, #tpu.memory_space<vmem>>, vector<8x72xf32>
    %c0_8 = arith.constant 0 : index
    %c0_9 = arith.constant 0 : index
    %c0_10 = arith.constant 0 : index
    %8 = vector.load %arg6[%c0_8, %c0_9, %c0_10] : memref<1x72x640xf32, #tpu.memory_space<vmem>>, vector<1x72x640xf32>
    %9 = vector.shape_cast %8 : vector<1x72x640xf32> to vector<72x640xf32>
    %cst_11 = arith.constant dense<0.000000e+00> : vector<8x640xf32>
    %10 = tpu.matmul %7, %9, %cst_11 {dimension_numbers = #tpu.dot_dimension_numbers<[1], [0], [0], [1], [0, 0, 1, 1], [], []>} : vector<8x72xf32>, vector<72x640xf32>, vector<8x640xf32> -> vector<8x640xf32>
    %c0_12 = arith.constant 0 : index
    %c0_13 = arith.constant 0 : index
    %11 = vector.load %arg4[%c0_12, %c0_13] : memref<8x1xf32, #tpu.memory_space<vmem>>, vector<8x1xf32>
    %12 = vector.broadcast %11 : vector<8x1xf32> to vector<8x640xf32>
    %13 = arith.addf %10, %12 : vector<8x640xf32>
    %c0_14 = arith.constant 0 : index
    %c0_15 = arith.constant 0 : index
    %14 = vector.load %arg8[%c0_14, %c0_15] : memref<8x640xf32, #tpu.memory_space<vmem>>, vector<8x640xf32>
    tpu.vector_store %arg8[%c0_14, %c0_15], %13 {strides = array<i32>} : memref<8x640xf32, #tpu.memory_space<vmem>>, vector<8x640xf32>,
    %15 = tpu.iota {dimensions = array<i32: 1>} : vector<8x128xi32>
    %cst_16 = arith.constant 0.000000e+00 : f32
    %16 = vector.broadcast %cst_16 : f32 to vector<8x384xf32>
    %c0_i32 = arith.constant 0 : i32
    %17 = vector.broadcast %c0_i32 : i32 to vector<8x128xi32>
    %18 = arith.cmpi eq, %15, %17 : vector<8x128xi32>
    %cst_17 = arith.constant 0.000000e+00 : f32
    %19 = vector.broadcast %cst_17 : f32 to vector<8x128xf32>
    %20 = arith.select %18, %6, %19 : vector<8x128xi1>, vector<8x128xf32>
    %cst_18 = arith.constant dense<0.000000e+00> : vector<8xf32>
    %21 = vector.multi_reduction <add>, %20, %cst_18 [1] : vector<8x128xf32> to vector<8xf32>
    %22 = vector.shape_cast %21 : vector<8xf32> to vector<8x1xf32>
    %c0_19 = arith.constant 0 : index
    %c0_20 = arith.constant 0 : index
    %23 = vector.load %arg8[%c0_19, %c0_20] : memref<8x640xf32, #tpu.memory_space<vmem>>, vector<8x384xf32>
    %24 = vector.broadcast %22 : vector<8x1xf32> to vector<8x384xf32>
    %25 = arith.mulf %24, %23 : vector<8x384xf32>
    %26 = arith.addf %16, %25 : vector<8x384xf32>
    %c1_i32 = arith.constant 1 : i32
    %27 = vector.broadcast %c1_i32 : i32 to vector<8x128xi32>
    %28 = arith.cmpi eq, %15, %27 : vector<8x128xi32>
    %cst_21 = arith.constant 0.000000e+00 : f32
    %29 = vector.broadcast %cst_21 : f32 to vector<8x128xf32>
    %30 = arith.select %28, %6, %29 : vector<8x128xi1>, vector<8x128xf32>
    %cst_22 = arith.constant dense<0.000000e+00> : vector<8xf32>
    %31 = vector.multi_reduction <add>, %30, %cst_22 [1] : vector<8x128xf32> to vector<8xf32>
    %32 = vector.shape_cast %31 : vector<8xf32> to vector<8x1xf32>
    %c0_23 = arith.constant 0 : index
    %c1 = arith.constant 1 : index
    %33 = vector.load %arg8[%c0_23, %c1] : memref<8x640xf32, #tpu.memory_space<vmem>>, vector<8x384xf32>
    %34 = vector.broadcast %32 : vector<8x1xf32> to vector<8x384xf32>
    %35 = arith.mulf %34, %33 : vector<8x384xf32>
    %36 = arith.addf %26, %35 : vector<8x384xf32>
    %c2_i32 = arith.constant 2 : i32
    %37 = vector.broadcast %c2_i32 : i32 to vector<8x128xi32>
    %38 = arith.cmpi eq, %15, %37 : vector<8x128xi32>
    %cst_24 = arith.constant 0.000000e+00 : f32
    %39 = vector.broadcast %cst_24 : f32 to vector<8x128xf32>
    %40 = arith.select %38, %6, %39 : vector<8x128xi1>, vector<8x128xf32>
    %cst_25 = arith.constant dense<0.000000e+00> : vector<8xf32>
    %41 = vector.multi_reduction <add>, %40, %cst_25 [1] : vector<8x128xf32> to vector<8xf32>
    %42 = vector.shape_cast %41 : vector<8xf32> to vector<8x1xf32>
    %c0_26 = arith.constant 0 : index
    %c2 = arith.constant 2 : index
    %43 = vector.load %arg8[%c0_26, %c2] : memref<8x640xf32, #tpu.memory_space<vmem>>, vector<8x384xf32>
    %44 = vector.broadcast %42 : vector<8x1xf32> to vector<8x384xf32>
    %45 = arith.mulf %44, %43 : vector<8x384xf32>
    %46 = arith.addf %36, %45 : vector<8x384xf32>
    %c3_i32 = arith.constant 3 : i32
    %47 = vector.broadcast %c3_i32 : i32 to vector<8x128xi32>
    %48 = arith.cmpi eq, %15, %47 : vector<8x128xi32>
    %cst_27 = arith.constant 0.000000e+00 : f32
    %49 = vector.broadcast %cst_27 : f32 to vector<8x128xf32>
    %50 = arith.select %48, %6, %49 : vector<8x128xi1>, vector<8x128xf32>
    %cst_28 = arith.constant dense<0.000000e+00> : vector<8xf32>
    %51 = vector.multi_reduction <add>, %50, %cst_28 [1] : vector<8x128xf32> to vector<8xf32>
    %52 = vector.shape_cast %51 : vector<8xf32> to vector<8x1xf32>
    %c0_29 = arith.constant 0 : index
    %c3 = arith.constant 3 : index
    %53 = vector.load %arg8[%c0_29, %c3] : memref<8x640xf32, #tpu.memory_space<vmem>>, vector<8x384xf32>
    %54 = vector.broadcast %52 : vector<8x1xf32> to vector<8x384xf32>
    %55 = arith.mulf %54, %53 : vector<8x384xf32>
    %56 = arith.addf %46, %55 : vector<8x384xf32>
    %c4_i32 = arith.constant 4 : i32
    %57 = vector.broadcast %c4_i32 : i32 to vector<8x128xi32>
    %58 = arith.cmpi eq, %15, %57 : vector<8x128xi32>
    %cst_30 = arith.constant 0.000000e+00 : f32
    %59 = vector.broadcast %cst_30 : f32 to vector<8x128xf32>
    %60 = arith.select %58, %6, %59 : vector<8x128xi1>, vector<8x128xf32>
    %cst_31 = arith.constant dense<0.000000e+00> : vector<8xf32>
    %61 = vector.multi_reduction <add>, %60, %cst_31 [1] : vector<8x128xf32> to vector<8xf32>
    %62 = vector.shape_cast %61 : vector<8xf32> to vector<8x1xf32>
    %c0_32 = arith.constant 0 : index
    %c4 = arith.constant 4 : index
    %63 = vector.load %arg8[%c0_32, %c4] : memref<8x640xf32, #tpu.memory_space<vmem>>, vector<8x384xf32>
    %64 = vector.broadcast %62 : vector<8x1xf32> to vector<8x384xf32>
    %65 = arith.mulf %64, %63 : vector<8x384xf32>
    %66 = arith.addf %56, %65 : vector<8x384xf32>
    %c5_i32 = arith.constant 5 : i32
    %67 = vector.broadcast %c5_i32 : i32 to vector<8x128xi32>
    %68 = arith.cmpi eq, %15, %67 : vector<8x128xi32>
    %cst_33 = arith.constant 0.000000e+00 : f32
    %69 = vector.broadcast %cst_33 : f32 to vector<8x128xf32>
    %70 = arith.select %68, %6, %69 : vector<8x128xi1>, vector<8x128xf32>
    %cst_34 = arith.constant dense<0.000000e+00> : vector<8xf32>
    %71 = vector.multi_reduction <add>, %70, %cst_34 [1] : vector<8x128xf32> to vector<8xf32>
    %72 = vector.shape_cast %71 : vector<8xf32> to vector<8x1xf32>
    %c0_35 = arith.constant 0 : index
    %c5 = arith.constant 5 : index
    %73 = vector.load %arg8[%c0_35, %c5] : memref<8x640xf32, #tpu.memory_space<vmem>>, vector<8x384xf32>
    %74 = vector.broadcast %72 : vector<8x1xf32> to vector<8x384xf32>
    %75 = arith.mulf %74, %73 : vector<8x384xf32>
    %76 = arith.addf %66, %75 : vector<8x384xf32>
    %c6_i32 = arith.constant 6 : i32
    %77 = vector.broadcast %c6_i32 : i32 to vector<8x128xi32>
    %78 = arith.cmpi eq, %15, %77 : vector<8x128xi32>
    %cst_36 = arith.constant 0.000000e+00 : f32
    %79 = vector.broadcast %cst_36 : f32 to vector<8x128xf32>
    %80 = arith.select %78, %6, %79 : vector<8x128xi1>, vector<8x128xf32>
    %cst_37 = arith.constant dense<0.000000e+00> : vector<8xf32>
    %81 = vector.multi_reduction <add>, %80, %cst_37 [1] : vector<8x128xf32> to vector<8xf32>
    %82 = vector.shape_cast %81 : vector<8xf32> to vector<8x1xf32>
    %c0_38 = arith.constant 0 : index
    %c6 = arith.constant 6 : index
    %83 = vector.load %arg8[%c0_38, %c6] : memref<8x640xf32, #tpu.memory_space<vmem>>, vector<8x384xf32>
    %84 = vector.broadcast %82 : vector<8x1xf32> to vector<8x384xf32>
    %85 = arith.mulf %84, %83 : vector<8x384xf32>
    %86 = arith.addf %76, %85 : vector<8x384xf32>
    %c7_i32 = arith.constant 7 : i32
    %87 = vector.broadcast %c7_i32 : i32 to vector<8x128xi32>
    %88 = arith.cmpi eq, %15, %87 : vector<8x128xi32>
    %cst_39 = arith.constant 0.000000e+00 : f32
    %89 = vector.broadcast %cst_39 : f32 to vector<8x128xf32>
    %90 = arith.select %88, %6, %89 : vector<8x128xi1>, vector<8x128xf32>
    %cst_40 = arith.constant dense<0.000000e+00> : vector<8xf32>
    %91 = vector.multi_reduction <add>, %90, %cst_40 [1] : vector<8x128xf32> to vector<8xf32>
    %92 = vector.shape_cast %91 : vector<8xf32> to vector<8x1xf32>
    %c0_41 = arith.constant 0 : index
    %c7 = arith.constant 7 : index
    %93 = vector.load %arg8[%c0_41, %c7] : memref<8x640xf32, #tpu.memory_space<vmem>>, vector<8x384xf32>
    %94 = vector.broadcast %92 : vector<8x1xf32> to vector<8x384xf32>
    %95 = arith.mulf %94, %93 : vector<8x384xf32>
    %96 = arith.addf %86, %95 : vector<8x384xf32>
    %c8_i32 = arith.constant 8 : i32
    %97 = vector.broadcast %c8_i32 : i32 to vector<8x128xi32>
    %98 = arith.cmpi eq, %15, %97 : vector<8x128xi32>
    %cst_42 = arith.constant 0.000000e+00 : f32
    %99 = vector.broadcast %cst_42 : f32 to vector<8x128xf32>
    %100 = arith.select %98, %6, %99 : vector<8x128xi1>, vector<8x128xf32>
    %cst_43 = arith.constant dense<0.000000e+00> : vector<8xf32>
    %101 = vector.multi_reduction <add>, %100, %cst_43 [1] : vector<8x128xf32> to vector<8xf32>
    %102 = vector.shape_cast %101 : vector<8xf32> to vector<8x1xf32>
    %c0_44 = arith.constant 0 : index
    %c23 = arith.constant 23 : index
    %103 = vector.load %arg8[%c0_44, %c23] : memref<8x640xf32, #tpu.memory_space<vmem>>, vector<8x384xf32>
    %104 = vector.broadcast %102 : vector<8x1xf32> to vector<8x384xf32>
    %105 = arith.mulf %104, %103 : vector<8x384xf32>
    %106 = arith.addf %96, %105 : vector<8x384xf32>
    %c9_i32 = arith.constant 9 : i32
    %107 = vector.broadcast %c9_i32 : i32 to vector<8x128xi32>
    %108 = arith.cmpi eq, %15, %107 : vector<8x128xi32>
    %cst_45 = arith.constant 0.000000e+00 : f32
    %109 = vector.broadcast %cst_45 : f32 to vector<8x128xf32>
    %110 = arith.select %108, %6, %109 : vector<8x128xi1>, vector<8x128xf32>
    %cst_46 = arith.constant dense<0.000000e+00> : vector<8xf32>
    %111 = vector.multi_reduction <add>, %110, %cst_46 [1] : vector<8x128xf32> to vector<8xf32>
    %112 = vector.shape_cast %111 : vector<8xf32> to vector<8x1xf32>
    %c0_47 = arith.constant 0 : index
    %c24 = arith.constant 24 : index
    %113 = vector.load %arg8[%c0_47, %c24] : memref<8x640xf32, #tpu.memory_space<vmem>>, vector<8x384xf32>
    %114 = vector.broadcast %112 : vector<8x1xf32> to vector<8x384xf32>
    %115 = arith.mulf %114, %113 : vector<8x384xf32>
    %116 = arith.addf %106, %115 : vector<8x384xf32>
    %c10_i32 = arith.constant 10 : i32
    %117 = vector.broadcast %c10_i32 : i32 to vector<8x128xi32>
    %118 = arith.cmpi eq, %15, %117 : vector<8x128xi32>
    %cst_48 = arith.constant 0.000000e+00 : f32
    %119 = vector.broadcast %cst_48 : f32 to vector<8x128xf32>
    %120 = arith.select %118, %6, %119 : vector<8x128xi1>, vector<8x128xf32>
    %cst_49 = arith.constant dense<0.000000e+00> : vector<8xf32>
    %121 = vector.multi_reduction <add>, %120, %cst_49 [1] : vector<8x128xf32> to vector<8xf32>
    %122 = vector.shape_cast %121 : vector<8xf32> to vector<8x1xf32>
    %c0_50 = arith.constant 0 : index
    %c25 = arith.constant 25 : index
    %123 = vector.load %arg8[%c0_50, %c25] : memref<8x640xf32, #tpu.memory_space<vmem>>, vector<8x384xf32>
    %124 = vector.broadcast %122 : vector<8x1xf32> to vector<8x384xf32>
    %125 = arith.mulf %124, %123 : vector<8x384xf32>
    %126 = arith.addf %116, %125 : vector<8x384xf32>
    %c11_i32 = arith.constant 11 : i32
    %127 = vector.broadcast %c11_i32 : i32 to vector<8x128xi32>
    %128 = arith.cmpi eq, %15, %127 : vector<8x128xi32>
    %cst_51 = arith.constant 0.000000e+00 : f32
    %129 = vector.broadcast %cst_51 : f32 to vector<8x128xf32>
    %130 = arith.select %128, %6, %129 : vector<8x128xi1>, vector<8x128xf32>
    %cst_52 = arith.constant dense<0.000000e+00> : vector<8xf32>
    %131 = vector.multi_reduction <add>, %130, %cst_52 [1] : vector<8x128xf32> to vector<8xf32>
    %132 = vector.shape_cast %131 : vector<8xf32> to vector<8x1xf32>
    %c0_53 = arith.constant 0 : index
    %c26 = arith.constant 26 : index
    %133 = vector.load %arg8[%c0_53, %c26] : memref<8x640xf32, #tpu.memory_space<vmem>>, vector<8x384xf32>
    %134 = vector.broadcast %132 : vector<8x1xf32> to vector<8x384xf32>
    %135 = arith.mulf %134, %133 : vector<8x384xf32>
    %136 = arith.addf %126, %135 : vector<8x384xf32>
    %c12_i32 = arith.constant 12 : i32
    %137 = vector.broadcast %c12_i32 : i32 to vector<8x128xi32>
    %138 = arith.cmpi eq, %15, %137 : vector<8x128xi32>
    %cst_54 = arith.constant 0.000000e+00 : f32
    %139 = vector.broadcast %cst_54 : f32 to vector<8x128xf32>
    %140 = arith.select %138, %6, %139 : vector<8x128xi1>, vector<8x128xf32>
    %cst_55 = arith.constant dense<0.000000e+00> : vector<8xf32>
    %141 = vector.multi_reduction <add>, %140, %cst_55 [1] : vector<8x128xf32> to vector<8xf32>
    %142 = vector.shape_cast %141 : vector<8xf32> to vector<8x1xf32>
    %c0_56 = arith.constant 0 : index
    %c27 = arith.constant 27 : index
    %143 = vector.load %arg8[%c0_56, %c27] : memref<8x640xf32, #tpu.memory_space<vmem>>, vector<8x384xf32>
    %144 = vector.broadcast %142 : vector<8x1xf32> to vector<8x384xf32>
    %145 = arith.mulf %144, %143 : vector<8x384xf32>
    %146 = arith.addf %136, %145 : vector<8x384xf32>
    %c13_i32 = arith.constant 13 : i32
    %147 = vector.broadcast %c13_i32 : i32 to vector<8x128xi32>
    %148 = arith.cmpi eq, %15, %147 : vector<8x128xi32>
    %cst_57 = arith.constant 0.000000e+00 : f32
    %149 = vector.broadcast %cst_57 : f32 to vector<8x128xf32>
    %150 = arith.select %148, %6, %149 : vector<8x128xi1>, vector<8x128xf32>
    %cst_58 = arith.constant dense<0.000000e+00> : vector<8xf32>
    %151 = vector.multi_reduction <add>, %150, %cst_58 [1] : vector<8x128xf32> to vector<8xf32>
    %152 = vector.shape_cast %151 : vector<8xf32> to vector<8x1xf32>
    %c0_59 = arith.constant 0 : index
    %c28 = arith.constant 28 : index
    %153 = vector.load %arg8[%c0_59, %c28] : memref<8x640xf32, #tpu.memory_space<vmem>>, vector<8x384xf32>
    %154 = vector.broadcast %152 : vector<8x1xf32> to vector<8x384xf32>
    %155 = arith.mulf %154, %153 : vector<8x384xf32>
    %156 = arith.addf %146, %155 : vector<8x384xf32>
    %c14_i32 = arith.constant 14 : i32
    %157 = vector.broadcast %c14_i32 : i32 to vector<8x128xi32>
    %158 = arith.cmpi eq, %15, %157 : vector<8x128xi32>
    %cst_60 = arith.constant 0.000000e+00 : f32
    %159 = vector.broadcast %cst_60 : f32 to vector<8x128xf32>
    %160 = arith.select %158, %6, %159 : vector<8x128xi1>, vector<8x128xf32>
    %cst_61 = arith.constant dense<0.000000e+00> : vector<8xf32>
    %161 = vector.multi_reduction <add>, %160, %cst_61 [1] : vector<8x128xf32> to vector<8xf32>
    %162 = vector.shape_cast %161 : vector<8xf32> to vector<8x1xf32>
    %c0_62 = arith.constant 0 : index
    %c29 = arith.constant 29 : index
    %163 = vector.load %arg8[%c0_62, %c29] : memref<8x640xf32, #tpu.memory_space<vmem>>, vector<8x384xf32>
    %164 = vector.broadcast %162 : vector<8x1xf32> to vector<8x384xf32>
    %165 = arith.mulf %164, %163 : vector<8x384xf32>
    %166 = arith.addf %156, %165 : vector<8x384xf32>
    %c15_i32 = arith.constant 15 : i32
    %167 = vector.broadcast %c15_i32 : i32 to vector<8x128xi32>
    %168 = arith.cmpi eq, %15, %167 : vector<8x128xi32>
    %cst_63 = arith.constant 0.000000e+00 : f32
    %169 = vector.broadcast %cst_63 : f32 to vector<8x128xf32>
    %170 = arith.select %168, %6, %169 : vector<8x128xi1>, vector<8x128xf32>
    %cst_64 = arith.constant dense<0.000000e+00> : vector<8xf32>
    %171 = vector.multi_reduction <add>, %170, %cst_64 [1] : vector<8x128xf32> to vector<8xf32>
    %172 = vector.shape_cast %171 : vector<8xf32> to vector<8x1xf32>
    %c0_65 = arith.constant 0 : index
    %c30 = arith.constant 30 : index
    %173 = vector.load %arg8[%c0_65, %c30] : memref<8x640xf32, #tpu.memory_space<vmem>>, vector<8x384xf32>
    %174 = vector.broadcast %172 : vector<8x1xf32> to vector<8x384xf32>
    %175 = arith.mulf %174, %173 : vector<8x384xf32>
    %176 = arith.addf %166, %175 : vector<8x384xf32>
    %c16_i32 = arith.constant 16 : i32
    %177 = vector.broadcast %c16_i32 : i32 to vector<8x128xi32>
    %178 = arith.cmpi eq, %15, %177 : vector<8x128xi32>
    %cst_66 = arith.constant 0.000000e+00 : f32
    %179 = vector.broadcast %cst_66 : f32 to vector<8x128xf32>
    %180 = arith.select %178, %6, %179 : vector<8x128xi1>, vector<8x128xf32>
    %cst_67 = arith.constant dense<0.000000e+00> : vector<8xf32>
    %181 = vector.multi_reduction <add>, %180, %cst_67 [1] : vector<8x128xf32> to vector<8xf32>
    %182 = vector.shape_cast %181 : vector<8xf32> to vector<8x1xf32>
    %c0_68 = arith.constant 0 : index
    %c46 = arith.constant 46 : index
    %183 = vector.load %arg8[%c0_68, %c46] : memref<8x640xf32, #tpu.memory_space<vmem>>, vector<8x384xf32>
    %184 = vector.broadcast %182 : vector<8x1xf32> to vector<8x384xf32>
    %185 = arith.mulf %184, %183 : vector<8x384xf32>
    %186 = arith.addf %176, %185 : vector<8x384xf32>
    %c17_i32 = arith.constant 17 : i32
    %187 = vector.broadcast %c17_i32 : i32 to vector<8x128xi32>
    %188 = arith.cmpi eq, %15, %187 : vector<8x128xi32>
    %cst_69 = arith.constant 0.000000e+00 : f32
    %189 = vector.broadcast %cst_69 : f32 to vector<8x128xf32>
    %190 = arith.select %188, %6, %189 : vector<8x128xi1>, vector<8x128xf32>
    %cst_70 = arith.constant dense<0.000000e+00> : vector<8xf32>
    %191 = vector.multi_reduction <add>, %190, %cst_70 [1] : vector<8x128xf32> to vector<8xf32>
    %192 = vector.shape_cast %191 : vector<8xf32> to vector<8x1xf32>
    %c0_71 = arith.constant 0 : index
    %c47 = arith.constant 47 : index
    %193 = vector.load %arg8[%c0_71, %c47] : memref<8x640xf32, #tpu.memory_space<vmem>>, vector<8x384xf32>
    %194 = vector.broadcast %192 : vector<8x1xf32> to vector<8x384xf32>
    %195 = arith.mulf %194, %193 : vector<8x384xf32>
    %196 = arith.addf %186, %195 : vector<8x384xf32>
    %c18_i32 = arith.constant 18 : i32
    %197 = vector.broadcast %c18_i32 : i32 to vector<8x128xi32>
    %198 = arith.cmpi eq, %15, %197 : vector<8x128xi32>
    %cst_72 = arith.constant 0.000000e+00 : f32
    %199 = vector.broadcast %cst_72 : f32 to vector<8x128xf32>
    %200 = arith.select %198, %6, %199 : vector<8x128xi1>, vector<8x128xf32>
    %cst_73 = arith.constant dense<0.000000e+00> : vector<8xf32>
    %201 = vector.multi_reduction <add>, %200, %cst_73 [1] : vector<8x128xf32> to vector<8xf32>
    %202 = vector.shape_cast %201 : vector<8xf32> to vector<8x1xf32>
    %c0_74 = arith.constant 0 : index
    %c48 = arith.constant 48 : index
    %203 = vector.load %arg8[%c0_74, %c48] : memref<8x640xf32, #tpu.memory_space<vmem>>, vector<8x384xf32>
    %204 = vector.broadcast %202 : vector<8x1xf32> to vector<8x384xf32>
    %205 = arith.mulf %204, %203 : vector<8x384xf32>
    %206 = arith.addf %196, %205 : vector<8x384xf32>
    %c19_i32 = arith.constant 19 : i32
    %207 = vector.broadcast %c19_i32 : i32 to vector<8x128xi32>
    %208 = arith.cmpi eq, %15, %207 : vector<8x128xi32>
    %cst_75 = arith.constant 0.000000e+00 : f32
    %209 = vector.broadcast %cst_75 : f32 to vector<8x128xf32>
    %210 = arith.select %208, %6, %209 : vector<8x128xi1>, vector<8x128xf32>
    %cst_76 = arith.constant dense<0.000000e+00> : vector<8xf32>
    %211 = vector.multi_reduction <add>, %210, %cst_76 [1] : vector<8x128xf32> to vector<8xf32>
    %212 = vector.shape_cast %211 : vector<8xf32> to vector<8x1xf32>
    %c0_77 = arith.constant 0 : index
    %c49 = arith.constant 49 : index
    %213 = vector.load %arg8[%c0_77, %c49] : memref<8x640xf32, #tpu.memory_space<vmem>>, vector<8x384xf32>
    %214 = vector.broadcast %212 : vector<8x1xf32> to vector<8x384xf32>
    %215 = arith.mulf %214, %213 : vector<8x384xf32>
    %216 = arith.addf %206, %215 : vector<8x384xf32>
    %c20_i32 = arith.constant 20 : i32
    %217 = vector.broadcast %c20_i32 : i32 to vector<8x128xi32>
    %218 = arith.cmpi eq, %15, %217 : vector<8x128xi32>
    %cst_78 = arith.constant 0.000000e+00 : f32
    %219 = vector.broadcast %cst_78 : f32 to vector<8x128xf32>
    %220 = arith.select %218, %6, %219 : vector<8x128xi1>, vector<8x128xf32>
    %cst_79 = arith.constant dense<0.000000e+00> : vector<8xf32>
    %221 = vector.multi_reduction <add>, %220, %cst_79 [1] : vector<8x128xf32> to vector<8xf32>
    %222 = vector.shape_cast %221 : vector<8xf32> to vector<8x1xf32>
    %c0_80 = arith.constant 0 : index
    %c50 = arith.constant 50 : index
    %223 = vector.load %arg8[%c0_80, %c50] : memref<8x640xf32, #tpu.memory_space<vmem>>, vector<8x384xf32>
    %224 = vector.broadcast %222 : vector<8x1xf32> to vector<8x384xf32>
    %225 = arith.mulf %224, %223 : vector<8x384xf32>
    %226 = arith.addf %216, %225 : vector<8x384xf32>
    %c21_i32 = arith.constant 21 : i32
    %227 = vector.broadcast %c21_i32 : i32 to vector<8x128xi32>
    %228 = arith.cmpi eq, %15, %227 : vector<8x128xi32>
    %cst_81 = arith.constant 0.000000e+00 : f32
    %229 = vector.broadcast %cst_81 : f32 to vector<8x128xf32>
    %230 = arith.select %228, %6, %229 : vector<8x128xi1>, vector<8x128xf32>
    %cst_82 = arith.constant dense<0.000000e+00> : vector<8xf32>
    %231 = vector.multi_reduction <add>, %230, %cst_82 [1] : vector<8x128xf32> to vector<8xf32>
    %232 = vector.shape_cast %231 : vector<8xf32> to vector<8x1xf32>
    %c0_83 = arith.constant 0 : index
    %c51 = arith.constant 51 : index
    %233 = vector.load %arg8[%c0_83, %c51] : memref<8x640xf32, #tpu.memory_space<vmem>>, vector<8x384xf32>
    %234 = vector.broadcast %232 : vector<8x1xf32> to vector<8x384xf32>
    %235 = arith.mulf %234, %233 : vector<8x384xf32>
    %236 = arith.addf %226, %235 : vector<8x384xf32>
    %c22_i32 = arith.constant 22 : i32
    %237 = vector.broadcast %c22_i32 : i32 to vector<8x128xi32>
    %238 = arith.cmpi eq, %15, %237 : vector<8x128xi32>
    %cst_84 = arith.constant 0.000000e+00 : f32
    %239 = vector.broadcast %cst_84 : f32 to vector<8x128xf32>
    %240 = arith.select %238, %6, %239 : vector<8x128xi1>, vector<8x128xf32>
    %cst_85 = arith.constant dense<0.000000e+00> : vector<8xf32>
    %241 = vector.multi_reduction <add>, %240, %cst_85 [1] : vector<8x128xf32> to vector<8xf32>
    %242 = vector.shape_cast %241 : vector<8xf32> to vector<8x1xf32>
    %c0_86 = arith.constant 0 : index
    %c52 = arith.constant 52 : index
    %243 = vector.load %arg8[%c0_86, %c52] : memref<8x640xf32, #tpu.memory_space<vmem>>, vector<8x384xf32>
    %244 = vector.broadcast %242 : vector<8x1xf32> to vector<8x384xf32>
    %245 = arith.mulf %244, %243 : vector<8x384xf32>
    %246 = arith.addf %236, %245 : vector<8x384xf32>
    %c23_i32 = arith.constant 23 : i32
    %247 = vector.broadcast %c23_i32 : i32 to vector<8x128xi32>
    %248 = arith.cmpi eq, %15, %247 : vector<8x128xi32>
    %cst_87 = arith.constant 0.000000e+00 : f32
    %249 = vector.broadcast %cst_87 : f32 to vector<8x128xf32>
    %250 = arith.select %248, %6, %249 : vector<8x128xi1>, vector<8x128xf32>
    %cst_88 = arith.constant dense<0.000000e+00> : vector<8xf32>
    %251 = vector.multi_reduction <add>, %250, %cst_88 [1] : vector<8x128xf32> to vector<8xf32>
    %252 = vector.shape_cast %251 : vector<8xf32> to vector<8x1xf32>
    %c0_89 = arith.constant 0 : index
    %c53 = arith.constant 53 : index
    %253 = vector.load %arg8[%c0_89, %c53] : memref<8x640xf32, #tpu.memory_space<vmem>>, vector<8x384xf32>
    %254 = vector.broadcast %252 : vector<8x1xf32> to vector<8x384xf32>
    %255 = arith.mulf %254, %253 : vector<8x384xf32>
    %256 = arith.addf %246, %255 : vector<8x384xf32>
    %c24_i32 = arith.constant 24 : i32
    %257 = vector.broadcast %c24_i32 : i32 to vector<8x128xi32>
    %258 = arith.cmpi eq, %15, %257 : vector<8x128xi32>
    %cst_90 = arith.constant 0.000000e+00 : f32
    %259 = vector.broadcast %cst_90 : f32 to vector<8x128xf32>
    %260 = arith.select %258, %6, %259 : vector<8x128xi1>, vector<8x128xf32>
    %cst_91 = arith.constant dense<0.000000e+00> : vector<8xf32>
    %261 = vector.multi_reduction <add>, %260, %cst_91 [1] : vector<8x128xf32> to vector<8xf32>
    %262 = vector.shape_cast %261 : vector<8xf32> to vector<8x1xf32>
    %c0_92 = arith.constant 0 : index
    %c69 = arith.constant 69 : index
    %263 = vector.load %arg8[%c0_92, %c69] : memref<8x640xf32, #tpu.memory_space<vmem>>, vector<8x384xf32>
    %264 = vector.broadcast %262 : vector<8x1xf32> to vector<8x384xf32>
    %265 = arith.mulf %264, %263 : vector<8x384xf32>
    %266 = arith.addf %256, %265 : vector<8x384xf32>
    %c25_i32 = arith.constant 25 : i32
    %267 = vector.broadcast %c25_i32 : i32 to vector<8x128xi32>
    %268 = arith.cmpi eq, %15, %267 : vector<8x128xi32>
    %cst_93 = arith.constant 0.000000e+00 : f32
    %269 = vector.broadcast %cst_93 : f32 to vector<8x128xf32>
    %270 = arith.select %268, %6, %269 : vector<8x128xi1>, vector<8x128xf32>
    %cst_94 = arith.constant dense<0.000000e+00> : vector<8xf32>
    %271 = vector.multi_reduction <add>, %270, %cst_94 [1] : vector<8x128xf32> to vector<8xf32>
    %272 = vector.shape_cast %271 : vector<8xf32> to vector<8x1xf32>
    %c0_95 = arith.constant 0 : index
    %c70 = arith.constant 70 : index
    %273 = vector.load %arg8[%c0_95, %c70] : memref<8x640xf32, #tpu.memory_space<vmem>>, vector<8x384xf32>
    %274 = vector.broadcast %272 : vector<8x1xf32> to vector<8x384xf32>
    %275 = arith.mulf %274, %273 : vector<8x384xf32>
    %276 = arith.addf %266, %275 : vector<8x384xf32>
    %c26_i32 = arith.constant 26 : i32
    %277 = vector.broadcast %c26_i32 : i32 to vector<8x128xi32>
    %278 = arith.cmpi eq, %15, %277 : vector<8x128xi32>
    %cst_96 = arith.constant 0.000000e+00 : f32
    %279 = vector.broadcast %cst_96 : f32 to vector<8x128xf32>
    %280 = arith.select %278, %6, %279 : vector<8x128xi1>, vector<8x128xf32>
    %cst_97 = arith.constant dense<0.000000e+00> : vector<8xf32>
    %281 = vector.multi_reduction <add>, %280, %cst_97 [1] : vector<8x128xf32> to vector<8xf32>
    %282 = vector.shape_cast %281 : vector<8xf32> to vector<8x1xf32>
    %c0_98 = arith.constant 0 : index
    %c71 = arith.constant 71 : index
    %283 = vector.load %arg8[%c0_98, %c71] : memref<8x640xf32, #tpu.memory_space<vmem>>, vector<8x384xf32>
    %284 = vector.broadcast %282 : vector<8x1xf32> to vector<8x384xf32>
    %285 = arith.mulf %284, %283 : vector<8x384xf32>
    %286 = arith.addf %276, %285 : vector<8x384xf32>
    %c27_i32 = arith.constant 27 : i32
    %287 = vector.broadcast %c27_i32 : i32 to vector<8x128xi32>
    %288 = arith.cmpi eq, %15, %287 : vector<8x128xi32>
    %cst_99 = arith.constant 0.000000e+00 : f32
    %289 = vector.broadcast %cst_99 : f32 to vector<8x128xf32>
    %290 = arith.select %288, %6, %289 : vector<8x128xi1>, vector<8x128xf32>
    %cst_100 = arith.constant dense<0.000000e+00> : vector<8xf32>
    %291 = vector.multi_reduction <add>, %290, %cst_100 [1] : vector<8x128xf32> to vector<8xf32>
    %292 = vector.shape_cast %291 : vector<8xf32> to vector<8x1xf32>
    %c0_101 = arith.constant 0 : index
    %c72 = arith.constant 72 : index
    %293 = vector.load %arg8[%c0_101, %c72] : memref<8x640xf32, #tpu.memory_space<vmem>>, vector<8x384xf32>
    %294 = vector.broadcast %292 : vector<8x1xf32> to vector<8x384xf32>
    %295 = arith.mulf %294, %293 : vector<8x384xf32>
    %296 = arith.addf %286, %295 : vector<8x384xf32>
    %c28_i32 = arith.constant 28 : i32
    %297 = vector.broadcast %c28_i32 : i32 to vector<8x128xi32>
    %298 = arith.cmpi eq, %15, %297 : vector<8x128xi32>
    %cst_102 = arith.constant 0.000000e+00 : f32
    %299 = vector.broadcast %cst_102 : f32 to vector<8x128xf32>
    %300 = arith.select %298, %6, %299 : vector<8x128xi1>, vector<8x128xf32>
    %cst_103 = arith.constant dense<0.000000e+00> : vector<8xf32>
    %301 = vector.multi_reduction <add>, %300, %cst_103 [1] : vector<8x128xf32> to vector<8xf32>
    %302 = vector.shape_cast %301 : vector<8xf32> to vector<8x1xf32>
    %c0_104 = arith.constant 0 : index
    %c73 = arith.constant 73 : index
    %303 = vector.load %arg8[%c0_104, %c73] : memref<8x640xf32, #tpu.memory_space<vmem>>, vector<8x384xf32>
    %304 = vector.broadcast %302 : vector<8x1xf32> to vector<8x384xf32>
    %305 = arith.mulf %304, %303 : vector<8x384xf32>
    %306 = arith.addf %296, %305 : vector<8x384xf32>
    %c29_i32 = arith.constant 29 : i32
    %307 = vector.broadcast %c29_i32 : i32 to vector<8x128xi32>
    %308 = arith.cmpi eq, %15, %307 : vector<8x128xi32>
    %cst_105 = arith.constant 0.000000e+00 : f32
    %309 = vector.broadcast %cst_105 : f32 to vector<8x128xf32>
    %310 = arith.select %308, %6, %309 : vector<8x128xi1>, vector<8x128xf32>
    %cst_106 = arith.constant dense<0.000000e+00> : vector<8xf32>
    %311 = vector.multi_reduction <add>, %310, %cst_106 [1] : vector<8x128xf32> to vector<8xf32>
    %312 = vector.shape_cast %311 : vector<8xf32> to vector<8x1xf32>
    %c0_107 = arith.constant 0 : index
    %c74 = arith.constant 74 : index
    %313 = vector.load %arg8[%c0_107, %c74] : memref<8x640xf32, #tpu.memory_space<vmem>>, vector<8x384xf32>
    %314 = vector.broadcast %312 : vector<8x1xf32> to vector<8x384xf32>
    %315 = arith.mulf %314, %313 : vector<8x384xf32>
    %316 = arith.addf %306, %315 : vector<8x384xf32>
    %c30_i32 = arith.constant 30 : i32
    %317 = vector.broadcast %c30_i32 : i32 to vector<8x128xi32>
    %318 = arith.cmpi eq, %15, %317 : vector<8x128xi32>
    %cst_108 = arith.constant 0.000000e+00 : f32
    %319 = vector.broadcast %cst_108 : f32 to vector<8x128xf32>
    %320 = arith.select %318, %6, %319 : vector<8x128xi1>, vector<8x128xf32>
    %cst_109 = arith.constant dense<0.000000e+00> : vector<8xf32>
    %321 = vector.multi_reduction <add>, %320, %cst_109 [1] : vector<8x128xf32> to vector<8xf32>
    %322 = vector.shape_cast %321 : vector<8xf32> to vector<8x1xf32>
    %c0_110 = arith.constant 0 : index
    %c75 = arith.constant 75 : index
    %323 = vector.load %arg8[%c0_110, %c75] : memref<8x640xf32, #tpu.memory_space<vmem>>, vector<8x384xf32>
    %324 = vector.broadcast %322 : vector<8x1xf32> to vector<8x384xf32>
    %325 = arith.mulf %324, %323 : vector<8x384xf32>
    %326 = arith.addf %316, %325 : vector<8x384xf32>
    %c31_i32 = arith.constant 31 : i32
    %327 = vector.broadcast %c31_i32 : i32 to vector<8x128xi32>
    %328 = arith.cmpi eq, %15, %327 : vector<8x128xi32>
    %cst_111 = arith.constant 0.000000e+00 : f32
    %329 = vector.broadcast %cst_111 : f32 to vector<8x128xf32>
    %330 = arith.select %328, %6, %329 : vector<8x128xi1>, vector<8x128xf32>
    %cst_112 = arith.constant dense<0.000000e+00> : vector<8xf32>
    %331 = vector.multi_reduction <add>, %330, %cst_112 [1] : vector<8x128xf32> to vector<8xf32>
    %332 = vector.shape_cast %331 : vector<8xf32> to vector<8x1xf32>
    %c0_113 = arith.constant 0 : index
    %c76 = arith.constant 76 : index
    %333 = vector.load %arg8[%c0_113, %c76] : memref<8x640xf32, #tpu.memory_space<vmem>>, vector<8x384xf32>
    %334 = vector.broadcast %332 : vector<8x1xf32> to vector<8x384xf32>
    %335 = arith.mulf %334, %333 : vector<8x384xf32>
    %336 = arith.addf %326, %335 : vector<8x384xf32>
    %c32_i32 = arith.constant 32 : i32
    %337 = vector.broadcast %c32_i32 : i32 to vector<8x128xi32>
    %338 = arith.cmpi eq, %15, %337 : vector<8x128xi32>
    %cst_114 = arith.constant 0.000000e+00 : f32
    %339 = vector.broadcast %cst_114 : f32 to vector<8x128xf32>
    %340 = arith.select %338, %6, %339 : vector<8x128xi1>, vector<8x128xf32>
    %cst_115 = arith.constant dense<0.000000e+00> : vector<8xf32>
    %341 = vector.multi_reduction <add>, %340, %cst_115 [1] : vector<8x128xf32> to vector<8xf32>
    %342 = vector.shape_cast %341 : vector<8xf32> to vector<8x1xf32>
    %c0_116 = arith.constant 0 : index
    %c92 = arith.constant 92 : index
    %343 = vector.load %arg8[%c0_116, %c92] : memref<8x640xf32, #tpu.memory_space<vmem>>, vector<8x384xf32>
    %344 = vector.broadcast %342 : vector<8x1xf32> to vector<8x384xf32>
    %345 = arith.mulf %344, %343 : vector<8x384xf32>
    %346 = arith.addf %336, %345 : vector<8x384xf32>
    %c33_i32 = arith.constant 33 : i32
    %347 = vector.broadcast %c33_i32 : i32 to vector<8x128xi32>
    %348 = arith.cmpi eq, %15, %347 : vector<8x128xi32>
    %cst_117 = arith.constant 0.000000e+00 : f32
    %349 = vector.broadcast %cst_117 : f32 to vector<8x128xf32>
    %350 = arith.select %348, %6, %349 : vector<8x128xi1>, vector<8x128xf32>
    %cst_118 = arith.constant dense<0.000000e+00> : vector<8xf32>
    %351 = vector.multi_reduction <add>, %350, %cst_118 [1] : vector<8x128xf32> to vector<8xf32>
    %352 = vector.shape_cast %351 : vector<8xf32> to vector<8x1xf32>
    %c0_119 = arith.constant 0 : index
    %c93 = arith.constant 93 : index
    %353 = vector.load %arg8[%c0_119, %c93] : memref<8x640xf32, #tpu.memory_space<vmem>>, vector<8x384xf32>
    %354 = vector.broadcast %352 : vector<8x1xf32> to vector<8x384xf32>
    %355 = arith.mulf %354, %353 : vector<8x384xf32>
    %356 = arith.addf %346, %355 : vector<8x384xf32>
    %c34_i32 = arith.constant 34 : i32
    %357 = vector.broadcast %c34_i32 : i32 to vector<8x128xi32>
    %358 = arith.cmpi eq, %15, %357 : vector<8x128xi32>
    %cst_120 = arith.constant 0.000000e+00 : f32
    %359 = vector.broadcast %cst_120 : f32 to vector<8x128xf32>
    %360 = arith.select %358, %6, %359 : vector<8x128xi1>, vector<8x128xf32>
    %cst_121 = arith.constant dense<0.000000e+00> : vector<8xf32>
    %361 = vector.multi_reduction <add>, %360, %cst_121 [1] : vector<8x128xf32> to vector<8xf32>
    %362 = vector.shape_cast %361 : vector<8xf32> to vector<8x1xf32>
    %c0_122 = arith.constant 0 : index
    %c94 = arith.constant 94 : index
    %363 = vector.load %arg8[%c0_122, %c94] : memref<8x640xf32, #tpu.memory_space<vmem>>, vector<8x384xf32>
    %364 = vector.broadcast %362 : vector<8x1xf32> to vector<8x384xf32>
    %365 = arith.mulf %364, %363 : vector<8x384xf32>
    %366 = arith.addf %356, %365 : vector<8x384xf32>
    %c35_i32 = arith.constant 35 : i32
    %367 = vector.broadcast %c35_i32 : i32 to vector<8x128xi32>
    %368 = arith.cmpi eq, %15, %367 : vector<8x128xi32>
    %cst_123 = arith.constant 0.000000e+00 : f32
    %369 = vector.broadcast %cst_123 : f32 to vector<8x128xf32>
    %370 = arith.select %368, %6, %369 : vector<8x128xi1>, vector<8x128xf32>
    %cst_124 = arith.constant dense<0.000000e+00> : vector<8xf32>
    %371 = vector.multi_reduction <add>, %370, %cst_124 [1] : vector<8x128xf32> to vector<8xf32>
    %372 = vector.shape_cast %371 : vector<8xf32> to vector<8x1xf32>
    %c0_125 = arith.constant 0 : index
    %c95 = arith.constant 95 : index
    %373 = vector.load %arg8[%c0_125, %c95] : memref<8x640xf32, #tpu.memory_space<vmem>>, vector<8x384xf32>
    %374 = vector.broadcast %372 : vector<8x1xf32> to vector<8x384xf32>
    %375 = arith.mulf %374, %373 : vector<8x384xf32>
    %376 = arith.addf %366, %375 : vector<8x384xf32>
    %c36_i32 = arith.constant 36 : i32
    %377 = vector.broadcast %c36_i32 : i32 to vector<8x128xi32>
    %378 = arith.cmpi eq, %15, %377 : vector<8x128xi32>
    %cst_126 = arith.constant 0.000000e+00 : f32
    %379 = vector.broadcast %cst_126 : f32 to vector<8x128xf32>
    %380 = arith.select %378, %6, %379 : vector<8x128xi1>, vector<8x128xf32>
    %cst_127 = arith.constant dense<0.000000e+00> : vector<8xf32>
    %381 = vector.multi_reduction <add>, %380, %cst_127 [1] : vector<8x128xf32> to vector<8xf32>
    %382 = vector.shape_cast %381 : vector<8xf32> to vector<8x1xf32>
    %c0_128 = arith.constant 0 : index
    %c96 = arith.constant 96 : index
    %383 = vector.load %arg8[%c0_128, %c96] : memref<8x640xf32, #tpu.memory_space<vmem>>, vector<8x384xf32>
    %384 = vector.broadcast %382 : vector<8x1xf32> to vector<8x384xf32>
    %385 = arith.mulf %384, %383 : vector<8x384xf32>
    %386 = arith.addf %376, %385 : vector<8x384xf32>
    %c37_i32 = arith.constant 37 : i32
    %387 = vector.broadcast %c37_i32 : i32 to vector<8x128xi32>
    %388 = arith.cmpi eq, %15, %387 : vector<8x128xi32>
    %cst_129 = arith.constant 0.000000e+00 : f32
    %389 = vector.broadcast %cst_129 : f32 to vector<8x128xf32>
    %390 = arith.select %388, %6, %389 : vector<8x128xi1>, vector<8x128xf32>
    %cst_130 = arith.constant dense<0.000000e+00> : vector<8xf32>
    %391 = vector.multi_reduction <add>, %390, %cst_130 [1] : vector<8x128xf32> to vector<8xf32>
    %392 = vector.shape_cast %391 : vector<8xf32> to vector<8x1xf32>
    %c0_131 = arith.constant 0 : index
    %c97 = arith.constant 97 : index
    %393 = vector.load %arg8[%c0_131, %c97] : memref<8x640xf32, #tpu.memory_space<vmem>>, vector<8x384xf32>
    %394 = vector.broadcast %392 : vector<8x1xf32> to vector<8x384xf32>
    %395 = arith.mulf %394, %393 : vector<8x384xf32>
    %396 = arith.addf %386, %395 : vector<8x384xf32>
    %c38_i32 = arith.constant 38 : i32
    %397 = vector.broadcast %c38_i32 : i32 to vector<8x128xi32>
    %398 = arith.cmpi eq, %15, %397 : vector<8x128xi32>
    %cst_132 = arith.constant 0.000000e+00 : f32
    %399 = vector.broadcast %cst_132 : f32 to vector<8x128xf32>
    %400 = arith.select %398, %6, %399 : vector<8x128xi1>, vector<8x128xf32>
    %cst_133 = arith.constant dense<0.000000e+00> : vector<8xf32>
    %401 = vector.multi_reduction <add>, %400, %cst_133 [1] : vector<8x128xf32> to vector<8xf32>
    %402 = vector.shape_cast %401 : vector<8xf32> to vector<8x1xf32>
    %c0_134 = arith.constant 0 : index
    %c98 = arith.constant 98 : index
    %403 = vector.load %arg8[%c0_134, %c98] : memref<8x640xf32, #tpu.memory_space<vmem>>, vector<8x384xf32>
    %404 = vector.broadcast %402 : vector<8x1xf32> to vector<8x384xf32>
    %405 = arith.mulf %404, %403 : vector<8x384xf32>
    %406 = arith.addf %396, %405 : vector<8x384xf32>
    %c39_i32 = arith.constant 39 : i32
    %407 = vector.broadcast %c39_i32 : i32 to vector<8x128xi32>
    %408 = arith.cmpi eq, %15, %407 : vector<8x128xi32>
    %cst_135 = arith.constant 0.000000e+00 : f32
    %409 = vector.broadcast %cst_135 : f32 to vector<8x128xf32>
    %410 = arith.select %408, %6, %409 : vector<8x128xi1>, vector<8x128xf32>
    %cst_136 = arith.constant dense<0.000000e+00> : vector<8xf32>
    %411 = vector.multi_reduction <add>, %410, %cst_136 [1] : vector<8x128xf32> to vector<8xf32>
    %412 = vector.shape_cast %411 : vector<8xf32> to vector<8x1xf32>
    %c0_137 = arith.constant 0 : index
    %c99 = arith.constant 99 : index
    %413 = vector.load %arg8[%c0_137, %c99] : memref<8x640xf32, #tpu.memory_space<vmem>>, vector<8x384xf32>
    %414 = vector.broadcast %412 : vector<8x1xf32> to vector<8x384xf32>
    %415 = arith.mulf %414, %413 : vector<8x384xf32>
    %416 = arith.addf %406, %415 : vector<8x384xf32>
    %c40_i32 = arith.constant 40 : i32
    %417 = vector.broadcast %c40_i32 : i32 to vector<8x128xi32>
    %418 = arith.cmpi eq, %15, %417 : vector<8x128xi32>
    %cst_138 = arith.constant 0.000000e+00 : f32
    %419 = vector.broadcast %cst_138 : f32 to vector<8x128xf32>
    %420 = arith.select %418, %6, %419 : vector<8x128xi1>, vector<8x128xf32>
    %cst_139 = arith.constant dense<0.000000e+00> : vector<8xf32>
    %421 = vector.multi_reduction <add>, %420, %cst_139 [1] : vector<8x128xf32> to vector<8xf32>
    %422 = vector.shape_cast %421 : vector<8xf32> to vector<8x1xf32>
    %c0_140 = arith.constant 0 : index
    %c115 = arith.constant 115 : index
    %423 = vector.load %arg8[%c0_140, %c115] : memref<8x640xf32, #tpu.memory_space<vmem>>, vector<8x384xf32>
    %424 = vector.broadcast %422 : vector<8x1xf32> to vector<8x384xf32>
    %425 = arith.mulf %424, %423 : vector<8x384xf32>
    %426 = arith.addf %416, %425 : vector<8x384xf32>
    %c41_i32 = arith.constant 41 : i32
    %427 = vector.broadcast %c41_i32 : i32 to vector<8x128xi32>
    %428 = arith.cmpi eq, %15, %427 : vector<8x128xi32>
    %cst_141 = arith.constant 0.000000e+00 : f32
    %429 = vector.broadcast %cst_141 : f32 to vector<8x128xf32>
    %430 = arith.select %428, %6, %429 : vector<8x128xi1>, vector<8x128xf32>
    %cst_142 = arith.constant dense<0.000000e+00> : vector<8xf32>
    %431 = vector.multi_reduction <add>, %430, %cst_142 [1] : vector<8x128xf32> to vector<8xf32>
    %432 = vector.shape_cast %431 : vector<8xf32> to vector<8x1xf32>
    %c0_143 = arith.constant 0 : index
    %c116 = arith.constant 116 : index
    %433 = vector.load %arg8[%c0_143, %c116] : memref<8x640xf32, #tpu.memory_space<vmem>>, vector<8x384xf32>
    %434 = vector.broadcast %432 : vector<8x1xf32> to vector<8x384xf32>
    %435 = arith.mulf %434, %433 : vector<8x384xf32>
    %436 = arith.addf %426, %435 : vector<8x384xf32>
    %c42_i32 = arith.constant 42 : i32
    %437 = vector.broadcast %c42_i32 : i32 to vector<8x128xi32>
    %438 = arith.cmpi eq, %15, %437 : vector<8x128xi32>
    %cst_144 = arith.constant 0.000000e+00 : f32
    %439 = vector.broadcast %cst_144 : f32 to vector<8x128xf32>
    %440 = arith.select %438, %6, %439 : vector<8x128xi1>, vector<8x128xf32>
    %cst_145 = arith.constant dense<0.000000e+00> : vector<8xf32>
    %441 = vector.multi_reduction <add>, %440, %cst_145 [1] : vector<8x128xf32> to vector<8xf32>
    %442 = vector.shape_cast %441 : vector<8xf32> to vector<8x1xf32>
    %c0_146 = arith.constant 0 : index
    %c117 = arith.constant 117 : index
    %443 = vector.load %arg8[%c0_146, %c117] : memref<8x640xf32, #tpu.memory_space<vmem>>, vector<8x384xf32>
    %444 = vector.broadcast %442 : vector<8x1xf32> to vector<8x384xf32>
    %445 = arith.mulf %444, %443 : vector<8x384xf32>
    %446 = arith.addf %436, %445 : vector<8x384xf32>
    %c43_i32 = arith.constant 43 : i32
    %447 = vector.broadcast %c43_i32 : i32 to vector<8x128xi32>
    %448 = arith.cmpi eq, %15, %447 : vector<8x128xi32>
    %cst_147 = arith.constant 0.000000e+00 : f32
    %449 = vector.broadcast %cst_147 : f32 to vector<8x128xf32>
    %450 = arith.select %448, %6, %449 : vector<8x128xi1>, vector<8x128xf32>
    %cst_148 = arith.constant dense<0.000000e+00> : vector<8xf32>
    %451 = vector.multi_reduction <add>, %450, %cst_148 [1] : vector<8x128xf32> to vector<8xf32>
    %452 = vector.shape_cast %451 : vector<8xf32> to vector<8x1xf32>
    %c0_149 = arith.constant 0 : index
    %c118 = arith.constant 118 : index
    %453 = vector.load %arg8[%c0_149, %c118] : memref<8x640xf32, #tpu.memory_space<vmem>>, vector<8x384xf32>
    %454 = vector.broadcast %452 : vector<8x1xf32> to vector<8x384xf32>
    %455 = arith.mulf %454, %453 : vector<8x384xf32>
    %456 = arith.addf %446, %455 : vector<8x384xf32>
    %c44_i32 = arith.constant 44 : i32
    %457 = vector.broadcast %c44_i32 : i32 to vector<8x128xi32>
    %458 = arith.cmpi eq, %15, %457 : vector<8x128xi32>
    %cst_150 = arith.constant 0.000000e+00 : f32
    %459 = vector.broadcast %cst_150 : f32 to vector<8x128xf32>
    %460 = arith.select %458, %6, %459 : vector<8x128xi1>, vector<8x128xf32>
    %cst_151 = arith.constant dense<0.000000e+00> : vector<8xf32>
    %461 = vector.multi_reduction <add>, %460, %cst_151 [1] : vector<8x128xf32> to vector<8xf32>
    %462 = vector.shape_cast %461 : vector<8xf32> to vector<8x1xf32>
    %c0_152 = arith.constant 0 : index
    %c119 = arith.constant 119 : index
    %463 = vector.load %arg8[%c0_152, %c119] : memref<8x640xf32, #tpu.memory_space<vmem>>, vector<8x384xf32>
    %464 = vector.broadcast %462 : vector<8x1xf32> to vector<8x384xf32>
    %465 = arith.mulf %464, %463 : vector<8x384xf32>
    %466 = arith.addf %456, %465 : vector<8x384xf32>
    %c45_i32 = arith.constant 45 : i32
    %467 = vector.broadcast %c45_i32 : i32 to vector<8x128xi32>
    %468 = arith.cmpi eq, %15, %467 : vector<8x128xi32>
    %cst_153 = arith.constant 0.000000e+00 : f32
    %469 = vector.broadcast %cst_153 : f32 to vector<8x128xf32>
    %470 = arith.select %468, %6, %469 : vector<8x128xi1>, vector<8x128xf32>
    %cst_154 = arith.constant dense<0.000000e+00> : vector<8xf32>
    %471 = vector.multi_reduction <add>, %470, %cst_154 [1] : vector<8x128xf32> to vector<8xf32>
    %472 = vector.shape_cast %471 : vector<8xf32> to vector<8x1xf32>
    %c0_155 = arith.constant 0 : index
    %c120 = arith.constant 120 : index
    %473 = vector.load %arg8[%c0_155, %c120] : memref<8x640xf32, #tpu.memory_space<vmem>>, vector<8x384xf32>
    %474 = vector.broadcast %472 : vector<8x1xf32> to vector<8x384xf32>
    %475 = arith.mulf %474, %473 : vector<8x384xf32>
    %476 = arith.addf %466, %475 : vector<8x384xf32>
    %c46_i32 = arith.constant 46 : i32
    %477 = vector.broadcast %c46_i32 : i32 to vector<8x128xi32>
    %478 = arith.cmpi eq, %15, %477 : vector<8x128xi32>
    %cst_156 = arith.constant 0.000000e+00 : f32
    %479 = vector.broadcast %cst_156 : f32 to vector<8x128xf32>
    %480 = arith.select %478, %6, %479 : vector<8x128xi1>, vector<8x128xf32>
    %cst_157 = arith.constant dense<0.000000e+00> : vector<8xf32>
    %481 = vector.multi_reduction <add>, %480, %cst_157 [1] : vector<8x128xf32> to vector<8xf32>
    %482 = vector.shape_cast %481 : vector<8xf32> to vector<8x1xf32>
    %c0_158 = arith.constant 0 : index
    %c121 = arith.constant 121 : index
    %483 = vector.load %arg8[%c0_158, %c121] : memref<8x640xf32, #tpu.memory_space<vmem>>, vector<8x384xf32>
    %484 = vector.broadcast %482 : vector<8x1xf32> to vector<8x384xf32>
    %485 = arith.mulf %484, %483 : vector<8x384xf32>
    %486 = arith.addf %476, %485 : vector<8x384xf32>
    %c47_i32 = arith.constant 47 : i32
    %487 = vector.broadcast %c47_i32 : i32 to vector<8x128xi32>
    %488 = arith.cmpi eq, %15, %487 : vector<8x128xi32>
    %cst_159 = arith.constant 0.000000e+00 : f32
    %489 = vector.broadcast %cst_159 : f32 to vector<8x128xf32>
    %490 = arith.select %488, %6, %489 : vector<8x128xi1>, vector<8x128xf32>
    %cst_160 = arith.constant dense<0.000000e+00> : vector<8xf32>
    %491 = vector.multi_reduction <add>, %490, %cst_160 [1] : vector<8x128xf32> to vector<8xf32>
    %492 = vector.shape_cast %491 : vector<8xf32> to vector<8x1xf32>
    %c0_161 = arith.constant 0 : index
    %c122 = arith.constant 122 : index
    %493 = vector.load %arg8[%c0_161, %c122] : memref<8x640xf32, #tpu.memory_space<vmem>>, vector<8x384xf32>
    %494 = vector.broadcast %492 : vector<8x1xf32> to vector<8x384xf32>
    %495 = arith.mulf %494, %493 : vector<8x384xf32>
    %496 = arith.addf %486, %495 : vector<8x384xf32>
    %c48_i32 = arith.constant 48 : i32
    %497 = vector.broadcast %c48_i32 : i32 to vector<8x128xi32>
    %498 = arith.cmpi eq, %15, %497 : vector<8x128xi32>
    %cst_162 = arith.constant 0.000000e+00 : f32
    %499 = vector.broadcast %cst_162 : f32 to vector<8x128xf32>
    %500 = arith.select %498, %6, %499 : vector<8x128xi1>, vector<8x128xf32>
    %cst_163 = arith.constant dense<0.000000e+00> : vector<8xf32>
    %501 = vector.multi_reduction <add>, %500, %cst_163 [1] : vector<8x128xf32> to vector<8xf32>
    %502 = vector.shape_cast %501 : vector<8xf32> to vector<8x1xf32>
    %c0_164 = arith.constant 0 : index
    %c138 = arith.constant 138 : index
    %503 = vector.load %arg8[%c0_164, %c138] : memref<8x640xf32, #tpu.memory_space<vmem>>, vector<8x384xf32>
    %504 = vector.broadcast %502 : vector<8x1xf32> to vector<8x384xf32>
    %505 = arith.mulf %504, %503 : vector<8x384xf32>
    %506 = arith.addf %496, %505 : vector<8x384xf32>
    %c49_i32 = arith.constant 49 : i32
    %507 = vector.broadcast %c49_i32 : i32 to vector<8x128xi32>
    %508 = arith.cmpi eq, %15, %507 : vector<8x128xi32>
    %cst_165 = arith.constant 0.000000e+00 : f32
    %509 = vector.broadcast %cst_165 : f32 to vector<8x128xf32>
    %510 = arith.select %508, %6, %509 : vector<8x128xi1>, vector<8x128xf32>
    %cst_166 = arith.constant dense<0.000000e+00> : vector<8xf32>
    %511 = vector.multi_reduction <add>, %510, %cst_166 [1] : vector<8x128xf32> to vector<8xf32>
    %512 = vector.shape_cast %511 : vector<8xf32> to vector<8x1xf32>
    %c0_167 = arith.constant 0 : index
    %c139 = arith.constant 139 : index
    %513 = vector.load %arg8[%c0_167, %c139] : memref<8x640xf32, #tpu.memory_space<vmem>>, vector<8x384xf32>
    %514 = vector.broadcast %512 : vector<8x1xf32> to vector<8x384xf32>
    %515 = arith.mulf %514, %513 : vector<8x384xf32>
    %516 = arith.addf %506, %515 : vector<8x384xf32>
    %c50_i32 = arith.constant 50 : i32
    %517 = vector.broadcast %c50_i32 : i32 to vector<8x128xi32>
    %518 = arith.cmpi eq, %15, %517 : vector<8x128xi32>
    %cst_168 = arith.constant 0.000000e+00 : f32
    %519 = vector.broadcast %cst_168 : f32 to vector<8x128xf32>
    %520 = arith.select %518, %6, %519 : vector<8x128xi1>, vector<8x128xf32>
    %cst_169 = arith.constant dense<0.000000e+00> : vector<8xf32>
    %521 = vector.multi_reduction <add>, %520, %cst_169 [1] : vector<8x128xf32> to vector<8xf32>
    %522 = vector.shape_cast %521 : vector<8xf32> to vector<8x1xf32>
    %c0_170 = arith.constant 0 : index
    %c140 = arith.constant 140 : index
    %523 = vector.load %arg8[%c0_170, %c140] : memref<8x640xf32, #tpu.memory_space<vmem>>, vector<8x384xf32>
    %524 = vector.broadcast %522 : vector<8x1xf32> to vector<8x384xf32>
    %525 = arith.mulf %524, %523 : vector<8x384xf32>
    %526 = arith.addf %516, %525 : vector<8x384xf32>
    %c51_i32 = arith.constant 51 : i32
    %527 = vector.broadcast %c51_i32 : i32 to vector<8x128xi32>
    %528 = arith.cmpi eq, %15, %527 : vector<8x128xi32>
    %cst_171 = arith.constant 0.000000e+00 : f32
    %529 = vector.broadcast %cst_171 : f32 to vector<8x128xf32>
    %530 = arith.select %528, %6, %529 : vector<8x128xi1>, vector<8x128xf32>
    %cst_172 = arith.constant dense<0.000000e+00> : vector<8xf32>
    %531 = vector.multi_reduction <add>, %530, %cst_172 [1] : vector<8x128xf32> to vector<8xf32>
    %532 = vector.shape_cast %531 : vector<8xf32> to vector<8x1xf32>
    %c0_173 = arith.constant 0 : index
    %c141 = arith.constant 141 : index
    %533 = vector.load %arg8[%c0_173, %c141] : memref<8x640xf32, #tpu.memory_space<vmem>>, vector<8x384xf32>
    %534 = vector.broadcast %532 : vector<8x1xf32> to vector<8x384xf32>
    %535 = arith.mulf %534, %533 : vector<8x384xf32>
    %536 = arith.addf %526, %535 : vector<8x384xf32>
    %c52_i32 = arith.constant 52 : i32
    %537 = vector.broadcast %c52_i32 : i32 to vector<8x128xi32>
    %538 = arith.cmpi eq, %15, %537 : vector<8x128xi32>
    %cst_174 = arith.constant 0.000000e+00 : f32
    %539 = vector.broadcast %cst_174 : f32 to vector<8x128xf32>
    %540 = arith.select %538, %6, %539 : vector<8x128xi1>, vector<8x128xf32>
    %cst_175 = arith.constant dense<0.000000e+00> : vector<8xf32>
    %541 = vector.multi_reduction <add>, %540, %cst_175 [1] : vector<8x128xf32> to vector<8xf32>
    %542 = vector.shape_cast %541 : vector<8xf32> to vector<8x1xf32>
    %c0_176 = arith.constant 0 : index
    %c142 = arith.constant 142 : index
    %543 = vector.load %arg8[%c0_176, %c142] : memref<8x640xf32, #tpu.memory_space<vmem>>, vector<8x384xf32>
    %544 = vector.broadcast %542 : vector<8x1xf32> to vector<8x384xf32>
    %545 = arith.mulf %544, %543 : vector<8x384xf32>
    %546 = arith.addf %536, %545 : vector<8x384xf32>
    %c53_i32 = arith.constant 53 : i32
    %547 = vector.broadcast %c53_i32 : i32 to vector<8x128xi32>
    %548 = arith.cmpi eq, %15, %547 : vector<8x128xi32>
    %cst_177 = arith.constant 0.000000e+00 : f32
    %549 = vector.broadcast %cst_177 : f32 to vector<8x128xf32>
    %550 = arith.select %548, %6, %549 : vector<8x128xi1>, vector<8x128xf32>
    %cst_178 = arith.constant dense<0.000000e+00> : vector<8xf32>
    %551 = vector.multi_reduction <add>, %550, %cst_178 [1] : vector<8x128xf32> to vector<8xf32>
    %552 = vector.shape_cast %551 : vector<8xf32> to vector<8x1xf32>
    %c0_179 = arith.constant 0 : index
    %c143 = arith.constant 143 : index
    %553 = vector.load %arg8[%c0_179, %c143] : memref<8x640xf32, #tpu.memory_space<vmem>>, vector<8x384xf32>
    %554 = vector.broadcast %552 : vector<8x1xf32> to vector<8x384xf32>
    %555 = arith.mulf %554, %553 : vector<8x384xf32>
    %556 = arith.addf %546, %555 : vector<8x384xf32>
    %c54_i32 = arith.constant 54 : i32
    %557 = vector.broadcast %c54_i32 : i32 to vector<8x128xi32>
    %558 = arith.cmpi eq, %15, %557 : vector<8x128xi32>
    %cst_180 = arith.constant 0.000000e+00 : f32
    %559 = vector.broadcast %cst_180 : f32 to vector<8x128xf32>
    %560 = arith.select %558, %6, %559 : vector<8x128xi1>, vector<8x128xf32>
    %cst_181 = arith.constant dense<0.000000e+00> : vector<8xf32>
    %561 = vector.multi_reduction <add>, %560, %cst_181 [1] : vector<8x128xf32> to vector<8xf32>
    %562 = vector.shape_cast %561 : vector<8xf32> to vector<8x1xf32>
    %c0_182 = arith.constant 0 : index
    %c144 = arith.constant 144 : index
    %563 = vector.load %arg8[%c0_182, %c144] : memref<8x640xf32, #tpu.memory_space<vmem>>, vector<8x384xf32>
    %564 = vector.broadcast %562 : vector<8x1xf32> to vector<8x384xf32>
    %565 = arith.mulf %564, %563 : vector<8x384xf32>
    %566 = arith.addf %556, %565 : vector<8x384xf32>
    %c55_i32 = arith.constant 55 : i32
    %567 = vector.broadcast %c55_i32 : i32 to vector<8x128xi32>
    %568 = arith.cmpi eq, %15, %567 : vector<8x128xi32>
    %cst_183 = arith.constant 0.000000e+00 : f32
    %569 = vector.broadcast %cst_183 : f32 to vector<8x128xf32>
    %570 = arith.select %568, %6, %569 : vector<8x128xi1>, vector<8x128xf32>
    %cst_184 = arith.constant dense<0.000000e+00> : vector<8xf32>
    %571 = vector.multi_reduction <add>, %570, %cst_184 [1] : vector<8x128xf32> to vector<8xf32>
    %572 = vector.shape_cast %571 : vector<8xf32> to vector<8x1xf32>
    %c0_185 = arith.constant 0 : index
    %c145 = arith.constant 145 : index
    %573 = vector.load %arg8[%c0_185, %c145] : memref<8x640xf32, #tpu.memory_space<vmem>>, vector<8x384xf32>
    %574 = vector.broadcast %572 : vector<8x1xf32> to vector<8x384xf32>
    %575 = arith.mulf %574, %573 : vector<8x384xf32>
    %576 = arith.addf %566, %575 : vector<8x384xf32>
    %c56_i32 = arith.constant 56 : i32
    %577 = vector.broadcast %c56_i32 : i32 to vector<8x128xi32>
    %578 = arith.cmpi eq, %15, %577 : vector<8x128xi32>
    %cst_186 = arith.constant 0.000000e+00 : f32
    %579 = vector.broadcast %cst_186 : f32 to vector<8x128xf32>
    %580 = arith.select %578, %6, %579 : vector<8x128xi1>, vector<8x128xf32>
    %cst_187 = arith.constant dense<0.000000e+00> : vector<8xf32>
    %581 = vector.multi_reduction <add>, %580, %cst_187 [1] : vector<8x128xf32> to vector<8xf32>
    %582 = vector.shape_cast %581 : vector<8xf32> to vector<8x1xf32>
    %c0_188 = arith.constant 0 : index
    %c161 = arith.constant 161 : index
    %583 = vector.load %arg8[%c0_188, %c161] : memref<8x640xf32, #tpu.memory_space<vmem>>, vector<8x384xf32>
    %584 = vector.broadcast %582 : vector<8x1xf32> to vector<8x384xf32>
    %585 = arith.mulf %584, %583 : vector<8x384xf32>
    %586 = arith.addf %576, %585 : vector<8x384xf32>
    %c57_i32 = arith.constant 57 : i32
    %587 = vector.broadcast %c57_i32 : i32 to vector<8x128xi32>
    %588 = arith.cmpi eq, %15, %587 : vector<8x128xi32>
    %cst_189 = arith.constant 0.000000e+00 : f32
    %589 = vector.broadcast %cst_189 : f32 to vector<8x128xf32>
    %590 = arith.select %588, %6, %589 : vector<8x128xi1>, vector<8x128xf32>
    %cst_190 = arith.constant dense<0.000000e+00> : vector<8xf32>
    %591 = vector.multi_reduction <add>, %590, %cst_190 [1] : vector<8x128xf32> to vector<8xf32>
    %592 = vector.shape_cast %591 : vector<8xf32> to vector<8x1xf32>
    %c0_191 = arith.constant 0 : index
    %c162 = arith.constant 162 : index
    %593 = vector.load %arg8[%c0_191, %c162] : memref<8x640xf32, #tpu.memory_space<vmem>>, vector<8x384xf32>
    %594 = vector.broadcast %592 : vector<8x1xf32> to vector<8x384xf32>
    %595 = arith.mulf %594, %593 : vector<8x384xf32>
    %596 = arith.addf %586, %595 : vector<8x384xf32>
    %c58_i32 = arith.constant 58 : i32
    %597 = vector.broadcast %c58_i32 : i32 to vector<8x128xi32>
    %598 = arith.cmpi eq, %15, %597 : vector<8x128xi32>
    %cst_192 = arith.constant 0.000000e+00 : f32
    %599 = vector.broadcast %cst_192 : f32 to vector<8x128xf32>
    %600 = arith.select %598, %6, %599 : vector<8x128xi1>, vector<8x128xf32>
    %cst_193 = arith.constant dense<0.000000e+00> : vector<8xf32>
    %601 = vector.multi_reduction <add>, %600, %cst_193 [1] : vector<8x128xf32> to vector<8xf32>
    %602 = vector.shape_cast %601 : vector<8xf32> to vector<8x1xf32>
    %c0_194 = arith.constant 0 : index
    %c163 = arith.constant 163 : index
    %603 = vector.load %arg8[%c0_194, %c163] : memref<8x640xf32, #tpu.memory_space<vmem>>, vector<8x384xf32>
    %604 = vector.broadcast %602 : vector<8x1xf32> to vector<8x384xf32>
    %605 = arith.mulf %604, %603 : vector<8x384xf32>
    %606 = arith.addf %596, %605 : vector<8x384xf32>
    %c59_i32 = arith.constant 59 : i32
    %607 = vector.broadcast %c59_i32 : i32 to vector<8x128xi32>
    %608 = arith.cmpi eq, %15, %607 : vector<8x128xi32>
    %cst_195 = arith.constant 0.000000e+00 : f32
    %609 = vector.broadcast %cst_195 : f32 to vector<8x128xf32>
    %610 = arith.select %608, %6, %609 : vector<8x128xi1>, vector<8x128xf32>
    %cst_196 = arith.constant dense<0.000000e+00> : vector<8xf32>
    %611 = vector.multi_reduction <add>, %610, %cst_196 [1] : vector<8x128xf32> to vector<8xf32>
    %612 = vector.shape_cast %611 : vector<8xf32> to vector<8x1xf32>
    %c0_197 = arith.constant 0 : index
    %c164 = arith.constant 164 : index
    %613 = vector.load %arg8[%c0_197, %c164] : memref<8x640xf32, #tpu.memory_space<vmem>>, vector<8x384xf32>
    %614 = vector.broadcast %612 : vector<8x1xf32> to vector<8x384xf32>
    %615 = arith.mulf %614, %613 : vector<8x384xf32>
    %616 = arith.addf %606, %615 : vector<8x384xf32>
    %c60_i32 = arith.constant 60 : i32
    %617 = vector.broadcast %c60_i32 : i32 to vector<8x128xi32>
    %618 = arith.cmpi eq, %15, %617 : vector<8x128xi32>
    %cst_198 = arith.constant 0.000000e+00 : f32
    %619 = vector.broadcast %cst_198 : f32 to vector<8x128xf32>
    %620 = arith.select %618, %6, %619 : vector<8x128xi1>, vector<8x128xf32>
    %cst_199 = arith.constant dense<0.000000e+00> : vector<8xf32>
    %621 = vector.multi_reduction <add>, %620, %cst_199 [1] : vector<8x128xf32> to vector<8xf32>
    %622 = vector.shape_cast %621 : vector<8xf32> to vector<8x1xf32>
    %c0_200 = arith.constant 0 : index
    %c165 = arith.constant 165 : index
    %623 = vector.load %arg8[%c0_200, %c165] : memref<8x640xf32, #tpu.memory_space<vmem>>, vector<8x384xf32>
    %624 = vector.broadcast %622 : vector<8x1xf32> to vector<8x384xf32>
    %625 = arith.mulf %624, %623 : vector<8x384xf32>
    %626 = arith.addf %616, %625 : vector<8x384xf32>
    %c61_i32 = arith.constant 61 : i32
    %627 = vector.broadcast %c61_i32 : i32 to vector<8x128xi32>
    %628 = arith.cmpi eq, %15, %627 : vector<8x128xi32>
    %cst_201 = arith.constant 0.000000e+00 : f32
    %629 = vector.broadcast %cst_201 : f32 to vector<8x128xf32>
    %630 = arith.select %628, %6, %629 : vector<8x128xi1>, vector<8x128xf32>
    %cst_202 = arith.constant dense<0.000000e+00> : vector<8xf32>
    %631 = vector.multi_reduction <add>, %630, %cst_202 [1] : vector<8x128xf32> to vector<8xf32>
    %632 = vector.shape_cast %631 : vector<8xf32> to vector<8x1xf32>
    %c0_203 = arith.constant 0 : index
    %c166 = arith.constant 166 : index
    %633 = vector.load %arg8[%c0_203, %c166] : memref<8x640xf32, #tpu.memory_space<vmem>>, vector<8x384xf32>
    %634 = vector.broadcast %632 : vector<8x1xf32> to vector<8x384xf32>
    %635 = arith.mulf %634, %633 : vector<8x384xf32>
    %636 = arith.addf %626, %635 : vector<8x384xf32>
    %c62_i32 = arith.constant 62 : i32
    %637 = vector.broadcast %c62_i32 : i32 to vector<8x128xi32>
    %638 = arith.cmpi eq, %15, %637 : vector<8x128xi32>
    %cst_204 = arith.constant 0.000000e+00 : f32
    %639 = vector.broadcast %cst_204 : f32 to vector<8x128xf32>
    %640 = arith.select %638, %6, %639 : vector<8x128xi1>, vector<8x128xf32>
    %cst_205 = arith.constant dense<0.000000e+00> : vector<8xf32>
    %641 = vector.multi_reduction <add>, %640, %cst_205 [1] : vector<8x128xf32> to vector<8xf32>
    %642 = vector.shape_cast %641 : vector<8xf32> to vector<8x1xf32>
    %c0_206 = arith.constant 0 : index
    %c167 = arith.constant 167 : index
    %643 = vector.load %arg8[%c0_206, %c167] : memref<8x640xf32, #tpu.memory_space<vmem>>, vector<8x384xf32>
    %644 = vector.broadcast %642 : vector<8x1xf32> to vector<8x384xf32>
    %645 = arith.mulf %644, %643 : vector<8x384xf32>
    %646 = arith.addf %636, %645 : vector<8x384xf32>
    %c63_i32 = arith.constant 63 : i32
    %647 = vector.broadcast %c63_i32 : i32 to vector<8x128xi32>
    %648 = arith.cmpi eq, %15, %647 : vector<8x128xi32>
    %cst_207 = arith.constant 0.000000e+00 : f32
    %649 = vector.broadcast %cst_207 : f32 to vector<8x128xf32>
    %650 = arith.select %648, %6, %649 : vector<8x128xi1>, vector<8x128xf32>
    %cst_208 = arith.constant dense<0.000000e+00> : vector<8xf32>
    %651 = vector.multi_reduction <add>, %650, %cst_208 [1] : vector<8x128xf32> to vector<8xf32>
    %652 = vector.shape_cast %651 : vector<8xf32> to vector<8x1xf32>
    %c0_209 = arith.constant 0 : index
    %c168 = arith.constant 168 : index
    %653 = vector.load %arg8[%c0_209, %c168] : memref<8x640xf32, #tpu.memory_space<vmem>>, vector<8x384xf32>
    %654 = vector.broadcast %652 : vector<8x1xf32> to vector<8x384xf32>
    %655 = arith.mulf %654, %653 : vector<8x384xf32>
    %656 = arith.addf %646, %655 : vector<8x384xf32>
    %c0_210 = arith.constant 0 : index
    %c0_211 = arith.constant 0 : index
    %c0_212 = arith.constant 0 : index
    %657 = vector.load %arg7[%c0_210, %c0_211, %c0_212] : memref<1x8x384xf32, #tpu.memory_space<vmem>>, vector<1x8x384xf32>
    %658 = vector.shape_cast %657 : vector<1x8x384xf32> to vector<8x384xf32>
    %659 = vector.shape_cast %656 : vector<8x384xf32> to vector<1x8x384xf32>
    tpu.vector_store %arg7[%c0_210, %c0_211, %c0_212], %659 {strides = array<i32>} : memref<1x8x384xf32, #tpu.memory_space<vmem>>, vector<1x8x384xf32>,
    return
  }
  func.func @transform_0(%arg0: i32) -> (i32, i32) {
    %c0_i32 = arith.constant 0 : i32
    %c0_i32_0 = arith.constant 0 : i32
    %c0_i32_1 = arith.constant 0 : i32
    return %c0_i32, %c0_i32_0 : i32, i32
  }
  func.func @transform_1(%arg0: i32) -> (i32, i32) {
    %c0_i32 = arith.constant 0 : i32
    %c0_i32_0 = arith.constant 0 : i32
    %c0_i32_1 = arith.constant 0 : i32
    return %c0_i32, %c0_i32_0 : i32, i32
  }
  func.func @transform_2(%arg0: i32) -> (i32, i32) {
    %c0_i32 = arith.constant 0 : i32
    %c0_i32_0 = arith.constant 0 : i32
    %c0_i32_1 = arith.constant 0 : i32
    return %c0_i32, %c0_i32_0 : i32, i32
  }
  func.func @transform_3(%arg0: i32) -> (i32, i32) {
    %c0_i32 = arith.constant 0 : i32
    %c0_i32_0 = arith.constant 0 : i32
    %c0_i32_1 = arith.constant 0 : i32
    return %c0_i32, %c0_i32_0 : i32, i32
  }
  func.func @transform_4(%arg0: i32) -> (i32, i32, i32) {
    %c0_i32 = arith.constant 0 : i32
    %c0_i32_0 = arith.constant 0 : i32
    %c0_i32_1 = arith.constant 0 : i32
    return %arg0, %c0_i32, %c0_i32_0 : i32, i32, i32
  }
  func.func @transform_5(%arg0: i32) -> (i32, i32, i32) {
    %c0_i32 = arith.constant 0 : i32
    %c0_i32_0 = arith.constant 0 : i32
    %c0_i32_1 = arith.constant 0 : i32
    return %arg0, %c0_i32, %c0_i32_0 : i32, i32, i32
  }
  func.func @transform_6(%arg0: i32) -> (i32, i32, i32) {
    %c0_i32 = arith.constant 0 : i32
    %c0_i32_0 = arith.constant 0 : i32
    %c0_i32_1 = arith.constant 0 : i32
    return %arg0, %c0_i32, %c0_i32_0 : i32, i32, i32
  }
}

</mosaic_0001>

<bundles_post_ra>
// kernel: mul.18
= control target key start
LH: loop header
LB: loop body
LE: loop exit
PB: predicated region body
PF: predicated region fallthrough
CT: control target
= control target key end

     0   :  { %vm83_vm0 = vcmask 1041409   ;;  %vm87_vm1 = vcmask 1042434   ;;  %vm91_vm2 = vcmask 1043459   ;;  %s340_s9 = smov 27   ;;  %s341_s10 = smov 30   ;;  %vm93_vm3 = vcmask 23552   ;;  %s447_s0 = inlined_call_operand.vmem [shape: f32[4,4,3,3], index: 0, kind: input, shape index: {}]   ;;  %s448_s1 = inlined_call_operand.vmem [shape: f32[4,36], index: 1, kind: output, shape index: {}]  }
   0x1   :  { %v313_v0 = vld [vmem:[%s447_s0 + $0x3c] sm:$0xf]  ;;  %v317_v1 = vld [vmem:[%s447_s0 + $0x2c] sm:$0xf]  ;;  %v314_v4 = vld [vmem:[%s447_s0 + $0x38] sm:$0xf] }
   0x2   :  { %v321_v2 = vld [vmem:[%s447_s0 + $0x1c] sm:$0xf]  ;;  %8 = vst [vmem:[#allocation1 + $0x78] sm:$0xf] %v313_v0  ;;  %28 = vst [vmem:[#allocation1 + $0x58] sm:$0xf] %v317_v1 }
   0x3   :  { %48 = vst [vmem:[#allocation1 + $0x38] sm:$0xf] %v321_v2  ;;  %v325_v3 = vld [vmem:[%s447_s0 + $0xc] sm:$0xf]  ;;  %v318_v5 = vld [vmem:[%s447_s0 + $0x28] sm:$0xf] }
   0x4   :  { %68 = vst [vmem:[#allocation1 + $0x18] sm:$0xf] %v325_v3  ;;  %13 = vst [vmem:[#allocation1 + $0x70] sm:$0xf] %v314_v4  ;;  %v322_v6 = vld [vmem:[%s447_s0 + $0x18] sm:$0xf] }
   0x5   :  { %33 = vst [vmem:[#allocation1 + $0x50] sm:$0xf] %v318_v5  ;;  %v326_v7 = vld [vmem:[%s447_s0 + $0x8] sm:$0xf]  ;;  %53 = vst [vmem:[#allocation1 + $0x30] sm:$0xf] %v322_v6 }
   0x6   :  { %73 = vst [vmem:[#allocation1 + $0x10] sm:$0xf] %v326_v7  ;;  %v315_v8 = vld [vmem:[%s447_s0 + $0x34] sm:$0xf]  ;;  %v319_v9 = vld [vmem:[%s447_s0 + $0x24] sm:$0xf] }
   0x7   :  { %18 = vst [vmem:[#allocation1 + $0x68] sm:$0xf] %v315_v8  ;;  %38 = vst [vmem:[#allocation1 + $0x48] sm:$0xf] %v319_v9  ;;  %v323_v10 = vld [vmem:[%s447_s0 + $0x14] sm:$0xf] }
   0x8   :  { %v327_v11 = vld [vmem:[%s447_s0 + $0x4] sm:$0xf]  ;;  %58 = vst [vmem:[#allocation1 + $0x28] sm:$0xf] %v323_v10  ;;  %v316_v12 = vld [vmem:[%s447_s0 + $0x30] sm:$0xf] }
   0x9   :  { %77 = vst [vmem:[#allocation1 + $0x8] sm:$0xf] %v327_v11  ;;  %v320_v13 = vld [vmem:[%s447_s0 + $0x20] sm:$0xf]  ;;  %v324_v14 = vld [vmem:[%s447_s0 + $0x10] sm:$0xf] }
   0xa   :  { %23 = vst [vmem:[#allocation1 + $0x60] sm:$0xf] %v316_v12  ;;  %43 = vst [vmem:[#allocation1 + $0x40] sm:$0xf] %v320_v13  ;;  %v78_v15 = vld [vmem:[%s447_s0] sm:$0xf] }
   0xb   :  { %63 = vst [vmem:[#allocation1 + $0x20] sm:$0xf] %v324_v14  ;;  %v98_v16 = vld [vmem:[#allocation1 + $0x39] sm:$0x2]   ;;  %79 = vst [vmem:[#allocation1] sm:$0xf] %v78_v15 }
   0xc   :  { %v102_v17 = vld [vmem:[#allocation1 + $0x58] sm:$0x4]   ;;  %v132_v20 = vld [vmem:[#allocation1 + $0x18] sm:$0x1]   ;;  %v114_v26 = vld [vmem:[#allocation1 + $0x19] sm:$0x1]  }
   0xd   :  { %v106_v18 = vld [vmem:[#allocation1 + $0x77] sm:$0x8]   ;;  %v134_v21 = vld [vmem:[#allocation1 + $0x37] sm:$0x2]   ;;  %v116_v29 = vld [vmem:[#allocation1 + $0x38] sm:$0x2]  }
   0xe   :  { %v96_v19 = vld [vmem:[#allocation1 + $0x1a] sm:$0x1]   ;;  %v136_v23 = vsel %vm83_vm0, %v134_v21, %v132_v20  ;;  %v138_v24 = vld [vmem:[#allocation1 + $0x56] sm:$0x4]   ;;  %v120_v30 = vld [vmem:[#allocation1 + $0x57] sm:$0x4]   ;;  %v118_v34 = vsel %vm83_vm0, %v116_v29, %v114_v26 }
   0xf   :  { %v100_v22 = vsel %vm83_vm0, %v98_v16, %v96_v19  ;;  %v142_v25 = vld [vmem:[#allocation1 + $0x75] sm:$0x8]   ;;  %v140_v28 = vsel %vm87_vm1, %v138_v24, %v136_v23  ;;  %v124_v31 = vld [vmem:[#allocation1 + $0x76] sm:$0x8]   ;;  %v150_v35 = vld [vmem:[#allocation1 + $0x12] sm:$0x1]   ;;  %v122_v38 = vsel %vm87_vm1, %v120_v30, %v118_v34 }
  0x10   :  { %v104_v27 = vsel %vm87_vm1, %v102_v17, %v100_v22  ;;  %v144_v33 = vsel %vm91_vm2, %v142_v25, %v140_v28  ;;  %v152_v36 = vld [vmem:[#allocation1 + $0x31] sm:$0x2]   ;;  %s339_s0 = smov 33   ;;  %v168_v41 = vld [vmem:[#allocation1 + $0x11] sm:$0x1]   ;;  %v126_v43 = vsel %vm91_vm2, %v124_v31, %v122_v38  ;;  %s342_s11 = smov 24  }
  0x11   :  { %v108_v32 = vsel %vm91_vm2, %v106_v18, %v104_v27  ;;  %v156_v37 = vld [vmem:[#allocation1 + $0x50] sm:$0x4]   ;;  %145 = vrot.lane.b32.xlu1 %v144_v33, %s340_s9  ;;  %v154_v39 = vsel %vm83_vm0, %v152_v36, %v150_v35  ;;  %v170_v42 = vld [vmem:[#allocation1 + $0x30] sm:$0x2]   ;;  %v186_v48 = vld [vmem:[#allocation1 + $0x10] sm:$0x1]  }
  0x12   :  { %109 = vrot.lane.b32.xlu0 %v108_v32, %s339_s0  ;;  %v160_v40 = vld [vmem:[#allocation1 + $0x6f] sm:$0x8]   ;;  %v158_v44 = vsel %vm87_vm1, %v156_v37, %v154_v39  ;;  %v172_v45 = vsel %vm83_vm0, %v170_v42, %v168_v41  ;;  %v174_v46 = vld [vmem:[#allocation1 + $0x4f] sm:$0x4]   ;;  %v188_v51 = vld [vmem:[#allocation1 + $0x2f] sm:$0x2]  }
  0x13   :  { %v178_v47 = vld [vmem:[#allocation1 + $0x6e] sm:$0x8]   ;;  %v162_v49 = vsel %vm91_vm2, %v160_v40, %v158_v44  ;;  %v176_v50 = vsel %vm87_vm1, %v174_v46, %v172_v45  ;;  %v192_v52 = vld [vmem:[#allocation1 + $0x4e] sm:$0x4]   ;;  %v190_v54 = vsel %vm83_vm0, %v188_v51, %v186_v48  ;;  %v204_v55 = vld [vmem:[#allocation1 + $0xa] sm:$0x1]  }
  0x14   :  { %v196_v53 = vld [vmem:[#allocation1 + $0x6d] sm:$0x8]   ;;  %v206_v56 = vld [vmem:[#allocation1 + $0x29] sm:$0x2]   ;;  %v194_v58 = vsel %vm87_vm1, %v192_v52, %v190_v54  ;;  %v222_v60 = vld [vmem:[#allocation1 + $0x9] sm:$0x1]   ;;  %v180_v62 = vsel %vm91_vm2, %v178_v47, %v176_v50 }
  0x15   :  { %v210_v57 = vld [vmem:[#allocation1 + $0x48] sm:$0x4]   ;;  %163 = vrot.lane.b32.xlu1 %v162_v49, %s342_s11  ;;  %v208_v59 = vsel %vm83_vm0, %v206_v56, %v204_v55  ;;  %v224_v61 = vld [vmem:[#allocation1 + $0x28] sm:$0x2]   ;;  %v198_v63 = vsel %vm91_vm2, %v196_v53, %v194_v58  ;;  %v240_v3 = vld [vmem:[#allocation1 + $0x8] sm:$0x1]  }
  0x16   :  { %127 = vrot.lane.b32.xlu0 %v126_v43, %s341_s10  ;;  %v214_v0 = vld [vmem:[#allocation1 + $0x67] sm:$0x8]   ;;  %v226_v1 = vsel %vm83_vm0, %v224_v61, %v222_v60  ;;  %v228_v2 = vld [vmem:[#allocation1 + $0x47] sm:$0x4]   ;;  %v212_v4 = vsel %vm87_vm1, %v210_v57, %v208_v59  ;;  %v242_v7 = vld [vmem:[#allocation1 + $0x27] sm:$0x2]  }
  0x17   :  { %v230_v5 = vsel %vm87_vm1, %v228_v2, %v226_v1  ;;  %v232_v6 = vld [vmem:[#allocation1 + $0x66] sm:$0x8]   ;;  %v246_v8 = vld [vmem:[#allocation1 + $0x46] sm:$0x4]   ;;  %v244_v9 = vsel %vm83_vm0, %v242_v7, %v240_v3  ;;  %v258_v10 = vld [vmem:[#allocation1 + $0x2] sm:$0x1]   ;;  %v216_v16 = vsel %vm91_vm2, %v214_v0, %v212_v4 }
  0x18   :  { %v260_v11 = vld [vmem:[#allocation1 + $0x21] sm:$0x2]   ;;  %s343_s12 = smov 21   ;;  %s344_s13 = smov 18   ;;  %v276_v14 = vld [vmem:[#allocation1 + $0x1] sm:$0x1]   ;;  %v234_v17 = vsel %vm91_vm2, %v232_v6, %v230_v5  ;;  %v248_v21 = vsel %vm87_vm1, %v246_v8, %v244_v9 }
  0x19   :  { %v264_v12 = vld [vmem:[#allocation1 + $0x40] sm:$0x4]   ;;  %199 = vrot.lane.b32.xlu1 %v198_v63, %s344_s13  ;;  %v262_v13 = vsel %vm83_vm0, %v260_v11, %v258_v10  ;;  %v278_v15 = vld [vmem:[#allocation1 + $0x20] sm:$0x2]   ;;  %v250_v18 = vld [vmem:[#allocation1 + $0x65] sm:$0x8]  }
  0x1a   :  { %181 = vrot.lane.b32.xlu0 %v180_v62, %s343_s12  ;;  %v268_v19 = vld [vmem:[#allocation1 + $0x5f] sm:$0x8]   ;;  %v80_v20 = vld [vmem:[#allocation1] sm:$0x1]   ;;  %v266_v22 = vsel %vm87_vm1, %v264_v12, %v262_v13  ;;  %v280_v26 = vsel %vm83_vm0, %v278_v15, %v276_v14  ;;  %v282_v27 = vld [vmem:[#allocation1 + $0x3f] sm:$0x4]   ;;  %v252_v30 = vsel %vm91_vm2, %v250_v18, %v248_v21 }
  0x1b   :  { %v82_v23 = vld [vmem:[#allocation1 + $0x1f] sm:$0x2]   ;;  %s345_s14 = smov 15   ;;  %s346_s15 = smov 12   ;;  %v270_v31 = vsel %vm91_vm2, %v268_v19, %v266_v22  ;;  %v284_v33 = vsel %vm87_vm1, %v282_v27, %v280_v26  ;;  %v286_v34 = vld [vmem:[#allocation1 + $0x5e] sm:$0x8]  }
  0x1c   :  { %v86_v24 = vld [vmem:[#allocation1 + $0x3e] sm:$0x4]   ;;  %v84_v28 = vsel %vm83_vm0, %v82_v23, %v80_v20  ;;  %s347_s16 = smov 9   ;;  %s348_s17 = smov 6   ;;  %v288_v35 = vsel %vm91_vm2, %v286_v34, %v284_v33  ;;  %vm111_vm4 = vcmask 294152   ;;  %vm129_vm5 = vcmask 269552  }
  0x1d   :  { %v90_v25 = vld [vmem:[#allocation1 + $0x5d] sm:$0x8]   ;;  %235 = vrot.lane.b32.xlu1 %v234_v17, %s346_s15  ;;  %v88_v29 = vsel %vm87_vm1, %v86_v24, %v84_v28  ;;  %s349_s18 = smov 3   ;;  %vm147_vm6 = vcmask 244952   ;;  %vm165_vm7 = vcmask 220352   ;;  %vm183_vm8 = vcmask 195752  }
  0x1e   :  { %217 = vrot.lane.b32.xlu0 %v216_v16, %s345_s14  ;;  %v92_v32 = vsel %vm91_vm2, %v90_v25, %v88_v29  ;;  %vm201_vm9 = vcmask 171152   ;;  %vm219_vm10 = vcmask 146552   ;;  %vm237_vm11 = vcmask 121952  }
  0x1f   :  { %94 = vst.msk [vmem:[#allocation0] sm:$0xf] %vm93_vm3, %v92_v32   ;;  %vm255_vm12 = vcmask 97352   ;;  %vm273_vm13 = vcmask 72752   ;;  %vm291_vm14 = vcmask 48152  }
  0x21   :  { %271 = vrot.lane.b32.xlu1 %v270_v31, %s348_s17 }
  0x22   :  { %253 = vrot.lane.b32.xlu0 %v252_v30, %s347_s16 }
  0x26   :  { %289 = vrot.lane.b32.xlu0 %v288_v35, %s349_s18 }
  0x83   :  { %v146_v37 = vpop.permute.xlu1 %145  }
  0x84   :  { %v110_v36 = vpop.permute.xlu0 %109  }
  0x85   :  { %112 = vst.msk [vmem:[#allocation0] sm:$0xf] %vm111_vm4, %v110_v36  }
  0x87   :  { %v164_v39 = vpop.permute.xlu1 %163  }
  0x88   :  { %v128_v38 = vpop.permute.xlu0 %127  }
  0x89   :  { %130 = vst.msk [vmem:[#allocation0] sm:$0xf] %vm129_vm5, %v128_v38  }
  0x8a   :  { %148 = vst.msk [vmem:[#allocation0] sm:$0xf] %vm147_vm6, %v146_v37  }
  0x8b   :  { %166 = vst.msk [vmem:[#allocation0] sm:$0xf] %vm165_vm7, %v164_v39   ;;  %v200_v41 = vpop.permute.xlu1 %199  }
  0x8c   :  { %v182_v40 = vpop.permute.xlu0 %181  }
  0x8d   :  { %184 = vst.msk [vmem:[#allocation0] sm:$0xf] %vm183_vm8, %v182_v40  }
  0x8e   :  { %202 = vst.msk [vmem:[#allocation0] sm:$0xf] %vm201_vm9, %v200_v41  }
  0x8f   :  { %v236_v43 = vpop.permute.xlu1 %235  }
  0x90   :  { %v218_v42 = vpop.permute.xlu0 %217  }
  0x91   :  { %220 = vst.msk [vmem:[#allocation0] sm:$0xf] %vm219_vm10, %v218_v42  }
  0x92   :  { %238 = vst.msk [vmem:[#allocation0] sm:$0xf] %vm237_vm11, %v236_v43  }
  0x93   :  { %v272_v45 = vpop.permute.xlu1 %271  }
  0x94   :  { %v254_v44 = vpop.permute.xlu0 %253  }
  0x95   :  { %256 = vst.msk [vmem:[#allocation0] sm:$0xf] %vm255_vm12, %v254_v44  }
  0x96   :  { %274 = vst.msk [vmem:[#allocation0] sm:$0xf] %vm273_vm13, %v272_v45  }
  0x98   :  { %v290_v46 = vpop.permute.xlu0 %289  }
  0x99   :  { %292 = vst.msk [vmem:[#allocation0] sm:$0xf] %vm291_vm14, %v290_v46  }
  0xa0   :  { %v296_v47 = vld [vmem:[#allocation0] sm:$0xf] }
  0xa1   :  { %298 = vst [vmem:[%s448_s1] sm:$0xf] %v296_v47 }

// kernel: tile.13
= control target key start
LH: loop header
LB: loop body
LE: loop exit
PB: predicated region body
PF: predicated region fallthrough
CT: control target
= control target key end

     0   :  { %s22_s0 = inlined_call_operand.vmem [shape: f32[4], index: 0, kind: input, shape index: {}]   ;;  %s23_s1 = inlined_call_operand.vmem [shape: f32[2,4], index: 1, kind: output, shape index: {}]  }
   0x1   :  { %v4_v0 = vld [vmem:[%s22_s0] ss:$0 sm:$0xff] }
   0x2   :  { %5 = vst [vmem:[%s23_s1] sm:$0x3] %v4_v0 }

// kernel: tile.0
= control target key start
LH: loop header
LB: loop body
LE: loop exit
PB: predicated region body
PF: predicated region fallthrough
CT: control target
= control target key end

     0   :  { %s34_s8 = smov 125   ;;  %vm7_vm0 = vcmask 7168   ;;  %s35_s11 = smov 126   ;;  %s61_s0 = inlined_call_operand.vmem [shape: f32[2,4], index: 0, kind: input, shape index: {}]   ;;  %s62_s1 = inlined_call_operand.vmem [shape: f32[8,1], index: 1, kind: output, shape index: {}]  }
   0x1   :  { %v4_v0 = vld [vmem:[%s61_s0] sm:$0x3]  ;;  %s33_s0 = smov 127  }
   0x2   :  { %5 = vst [vmem:[#allocation0] sm:$0x3] %v4_v0 }
   0x9   :  { %v9_v1 = vld [vmem:[#allocation0] sm:$0x3]  }
   0xa   :  { %v21_v2 = vld [vmem:[#allocation0] sm:$0x3]   ;;  %10 = vrot.lane.b32.xlu0 %v9_v1, %s33_s0 }
   0xb   :  { %22 = vrot.lane.b32.xlu1 %v21_v2, %s34_s8  ;;  %v6_v3 = vld [vmem:[#allocation0] sm:$0x3]  }
   0xc   :  { %v15_v4 = vld [vmem:[#allocation0] sm:$0x3]   ;;  %8 = vst.msk [vmem:[%s62_s1] ss:$4 sm:$0x3] %vm7_vm0, %v6_v3  }
   0xe   :  { %16 = vrot.lane.b32.xlu0 %v15_v4, %s35_s11 }
  0x7c   :  { %v11_v5 = vpop.permute.xlu0 %10  }
  0x7d   :  { %v23_v6 = vpop.permute.xlu1 %22   ;;  %27 = vst.msk [vmem:[%s62_s1 + $0x1] ss:$4 sm:$0x3] %vm7_vm0, %v11_v5  }
  0x7e   :  { %29 = vst.msk [vmem:[%s62_s1 + $0x3] ss:$4 sm:$0x3] %vm7_vm0, %v23_v6  }
  0x80   :  { %v17_v7 = vpop.permute.xlu0 %16  }
  0x81   :  { %28 = vst.msk [vmem:[%s62_s1 + $0x2] ss:$4 sm:$0x3] %vm7_vm0, %v17_v7  }

// kernel: dense_corr2d_light_forward.1
= control target key start
LH: loop header
LB: loop body
LE: loop exit
PB: predicated region body
PF: predicated region fallthrough
CT: control target
= control target key end

     0   :  { %v2492_v0 = vmov 0.0|0.0   ;;  %vm2493_vm0 = vmmov 0   ;;  %v2494_v4 = vmov 0.0   ;;  %v2495_v9 = vmov 0   ;;  %s2498_s9 = smov 125   ;;  %s2499_s10 = smov 124   ;;  %s4261_s4 = inlined_call_operand.vmem [shape: f32[1,72,128], index: 4, kind: input, shape index: {}]   ;;  %s4262_s5 = inlined_call_operand.vmem [shape: f32[1,72,640], index: 5, kind: input, shape index: {}]   ;;  %s4263_s0 = inlined_call_operand.vmem [shape: f32[8,72], index: 0, kind: input, shape index: {}]   ;;  %s4264_s1 = inlined_call_operand.vmem [shape: f32[8,1], index: 1, kind: input, shape index: {}]   ;;  %s4265_s2 = inlined_call_operand.vmem [shape: f32[8,72], index: 2, kind: input, shape index: {}]   ;;  %s4266_s3 = inlined_call_operand.vmem [shape: f32[8,1], index: 3, kind: input, shape index: {}]   ;;  %s4267_s6 = inlined_call_operand.vmem [shape: f32[1,8,384], index: 6, kind: output, shape index: {}]  }
   0x1   :  { %2368 = vmatprep.subr.bf16.mxu0 %v2492_v0  ;;  %v24_v1 = vld [vmem:[%s4261_s4] sm:$0xff]  ;;  %v25_v2 = vld [vmem:[%s4261_s4 + $0x8] sm:$0xff]  ;;  %2344 = vmatprep.mubr.msk.f32.mxu0 %vm2493_vm0, %v2494_v4  ;;  %v120_v6 = vld [vmem:[%s4262_s5 + $0x30] sm:$0xff]  ;;  %vm39_vm1 = vcmask 588800   ;;  %s2500_s11 = smov 123   ;;  %s2501_s12 = smov 122  }
   0x2   :  { %v115_v3 = vld [vmem:[%s4262_s5 + $0x8] sm:$0xff]  ;;  %v2369_v5 = vpack.c.bf16 %v25_v2, %v24_v1  ;;  %v114_v7 = vld [vmem:[%s4262_s5] sm:$0xff]  ;;  %232 = vmatprep.mubr.f32.mxu1 %v2494_v4  ;;  %2491 = vset.pattern.permute.xlu0 %v2495_v9  ;;  %v26_v12 = vld [vmem:[%s4261_s4 + $0x10] sm:$0xff]  ;;  %s2502_s13 = smov 121   ;;  %s2503_s14 = smov 105  }
   0x3   :  { %v119_v8 = vld [vmem:[%s4262_s5 + $0x28] sm:$0xff]  ;;  %v2380_v10 = vpack.c.bf16 %v120_v6, %v115_v3  ;;  %v27_v13 = vld [vmem:[%s4261_s4 + $0x18] sm:$0xff]  ;;  %v130_v16 = vld [vmem:[%s4262_s5 + $0x80] sm:$0xff]  ;;  %s2505_s15 = smov 103   ;;  %s2506_s16 = smov 102  }
   0x4   :  { %v2382_v11 = vpack.c.bf16 %v119_v8, %v114_v7  ;;  %v125_v14 = vld [vmem:[%s4262_s5 + $0x58] sm:$0xff]  ;;  %2370 = vmatpush3.bf16.msra.mxu0 %v2369_v5  ;;  %v2372_v15 = vpack.c.bf16 %v27_v13, %v26_v12  ;;  %v124_v17 = vld [vmem:[%s4262_s5 + $0x50] sm:$0xff]  ;;  %v28_v20 = vld [vmem:[%s4261_s4 + $0x20] sm:$0xff]  ;;  %s2507_s17 = smov 101   ;;  %s2508_s18 = smov 100  }
   0x5   :  { %v129_v18 = vld [vmem:[%s4262_s5 + $0x78] sm:$0xff]  ;;  %2381 = vmatprep.subr.bf16.mxu1 %v2380_v10  ;;  %2371 = vmatprep.subr.bf16.mxu0 %v2492_v0  ;;  %v2384_v19 = vpack.c.bf16 %v130_v16, %v125_v14  ;;  %v29_v21 = vld [vmem:[%s4261_s4 + $0x28] sm:$0xff]  ;;  %v140_v24 = vld [vmem:[%s4262_s5 + $0xd0] sm:$0xff]  ;;  %s2509_s19 = smov 99   ;;  %s2510_s20 = smov 98  }
   0x6   :  { %v135_v22 = vld [vmem:[%s4262_s5 + $0xa8] sm:$0xff]  ;;  %2383 = vmatpush1.bf16.msra.mxu1 %v2382_v11  ;;  %v2386_v23 = vpack.c.bf16 %v129_v18, %v124_v17  ;;  %v134_v26 = vld [vmem:[%s4262_s5 + $0xa0] sm:$0xff]  ;;  %v2375_v28 = vpack.c.bf16 %v29_v21, %v28_v20  ;;  %v145_v29 = vld [vmem:[%s4262_s5 + $0xf8] sm:$0xff]  ;;  %s2511_s21 = smov 82   ;;  %s2513_s22 = smov 80  }
   0x7   :  { %2385 = vmatprep.subr.bf16.mxu1 %v2384_v19  ;;  %v2388_v25 = vpack.c.bf16 %v140_v24, %v135_v22  ;;  %v139_v27 = vld [vmem:[%s4262_s5 + $0xc8] sm:$0xff]  ;;  %v150_v30 = vld [vmem:[%s4262_s5 + $0x120] sm:$0xff]  ;;  %v30_v31 = vld [vmem:[%s4261_s4 + $0x30] sm:$0xff]  ;;  %s2514_s23 = smov 79   ;;  %s2515_s24 = smov 78  }
   0x8   :  { %2373 = vmatpush3.bf16.msra.mxu0 %v2372_v15  ;;  %v31_v32 = vld [vmem:[%s4261_s4 + $0x38] sm:$0xff]  ;;  %v2390_v33 = vpack.c.bf16 %v139_v27, %v134_v26  ;;  %v2392_v34 = vpack.c.bf16 %v150_v30, %v145_v29  ;;  %v144_v35 = vld [vmem:[%s4262_s5 + $0xf0] sm:$0xff]  ;;  %v122_v40 = vld [vmem:[%s4262_s5 + $0x40] sm:$0xff]  ;;  %s2516_s25 = smov 77   ;;  %s2518_s26 = smov 75  }
   0x9   :  { %2374 = vmatprep.subr.bf16.mxu0 %v2492_v0  ;;  %v149_v36 = vld [vmem:[%s4262_s5 + $0x118] sm:$0xff]  ;;  %v2378_v37 = vpack.c.bf16 %v31_v32, %v30_v31  ;;  %v116_v41 = vld [vmem:[%s4262_s5 + $0x10] sm:$0xff]  ;;  %v32_v43 = vld [vmem:[%s4261_s4 + $0x40] sm:$0xff]  ;;  %s2504_s4 = smov 104   ;;  %s2519_s27 = smov 59  }
   0xa   :  { %2387 = vmatpush1.bf16.msra.mxu1 %v2386_v23  ;;  %v2394_v38 = vpack.c.bf16 %v149_v36, %v144_v35  ;;  %v117_v39 = vld [vmem:[%s4262_s5 + $0x18] sm:$0xff]  ;;  %v155_v44 = vld [vmem:[%s4262_s5 + $0x148] sm:$0xff]  ;;  %v118_v45 = vld [vmem:[%s4262_s5 + $0x20] sm:$0xff]  ;;  %s2520_s28 = smov 58   ;;  %s2521_s29 = smov 57  }
   0xb   :  { %2389 = vmatprep.subr.bf16.mxu1 %v2388_v25  ;;  %v121_v42 = vld [vmem:[%s4262_s5 + $0x38] sm:$0xff]  ;;  %v2396_v46 = vpack.c.bf16 %v122_v40, %v117_v39  ;;  %v123_v47 = vld [vmem:[%s4262_s5 + $0x48] sm:$0xff]  ;;  %v132_v49 = vld [vmem:[%s4262_s5 + $0x90] sm:$0xff]  ;;  %s2522_s30 = smov 56   ;;  %s2524_s7 = smov 54  }
   0xc   :  { %2376 = vmatpush3.bf16.msra.mxu0 %v2375_v28  ;;  %v127_v48 = vld [vmem:[%s4262_s5 + $0x68] sm:$0xff]  ;;  %v23_v50 = vld [vmem:[%s4263_s0] sm:$0xff]  ;;  %v2398_v52 = vpack.c.bf16 %v121_v42, %v116_v41  ;;  %v2413_v57 = vpack.c.bf16 %v123_v47, %v118_v45  ;;  %v137_v59 = vld [vmem:[%s4262_s5 + $0xb8] sm:$0xff]  ;;  %s2517_s0 = smov 76   ;;  %s2525_s8 = smov 53  }
   0xd   :  { %2377 = vmatprep.subr.bf16.mxu0 %v2492_v0  ;;  %v154_v51 = vld [vmem:[%s4262_s5 + $0x140] sm:$0xff]  ;;  %v131_v54 = vld [vmem:[%s4262_s5 + $0x88] sm:$0xff]  ;;  %v2400_v58 = vpack.c.bf16 %v132_v49, %v127_v48  ;;  %v128_v61 = vld [vmem:[%s4262_s5 + $0x70] sm:$0xff] }
   0xe   :  { %2391 = vmatpush1.bf16.msra.mxu1 %v2390_v33  ;;  %v126_v53 = vld [vmem:[%s4262_s5 + $0x60] sm:$0xff]  ;;  %v133_v62 = vld [vmem:[%s4262_s5 + $0x98] sm:$0xff]  ;;  %v136_v2 = vld [vmem:[%s4262_s5 + $0xb0] sm:$0xff] }
   0xf   :  { %2393 = vmatprep.subr.bf16.mxu1 %v2392_v34  ;;  %v33_v55 = vld [vmem:[%s4264_s1] sm:$0xff]  ;;  %v2402_v63 = vpack.c.bf16 %v131_v54, %v126_v53  ;;  %v141_v3 = vld [vmem:[%s4262_s5 + $0xd8] sm:$0xff]  ;;  %v2416_v5 = vpack.c.bf16 %v133_v62, %v128_v61  ;;  %v147_v6 = vld [vmem:[%s4262_s5 + $0x108] sm:$0xff]  ;;  %s2523_s1 = smov 55  }
  0x10   :  { %2379 = vmatpush3.bf16.msra.mxu0 %v2378_v37  ;;  %v113_v56 = vld [vmem:[%s4265_s2] sm:$0xff]  ;;  %36 = vperm.xlu0 %2491, %v33_v55   ;;  %v152_v7 = vld [vmem:[%s4262_s5 + $0x130] sm:$0xff]  ;;  %v143_v10 = vld [vmem:[%s4262_s5 + $0xe8] sm:$0xff]  ;;  %v2406_v11 = vpack.c.bf16 %v141_v3, %v136_v2  ;;  %s2497_s2 = smov 126  }
  0x11   :  { %2342 = vmatprep.subr.mxu0 %v2494_v4  ;;  %v142_v60 = vld [vmem:[%s4262_s5 + $0xe0] sm:$0xff]  ;;  %v2408_v12 = vpack.c.bf16 %v152_v7, %v147_v6  ;;  %v151_v14 = vld [vmem:[%s4262_s5 + $0x128] sm:$0xff]  ;;  %v148_v16 = vld [vmem:[%s4262_s5 + $0x110] sm:$0xff] }
  0x12   :  { %2395 = vmatpush1.bf16.msra.mxu1 %v2394_v38  ;;  %v2404_v1 = vpack.c.bf16 %v142_v60, %v137_v59  ;;  %v159_v8 = vld [vmem:[%s4266_s3] sm:$0xff]  ;;  %v153_v17 = vld [vmem:[%s4262_s5 + $0x138] sm:$0xff]  ;;  %v156_v21 = vld [vmem:[%s4262_s5 + $0x150] sm:$0xff]  ;;  %s2512_s3 = smov 81  }
  0x13   :  { %184 = vmatprep.subr.mxu1 %v155_v44  ;;  %v138_v9 = vld [vmem:[%s4262_s5 + $0xc0] sm:$0xff]  ;;  %v2422_v19 = vpack.c.bf16 %v153_v17, %v148_v16  ;;  %v157_v20 = vld [vmem:[%s4262_s5 + $0x158] sm:$0xff] }
  0x14   :  { %2343 = vmatpush3.msra.mxu0 %v32_v43  ;;  %v146_v13 = vld [vmem:[%s4262_s5 + $0x100] sm:$0xff]  ;;  %162 = vperm.xlu0 %2491, %v159_v8   ;;  %v2419_v15 = vpack.c.bf16 %v143_v10, %v138_v9 }
  0x15   :  { %2345 = vmatmul.mubr.msk.f32.vlgmr.msra.gmra.mrb[0].mxu0 %vm39_vm1, %v23_v50  ;;  %2397 = vmatprep.subr.bf16.mxu0 %v2396_v46  ;;  %v2410_v18 = vpack.c.bf16 %v151_v14, %v146_v13  ;;  %v158_v22 = vld [vmem:[%s4262_s5 + $0x160] sm:$0xff]  ;;  %s2496_s5 = smov 127  }
  0x16   :  { %185 = vmatpush1.msra.mxu1 %v154_v51  ;;  %2399 = vmatpush1.bf16.msra.mxu0 %v2398_v52 }
  0x17   :  { %2303 = vmatmul.mubr.msk.f32.vlgmr.msra.gmra.mrb[0].mxu1 %vm39_vm1, %v113_v56  ;;  %2412 = vmatprep.subr.bf16.mxu1 %v2492_v0 }
  0x18   :  { %2414 = vmatpush3.bf16.msra.mxu1 %v2413_v57  ;;  %2401 = vmatprep.subr.bf16.mxu0 %v2400_v58 }
  0x19   :  { %2415 = vmatprep.subr.bf16.mxu1 %v2492_v0  ;;  %303 = vmatprep.mubr.f32.mxu0 %v2494_v4 }
  0x1a   :  { %2403 = vmatpush1.bf16.msra.mxu0 %v2402_v63  ;;  %2365 = vmatprep.mubr.msk.f32.mxu1 %vm2493_vm0, %v2494_v4 }
  0x1b   :  { %2405 = vmatprep.subr.bf16.mxu0 %v2404_v1 }
  0x1c   :  { %2417 = vmatpush3.bf16.msra.mxu1 %v2416_v5 }
  0x1d   :  { %2418 = vmatprep.subr.bf16.mxu1 %v2492_v0 }
  0x1e   :  { %2407 = vmatpush1.bf16.msra.mxu0 %v2406_v11 }
  0x1f   :  { %2409 = vmatprep.subr.bf16.mxu0 %v2408_v12 }
  0x20   :  { %2420 = vmatpush3.bf16.msra.mxu1 %v2419_v15 }
  0x21   :  { %2421 = vmatprep.subr.bf16.mxu1 %v2492_v0  ;;  %v385_v0 = vlaneseq }
  0x22   :  { %2411 = vmatpush1.bf16.msra.mxu0 %v2410_v18 }
  0x23   :  { %255 = vmatprep.subr.mxu0 %v157_v20  ;;  %v2788_v23 = vand.u32 127, %v385_v0 }
  0x24   :  { %2423 = vmatpush3.bf16.msra.mxu1 %v2422_v19 }
  0x25   :  { %2363 = vmatprep.subr.mxu1 %v2494_v4  ;;  %vm431_vm2 = vcmp.eq.s32.totalorder %v2788_v23, 2  ;;  %vm387_vm3 = vcmp.eq.s32.totalorder %v2788_v23, 0  ;;  %vm491_vm4 = vcmp.eq.s32.totalorder %v2788_v23, 4  ;;  %vm400_vm5 = vcmp.eq.s32.totalorder %v2788_v23, 1 }
  0x26   :  { %256 = vmatpush1.msra.mxu0 %v156_v21  ;;  %vm551_vm6 = vcmp.eq.s32.totalorder %v2788_v23, 6  ;;  %vm461_vm7 = vcmp.eq.s32.totalorder %v2788_v23, 3  ;;  %vm1121_vm12 = vcmp.eq.s32.totalorder %v2788_v23, 25  ;;  %vm1391_vm13 = vcmp.eq.s32.totalorder %v2788_v23, 34 }
  0x27   :  { %2304 = vmatmul.mubr.msk.f32.vlgmr.msra.gmra.mrb[2].mxu0 %vm39_vm1, %v113_v56  ;;  %vm1631_vm0 = vcmp.eq.s32.totalorder %v2788_v23, 42  ;;  %vm1661_vm8 = vcmp.eq.s32.totalorder %v2788_v23, 43  ;;  %vm1691_vm9 = vcmp.eq.s32.totalorder %v2788_v23, 44  ;;  %vm1721_vm10 = vcmp.eq.s32.totalorder %v2788_v23, 45 }
  0x28   :  { %2364 = vmatpush3.msra.mxu1 %v158_v22  ;;  %vm1751_vm11 = vcmp.eq.s32.totalorder %v2788_v23, 46  ;;  %vm4325_vm15 = vcmp.eq.s32.totalorder %v2788_v23, 17  ;;  %vm2205_vm14 = vcmp.eq.s32.totalorder %v2788_v23, 61 }
  0x29   :  { %2366 = vmatmul.mubr.msk.f32.vlgmr.msra.gmra.mrb[2].mxu1 %vm39_vm1, %v113_v56  ;;  %vm971_vm1 = vcmp.eq.s32.totalorder %v2788_v23, 20 }
  0x8f   :  { %v37_v4 = vpop.permute.xlu0 %36 }
  0xe8   :  { %v109_v24 = vpop.f32.mrb[0].mxu0 }
  0xe9   :  { %v2819_v25 = vadd.f32 %v109_v24, %v37_v4  ;;  %v2346_v26 = vpop.f32.mrb[1].mxu0 }
  0xea   :  { %v2825_v27 = vpop.f32.mrb[0].mxu1 }
  0xeb   :  { %v2831_v28 = vpop.f32.mrb[1].mxu1  ;;  %v432_v29 = vsel %vm431_vm2, %v2819_v25, 0.0  ;;  %v388_v30 = vsel %vm387_vm3, %v2819_v25, 0.0  ;;  %v492_v31 = vsel %vm491_vm4, %v2819_v25, 0.0  ;;  %v401_v32 = vsel %vm400_vm5, %v2819_v25, 0.0 }
  0xec   :  { %433 = vadd.xlane.f32.xlu0 %v432_v29  ;;  %389 = vadd.xlane.f32.xlu1 %v388_v30  ;;  %v552_v33 = vsel %vm551_vm6, %v2819_v25, 0.0  ;;  %v462_v34 = vsel %vm461_vm7, %v2819_v25, 0.0  ;;  %vm4319_vm4 = vcmp.eq.s32.totalorder %v2788_v23, 8  ;;  %vm4320_vm5 = vcmp.eq.s32.totalorder %v2788_v23, 5 }
  0xed   :  { %v612_v35 = vsel %vm4319_vm4, %v2819_v25, 0.0  ;;  %v522_v36 = vsel %vm4320_vm5, %v2819_v25, 0.0  ;;  %vm4321_vm6 = vcmp.eq.s32.totalorder %v2788_v23, 13  ;;  %vm4322_vm4 = vcmp.eq.s32.totalorder %v2788_v23, 14 }
  0xee   :  { %v2872_v37 = vsel %vm4321_vm6, %v2819_v25, 0.0  ;;  %v2881_v38 = vsel %vm4322_vm4, %v2819_v25, 0.0  ;;  %vm4323_vm5 = vcmp.eq.s32.totalorder %v2788_v23, 15  ;;  %vm4324_vm6 = vcmp.eq.s32.totalorder %v2788_v23, 16 }
  0xef   :  { %v2886_v39 = vsel %vm4323_vm5, %v2819_v25, 0.0  ;;  %v2891_v40 = vsel %vm4324_vm6, %v2819_v25, 0.0  ;;  %v2896_v41 = vsel %vm4325_vm15, %v2819_v25, 0.0  ;;  %vm2115_vm7 = vcmp.eq.s32.totalorder %v2788_v23, 58 }
  0xf0   :  { %vm2145_vm4 = vcmp.eq.s32.totalorder %v2788_v23, 59  ;;  %493 = vadd.xlane.f32.xlu0 %v492_v31  ;;  %402 = vadd.xlane.f32.xlu1 %v401_v32  ;;  %vm4326_vm3 = vcmp.eq.s32.totalorder %v2788_v23, 18  ;;  %vm4327_vm15 = vcmp.eq.s32.totalorder %v2788_v23, 19  ;;  %v2917_v44 = vsel %vm971_vm1, %v2819_v25, 0.0 }
  0xf1   :  { %v2907_v42 = vsel %vm4326_vm3, %v2819_v25, 0.0  ;;  %v2912_v43 = vsel %vm4327_vm15, %v2819_v25, 0.0  ;;  %vm4328_vm5 = vcmp.eq.s32.totalorder %v2788_v23, 21  ;;  %vm2265_vm6 = vcmp.eq.s32.totalorder %v2788_v23, 63 }
  0xf2   :  { %v2922_v45 = vsel %vm4328_vm5, %v2819_v25, 0.0  ;;  %vm2175_vm3 = vcmp.eq.s32.totalorder %v2788_v23, 60  ;;  %vm4329_vm2 = vcmp.eq.s32.totalorder %v2788_v23, 22  ;;  %vm4330_vm15 = vcmp.eq.s32.totalorder %v2788_v23, 23 }
  0xf3   :  { %v2929_v46 = vsel %vm4329_vm2, %v2819_v25, 0.0  ;;  %v2934_v47 = vsel %vm4330_vm15, %v2819_v25, 0.0  ;;  %vm4331_vm1 = vcmp.eq.s32.totalorder %v2788_v23, 24  ;;  %v2944_v49 = vsel %vm1121_vm12, %v2819_v25, 0.0 }
  0xf4   :  { %v2939_v48 = vsel %vm4331_vm1, %v2819_v25, 0.0  ;;  %vm4332_vm5 = vcmp.eq.s32.totalorder %v2788_v23, 26  ;;  %vm4333_vm2 = vcmp.eq.s32.totalorder %v2788_v23, 27  ;;  %vm4334_vm15 = vcmp.eq.s32.totalorder %v2788_v23, 28  ;;  %553 = vadd.xlane.f32.xlu0 %v552_v33  ;;  %463 = vadd.xlane.f32.xlu1 %v462_v34 }
  0xf5   :  { %v2949_v50 = vsel %vm4332_vm5, %v2819_v25, 0.0  ;;  %v2954_v51 = vsel %vm4333_vm2, %v2819_v25, 0.0  ;;  %v2959_v52 = vsel %vm4334_vm15, %v2819_v25, 0.0  ;;  %vm4335_vm1 = vcmp.eq.s32.totalorder %v2788_v23, 29 }
  0xf6   :  { %v2964_v53 = vsel %vm4335_vm1, %v2819_v25, 0.0  ;;  %vm4336_vm12 = vcmp.eq.s32.totalorder %v2788_v23, 30  ;;  %vm4337_vm5 = vcmp.eq.s32.totalorder %v2788_v23, 31  ;;  %vm4338_vm2 = vcmp.eq.s32.totalorder %v2788_v23, 32 }
  0xf7   :  { %v2969_v54 = vsel %vm4336_vm12, %v2819_v25, 0.0  ;;  %v2974_v55 = vsel %vm4337_vm5, %v2819_v25, 0.0  ;;  %v2979_v56 = vsel %vm4338_vm2, %v2819_v25, 0.0  ;;  %vm4339_vm15 = vcmp.eq.s32.totalorder %v2788_v23, 33 }
  0xf8   :  { %v2984_v57 = vsel %vm4339_vm15, %v2819_v25, 0.0  ;;  %v2989_v58 = vsel %vm1391_vm13, %v2819_v25, 0.0  ;;  %vm4340_vm1 = vcmp.eq.s32.totalorder %v2788_v23, 35  ;;  %vm4341_vm12 = vcmp.eq.s32.totalorder %v2788_v23, 36  ;;  %613 = vadd.xlane.f32.xlu0 %v612_v35  ;;  %523 = vadd.xlane.f32.xlu1 %v522_v36 }
  0xf9   :  { %v2994_v59 = vsel %vm4340_vm1, %v2819_v25, 0.0  ;;  %v2999_v60 = vsel %vm4341_vm12, %v2819_v25, 0.0  ;;  %vm4342_vm5 = vcmp.eq.s32.totalorder %v2788_v23, 37  ;;  %vm4343_vm2 = vcmp.eq.s32.totalorder %v2788_v23, 38 }
  0xfa   :  { %v3004_v61 = vsel %vm4342_vm5, %v2819_v25, 0.0  ;;  %v3009_v62 = vsel %vm4343_vm2, %v2819_v25, 0.0  ;;  %vm4344_vm13 = vcmp.eq.s32.totalorder %v2788_v23, 39  ;;  %vm4345_vm15 = vcmp.eq.s32.totalorder %v2788_v23, 40  ;;  %v305_v20 = vpop.f32.mrb[2].mxu0 }
  0xfb   :  { %v3014_v63 = vsel %vm4344_vm13, %v2819_v25, 0.0  ;;  %v3019_v1 = vsel %vm4345_vm15, %v2819_v25, 0.0  ;;  %vm4346_vm1 = vcmp.eq.s32.totalorder %v2788_v23, 41  ;;  %v3029_v3 = vsel %vm1631_vm0, %v2819_v25, 0.0  ;;  %v307_v24 = vpop.f32.mrb[3].mxu0 }
  0xfc   :  { %v3024_v2 = vsel %vm4346_vm1, %v2819_v25, 0.0  ;;  %v3034_v5 = vsel %vm1661_vm8, %v2819_v25, 0.0  ;;  %v3039_v6 = vsel %vm1691_vm9, %v2819_v25, 0.0  ;;  %v3044_v7 = vsel %vm1721_vm10, %v2819_v25, 0.0  ;;  %v3142_v32 = vpop.f32.mrb[2].mxu1 }
  0xfd   :  { %v3049_v8 = vsel %vm1751_vm11, %v2819_v25, 0.0  ;;  %vm4348_vm0 = vcmp.eq.s32.totalorder %v2788_v23, 47  ;;  %vm4350_vm8 = vcmp.eq.s32.totalorder %v2788_v23, 48  ;;  %vm4352_vm9 = vcmp.eq.s32.totalorder %v2788_v23, 49  ;;  %4379 = vst [vmem:[#allocation21_spill] sm:$0xff] %v3142_v32  ;;  %v2367_v33 = vpop.f32.mrb[3].mxu1 }
  0xfe   :  { %4347 = vst [vmem:[#allocation3_spill] sm:$0xff] %v3049_v8  ;;  %v3054_v9 = vsel %vm4348_vm0, %v2819_v25, 0.0  ;;  %v3059_v10 = vsel %vm4350_vm8, %v2819_v25, 0.0  ;;  %v3064_v11 = vsel %vm4352_vm9, %v2819_v25, 0.0  ;;  %vm4354_vm10 = vcmp.eq.s32.totalorder %v2788_v23, 50 }
  0xff   :  { %4349 = vst [vmem:[#allocation4_spill] sm:$0xff] %v3054_v9  ;;  %4351 = vst [vmem:[#allocation5_spill] sm:$0xff] %v3059_v10  ;;  %v3069_v12 = vsel %vm4354_vm10, %v2819_v25, 0.0  ;;  %vm4356_vm11 = vcmp.eq.s32.totalorder %v2788_v23, 51  ;;  %vm4358_vm12 = vcmp.eq.s32.totalorder %v2788_v23, 52  ;;  %vm4360_vm5 = vcmp.eq.s32.totalorder %v2788_v23, 53 }
 0x100   :  { %4353 = vst [vmem:[#allocation6_spill] sm:$0xff] %v3064_v11  ;;  %4355 = vst [vmem:[#allocation7_spill] sm:$0xff] %v3069_v12  ;;  %v3074_v13 = vsel %vm4356_vm11, %v2819_v25, 0.0  ;;  %v3079_v14 = vsel %vm4358_vm12, %v2819_v25, 0.0  ;;  %v3084_v15 = vsel %vm4360_vm5, %v2819_v25, 0.0  ;;  %vm4362_vm2 = vcmp.eq.s32.totalorder %v2788_v23, 54 }
 0x101   :  { %4357 = vst [vmem:[#allocation8_spill] sm:$0xff] %v3074_v13  ;;  %4359 = vst [vmem:[#allocation9_spill] sm:$0xff] %v3079_v14  ;;  %v3089_v16 = vsel %vm4362_vm2, %v2819_v25, 0.0  ;;  %vm4364_vm13 = vcmp.eq.s32.totalorder %v2788_v23, 55  ;;  %vm4366_vm15 = vcmp.eq.s32.totalorder %v2788_v23, 56  ;;  %vm4368_vm1 = vcmp.eq.s32.totalorder %v2788_v23, 57 }
 0x102   :  { %4361 = vst [vmem:[#allocation10_spill] sm:$0xff] %v3084_v15  ;;  %4363 = vst [vmem:[#allocation11_spill] sm:$0xff] %v3089_v16  ;;  %v3094_v17 = vsel %vm4364_vm13, %v2819_v25, 0.0  ;;  %v3099_v18 = vsel %vm4366_vm15, %v2819_v25, 0.0  ;;  %v3104_v19 = vsel %vm4368_vm1, %v2819_v25, 0.0  ;;  %v3109_v21 = vsel %vm2115_vm7, %v2819_v25, 0.0 }
 0x103   :  { %4365 = vst [vmem:[#allocation12_spill] sm:$0xff] %v3094_v17  ;;  %4367 = vst [vmem:[#allocation13_spill] sm:$0xff] %v3099_v18  ;;  %v3114_v22 = vsel %vm2145_vm4, %v2819_v25, 0.0  ;;  %v3119_v0 = vsel %vm2205_vm14, %v2819_v25, 0.0  ;;  %vm4373_vm0 = vcmp.eq.s32.totalorder %v2788_v23, 62  ;;  %vm4375_vm7 = vcmp.eq.s32.totalorder %v2788_v23, 10 }
 0x104   :  { %4369 = vst [vmem:[#allocation14_spill] sm:$0xff] %v3104_v19  ;;  %4370 = vst [vmem:[#allocation15_spill] sm:$0xff] %v3109_v21  ;;  %v3124_v4 = vsel %vm4373_vm0, %v2819_v25, 0.0  ;;  %v672_v26 = vsel %vm4375_vm7, %v2819_v25, 0.0  ;;  %vm4376_vm8 = vcmp.eq.s32.totalorder %v2788_v23, 7  ;;  %v3135_v30 = vsel %vm2265_vm6, %v2819_v25, 0.0 }
 0x105   :  { %4371 = vst [vmem:[#allocation16_spill] sm:$0xff] %v3114_v22  ;;  %4372 = vst [vmem:[#allocation17_spill] sm:$0xff] %v3119_v0  ;;  %v582_v29 = vsel %vm4376_vm8, %v2819_v25, 0.0  ;;  %v3140_v31 = vsel %vm2175_vm3, %v2819_v25, 0.0  ;;  %673 = vadd.xlane.f32.xlu0 %v672_v26  ;;  %vm731_vm14 = vcmp.eq.s32.totalorder %v2788_v23, 12  ;;  %vm641_vm4 = vcmp.eq.s32.totalorder %v2788_v23, 9 }
 0x106   :  { %4374 = vst [vmem:[#allocation18_spill] sm:$0xff] %v3124_v4  ;;  %4377 = vst [vmem:[#allocation19_spill] sm:$0xff] %v3135_v30  ;;  %583 = vadd.xlane.f32.xlu1 %v582_v29  ;;  %v732_v34 = vsel %vm731_vm14, %v2819_v25, 0.0  ;;  %v642_v35 = vsel %vm641_vm4, %v2819_v25, 0.0  ;;  %vm701_vm6 = vcmp.eq.s32.totalorder %v2788_v23, 11  ;;  %vm1681_vm3 = vcmask 80896  }
 0x107   :  { %4378 = vst [vmem:[#allocation20_spill] sm:$0xff] %v3140_v31  ;;  %v702_v36 = vsel %vm701_vm6, %v2819_v25, 0.0  ;;  %v3150_v31 = vpop.permute.xlu0 %162  ;;  %vm421_vm9 = vcmask 1039360   ;;  %vm451_vm10 = vcmask 1031168   ;;  %vm481_vm11 = vcmask 1022976  }
 0x108   :  { %4380 = vst [vmem:[#allocation22_spill] sm:$0xff] %v3150_v31  ;;  %v3156_v29 = vadd.f32 %v2825_v27, %v3150_v31  ;;  %v3160_v33 = vadd.f32 %v2831_v28, %v3150_v31  ;;  %v3165_v25 = vadd.f32 %v305_v20, %v3150_v31  ;;  %v3170_v4 = vadd.f32 %v307_v24, %v3150_v31 }
 0x109   :  { %733 = vadd.xlane.f32.xlu0 %v732_v34  ;;  %vm511_vm12 = vcmask 1014784   ;;  %vm541_vm5 = vcmask 1006592   ;;  %vm571_vm2 = vcmask 998400   ;;  %vm601_vm13 = vcmask 990208  }
 0x10a   :  { %643 = vadd.xlane.f32.xlu1 %v642_v35  ;;  %4381 = vst [vmem:[#allocation23_spill] sm:$0xff] %v3160_v33  ;;  %4382 = vst [vmem:[#allocation24_spill] sm:$0xff] %v3170_v4  ;;  %vm631_vm15 = vcmask 859136   ;;  %vm661_vm1 = vcmask 850944   ;;  %vm691_vm0 = vcmask 842752   ;;  %vm721_vm7 = vcmask 834560  }
 0x10b   :  { %vm751_vm8 = vcmask 826368   ;;  %vm781_vm14 = vcmask 818176   ;;  %vm811_vm4 = vcmask 809984   ;;  %vm841_vm6 = vcmask 801792  }
 0x10e   :  { %703 = vadd.xlane.f32.xlu1 %v702_v36 }
 0x179   :  { %v3152_v26 = vpop.xlane.xlu1 %389  ;;  %v434_v35 = vpop.xlane.xlu0 %433 }
 0x17a   :  { %v435_v36 = vmul.f32 %v434_v35, %v3156_v29  ;;  %v436_v28 = vmul.f32 %v434_v35, %v3160_v33  ;;  %v437_v20 = vmul.f32 %v434_v35, %v3165_v25  ;;  %v438_v24 = vmul.f32 %v434_v35, %v3170_v4 }
 0x17d   :  { %v403_v30 = vpop.xlane.xlu1 %402 }
 0x17e   :  { %v406_v34 = vmul.f32 %v403_v30, %v3160_v33  ;;  %v405_v23 = vmul.f32 %v403_v30, %v3156_v29  ;;  %v407_v27 = vmul.f32 %v403_v30, %v3165_v25  ;;  %v408_v0 = vmul.f32 %v403_v30, %v3170_v4 }
 0x180   :  { %415 = vrot.lane.b32.xlu1 %v406_v34, %s2496_s5  ;;  %413 = vrot.lane.b32.xlu0 %v405_v23, %s2496_s5 }
 0x181   :  { %v464_v22 = vpop.xlane.xlu1 %463 }
 0x182   :  { %v465_v34 = vmul.f32 %v464_v22, %v3156_v29  ;;  %v466_v23 = vmul.f32 %v464_v22, %v3160_v33  ;;  %v467_v30 = vmul.f32 %v464_v22, %v3165_v25 }
 0x184   :  { %443 = vrot.lane.b32.xlu1 %v435_v36, %s2497_s2  ;;  %417 = vrot.lane.b32.xlu0 %v407_v27, %s2496_s5  ;;  %v468_v36 = vmul.f32 %v464_v22, %v3170_v4  ;;  %v494_v27 = vpop.xlane.xlu0 %493 }
 0x185   :  { %v496_v35 = vmul.f32 %v494_v27, %v3160_v33  ;;  %v497_v22 = vmul.f32 %v494_v27, %v3165_v25 }
 0x188   :  { %445 = vrot.lane.b32.xlu1 %v436_v28, %s2497_s2  ;;  %419 = vrot.lane.b32.xlu0 %v408_v0, %s2496_s5  ;;  %v524_v28 = vpop.xlane.xlu1 %523  ;;  %v495_v0 = vmul.f32 %v494_v27, %v3156_v29  ;;  %s2526_s5 = smov 52  }
 0x18c   :  { %447 = vrot.lane.b32.xlu1 %v437_v20, %s2497_s2  ;;  %473 = vrot.lane.b32.xlu0 %v465_v34, %s2498_s9  ;;  %v525_v20 = vmul.f32 %v524_v28, %v3156_v29  ;;  %v526_v34 = vmul.f32 %v524_v28, %v3160_v33 }
 0x190   :  { %449 = vrot.lane.b32.xlu1 %v438_v24, %s2497_s2  ;;  %475 = vrot.lane.b32.xlu0 %v466_v23, %s2498_s9  ;;  %v527_v24 = vmul.f32 %v524_v28, %v3165_v25  ;;  %v498_v23 = vmul.f32 %v494_v27, %v3170_v4  ;;  %s2527_s2 = smov 36  }
 0x194   :  { %479 = vrot.lane.b32.xlu1 %v468_v36, %s2498_s9  ;;  %477 = vrot.lane.b32.xlu0 %v467_v30, %s2498_s9  ;;  %v528_v36 = vmul.f32 %v524_v28, %v3170_v4  ;;  %v554_v30 = vpop.xlane.xlu0 %553  ;;  %s2528_s9 = smov 35  }
 0x195   :  { %v557_v27 = vmul.f32 %v554_v30, %v3165_v25 }
 0x198   :  { %503 = vrot.lane.b32.xlu1 %v495_v0, %s2499_s10  ;;  %533 = vrot.lane.b32.xlu0 %v525_v20, %s2500_s11  ;;  %v584_v0 = vpop.xlane.xlu1 %583  ;;  %v555_v20 = vmul.f32 %v554_v30, %v3156_v29 }
 0x199   :  { %v585_v21 = vmul.f32 %v584_v0, %v3156_v29  ;;  %v587_v28 = vmul.f32 %v584_v0, %v3165_v25 }
 0x19c   :  { %505 = vrot.lane.b32.xlu1 %v496_v35, %s2499_s10  ;;  %535 = vrot.lane.b32.xlu0 %v526_v34, %s2500_s11  ;;  %v556_v35 = vmul.f32 %v554_v30, %v3160_v33  ;;  %v586_v34 = vmul.f32 %v584_v0, %v3160_v33 }
 0x1a0   :  { %507 = vrot.lane.b32.xlu1 %v497_v22, %s2499_s10  ;;  %537 = vrot.lane.b32.xlu0 %v527_v24, %s2500_s11  ;;  %v558_v22 = vmul.f32 %v554_v30, %v3170_v4  ;;  %v588_v24 = vmul.f32 %v584_v0, %v3170_v4 }
 0x1a4   :  { %509 = vrot.lane.b32.xlu1 %v498_v23, %s2499_s10  ;;  %539 = vrot.lane.b32.xlu0 %v528_v36, %s2500_s11  ;;  %v614_v23 = vpop.xlane.xlu0 %613  ;;  %v644_v36 = vpop.xlane.xlu1 %643  ;;  %s2529_s10 = smov 34   ;;  %s2530_s11 = smov 33  }
 0x1a5   :  { %v617_v30 = vmul.f32 %v614_v23, %v3165_v25  ;;  %v647_v0 = vmul.f32 %v644_v36, %v3165_v25 }
 0x1a8   :  { %563 = vrot.lane.b32.xlu1 %v555_v20, %s2501_s12  ;;  %593 = vrot.lane.b32.xlu0 %v585_v21, %s2502_s13  ;;  %v615_v21 = vmul.f32 %v614_v23, %v3156_v29  ;;  %v645_v20 = vmul.f32 %v644_v36, %v3156_v29 }
 0x1ac   :  { %565 = vrot.lane.b32.xlu1 %v556_v35, %s2501_s12  ;;  %595 = vrot.lane.b32.xlu0 %v586_v34, %s2502_s13  ;;  %v616_v35 = vmul.f32 %v614_v23, %v3160_v33  ;;  %v646_v34 = vmul.f32 %v644_v36, %v3160_v33 }
 0x1b0   :  { %567 = vrot.lane.b32.xlu1 %v557_v27, %s2501_s12  ;;  %597 = vrot.lane.b32.xlu0 %v587_v28, %s2502_s13  ;;  %v618_v27 = vmul.f32 %v614_v23, %v3170_v4  ;;  %v648_v28 = vmul.f32 %v644_v36, %v3170_v4 }
 0x1b4   :  { %569 = vrot.lane.b32.xlu1 %v558_v22, %s2501_s12  ;;  %599 = vrot.lane.b32.xlu0 %v588_v24, %s2502_s13  ;;  %v674_v22 = vpop.xlane.xlu0 %673  ;;  %v704_v24 = vpop.xlane.xlu1 %703  ;;  %s2531_s12 = smov 32   ;;  %s2532_s13 = smov 31  }
 0x1b5   :  { %v677_v23 = vmul.f32 %v674_v22, %v3165_v25  ;;  %v707_v36 = vmul.f32 %v704_v24, %v3165_v25 }
 0x1b8   :  { %623 = vrot.lane.b32.xlu1 %v615_v21, %s2503_s14  ;;  %653 = vrot.lane.b32.xlu0 %v645_v20, %s2504_s4  ;;  %v675_v21 = vmul.f32 %v674_v22, %v3156_v29  ;;  %v705_v20 = vmul.f32 %v704_v24, %v3156_v29 }
 0x1bc   :  { %625 = vrot.lane.b32.xlu1 %v616_v35, %s2503_s14  ;;  %655 = vrot.lane.b32.xlu0 %v646_v34, %s2504_s4  ;;  %v676_v35 = vmul.f32 %v674_v22, %v3160_v33  ;;  %v706_v34 = vmul.f32 %v704_v24, %v3160_v33 }
 0x1c0   :  { %627 = vrot.lane.b32.xlu1 %v617_v30, %s2503_s14  ;;  %657 = vrot.lane.b32.xlu0 %v647_v0, %s2504_s4  ;;  %v678_v30 = vmul.f32 %v674_v22, %v3170_v4  ;;  %v708_v0 = vmul.f32 %v704_v24, %v3170_v4 }
 0x1c4   :  { %629 = vrot.lane.b32.xlu1 %v618_v27, %s2503_s14  ;;  %659 = vrot.lane.b32.xlu0 %v648_v28, %s2504_s4  ;;  %v734_v27 = vpop.xlane.xlu0 %733  ;;  %s2533_s14 = smov 30   ;;  %s2534_s4 = smov 29  }
 0x1c5   :  { %v735_v28 = vmul.f32 %v734_v27, %v3156_v29 }
 0x1c8   :  { %683 = vrot.lane.b32.xlu1 %v675_v21, %s2505_s15  ;;  %713 = vrot.lane.b32.xlu0 %v705_v20, %s2506_s16  ;;  %v736_v21 = vmul.f32 %v734_v27, %v3160_v33  ;;  %v737_v20 = vmul.f32 %v734_v27, %v3165_v25 }
 0x1cc   :  { %685 = vrot.lane.b32.xlu1 %v676_v35, %s2505_s15  ;;  %715 = vrot.lane.b32.xlu0 %v706_v34, %s2506_s16  ;;  %v738_v35 = vmul.f32 %v734_v27, %v3170_v4 }
 0x1d0   :  { %687 = vrot.lane.b32.xlu1 %v677_v23, %s2505_s15  ;;  %717 = vrot.lane.b32.xlu0 %v707_v36, %s2506_s16 }
 0x1d4   :  { %689 = vrot.lane.b32.xlu1 %v678_v30, %s2505_s15  ;;  %719 = vrot.lane.b32.xlu0 %v708_v0, %s2506_s16  ;;  %s2535_s15 = smov 13   ;;  %s2536_s16 = smov 12  }
 0x1d8   :  { %743 = vrot.lane.b32.xlu1 %v735_v28, %s2507_s17 }
 0x1dc   :  { %745 = vrot.lane.b32.xlu1 %v736_v21, %s2507_s17 }
 0x1e0   :  { %747 = vrot.lane.b32.xlu1 %v737_v20, %s2507_s17 }
 0x1e4   :  { %749 = vrot.lane.b32.xlu1 %v738_v35, %s2507_s17  ;;  %s2537_s17 = smov 11  }
 0x1f2   :  { %v3216_v34 = vpop.permute.xlu1 %415 }
 0x1f6   :  { %v3218_v22 = vpop.permute.xlu1 %443 }
 0x1fa   :  { %v3220_v24 = vpop.permute.xlu1 %445 }
 0x1fe   :  { %v3223_v23 = vpop.permute.xlu1 %447 }
 0x202   :  { %v3225_v36 = vpop.permute.xlu1 %449 }
 0x206   :  { %v3227_v30 = vpop.permute.xlu1 %479 }
 0x208   :  { %763 = vadd.xlane.f32.xlu1 %v2872_v37 }
 0x20a   :  { %v3229_v0 = vpop.permute.xlu1 %503 }
 0x20e   :  { %v3231_v28 = vpop.permute.xlu1 %505 }
 0x212   :  { %v3233_v27 = vpop.permute.xlu1 %507 }
 0x216   :  { %v3235_v21 = vpop.permute.xlu1 %509 }
 0x217   :  { %4383 = vst [vmem:[#allocation25_spill] sm:$0xff] %v3235_v21 }
 0x21a   :  { %v3237_v20 = vpop.permute.xlu1 %563 }
 0x21b   :  { %4384 = vst [vmem:[#allocation26_spill] sm:$0xff] %v3237_v20 }
 0x21e   :  { %v3239_v35 = vpop.permute.xlu1 %565 }
 0x21f   :  { %4385 = vst [vmem:[#allocation27_spill] sm:$0xff] %v3239_v35 }
 0x222   :  { %v3241_v19 = vpop.permute.xlu1 %567 }
 0x223   :  { %4386 = vst [vmem:[#allocation28_spill] sm:$0xff] %v3241_v19 }
 0x226   :  { %v3243_v37 = vpop.permute.xlu1 %569 }
 0x227   :  { %4387 = vst [vmem:[#allocation29_spill] sm:$0xff] %v3243_v37 }
 0x22a   :  { %v3245_v18 = vpop.permute.xlu1 %623 }
 0x22b   :  { %4388 = vst [vmem:[#allocation30_spill] sm:$0xff] %v3245_v18 }
 0x22e   :  { %v3247_v17 = vpop.permute.xlu1 %625 }
 0x22f   :  { %4389 = vst [vmem:[#allocation31_spill] sm:$0xff] %v3247_v17 }
 0x232   :  { %v3249_v16 = vpop.permute.xlu1 %627 }
 0x233   :  { %4390 = vst [vmem:[#allocation32_spill] sm:$0xff] %v3249_v16 }
 0x236   :  { %v3251_v15 = vpop.permute.xlu1 %629 }
 0x237   :  { %4391 = vst [vmem:[#allocation33_spill] sm:$0xff] %v3251_v15 }
 0x23a   :  { %v3253_v14 = vpop.permute.xlu1 %683 }
 0x23b   :  { %4392 = vst [vmem:[#allocation34_spill] sm:$0xff] %v3253_v14 }
 0x23e   :  { %v3255_v13 = vpop.permute.xlu1 %685 }
 0x23f   :  { %4393 = vst [vmem:[#allocation35_spill] sm:$0xff] %v3255_v13 }
 0x242   :  { %v3257_v12 = vpop.permute.xlu1 %687 }
 0x243   :  { %4394 = vst [vmem:[#allocation36_spill] sm:$0xff] %v3257_v12 }
 0x246   :  { %v3259_v11 = vpop.permute.xlu1 %689 }
 0x247   :  { %4395 = vst [vmem:[#allocation37_spill] sm:$0xff] %v3259_v11 }
 0x24a   :  { %v3261_v32 = vpop.permute.xlu1 %743 }
 0x24b   :  { %4396 = vst [vmem:[#allocation38_spill] sm:$0xff] %v3261_v32  ;;  %v3273_v32 = vpop.permute.xlu0 %413 }
 0x24e   :  { %v3263_v31 = vpop.permute.xlu1 %745 }
 0x24f   :  { %4397 = vst [vmem:[#allocation39_spill] sm:$0xff] %v3263_v31  ;;  %v3275_v31 = vpop.permute.xlu0 %417 }
 0x252   :  { %v3265_v10 = vpop.permute.xlu1 %747 }
 0x253   :  { %4398 = vst [vmem:[#allocation40_spill] sm:$0xff] %v3265_v10 }
 0x256   :  { %v3267_v9 = vpop.permute.xlu1 %749 }
 0x257   :  { %4399 = vst [vmem:[#allocation41_spill] sm:$0xff] %v3267_v9  ;;  %v3278_v9 = vpop.permute.xlu0 %419 }
 0x25b   :  { %v3280_v10 = vpop.permute.xlu0 %473 }
 0x295   :  { %v764_v8 = vpop.xlane.xlu1 %763 }
 0x296   :  { %v765_v16 = vmul.f32 %v764_v8, %v3156_v29  ;;  %v766_v15 = vmul.f32 %v764_v8, %v3160_v33  ;;  %v767_v12 = vmul.f32 %v764_v8, %v3165_v25  ;;  %v768_v11 = vmul.f32 %v764_v8, %v3170_v4 }
 0x298   :  { %773 = vrot.lane.b32.xlu0 %v765_v16, %s2508_s18  ;;  %v3282_v16 = vpop.permute.xlu0 %475 }
 0x29c   :  { %775 = vrot.lane.b32.xlu0 %v766_v15, %s2508_s18  ;;  %v3284_v14 = vpop.permute.xlu0 %477 }
 0x2a0   :  { %777 = vrot.lane.b32.xlu0 %v767_v12, %s2508_s18  ;;  %v3286_v15 = vpop.permute.xlu0 %533 }
 0x2a4   :  { %779 = vrot.lane.b32.xlu0 %v768_v11, %s2508_s18  ;;  %v3288_v12 = vpop.permute.xlu0 %535  ;;  %s2538_s18 = smov 10  }
 0x2a8   :  { %v3290_v8 = vpop.permute.xlu0 %537 }
 0x2a9   :  { %4400 = vst [vmem:[#allocation42_spill] sm:$0xff] %v3290_v8 }
 0x2ac   :  { %v3292_v11 = vpop.permute.xlu0 %539 }
 0x2ad   :  { %4401 = vst [vmem:[#allocation43_spill] sm:$0xff] %v3292_v11 }
 0x2b0   :  { %v3294_v13 = vpop.permute.xlu0 %593 }
 0x2b1   :  { %4402 = vst [vmem:[#allocation44_spill] sm:$0xff] %v3294_v13 }
 0x2b4   :  { %v3296_v37 = vpop.permute.xlu0 %595 }
 0x2b5   :  { %4403 = vst [vmem:[#allocation45_spill] sm:$0xff] %v3296_v37 }
 0x2c3   :  { %793 = vadd.xlane.f32.xlu0 %v2881_v38  ;;  %v3298_v38 = vpop.permute.xlu0 %597 }
 0x2c4   :  { %4404 = vst [vmem:[#allocation46_spill] sm:$0xff] %v3298_v38 }
 0x2c7   :  { %v3300_v18 = vpop.permute.xlu0 %599 }
 0x2c8   :  { %4405 = vst [vmem:[#allocation47_spill] sm:$0xff] %v3300_v18 }
 0x2cb   :  { %v3302_v17 = vpop.permute.xlu0 %653 }
 0x2cc   :  { %4406 = vst [vmem:[#allocation48_spill] sm:$0xff] %v3302_v17 }
 0x2cf   :  { %v3304_v19 = vpop.permute.xlu0 %655 }
 0x2d0   :  { %4407 = vst [vmem:[#allocation49_spill] sm:$0xff] %v3304_v19 }
 0x2d3   :  { %v3306_v21 = vpop.permute.xlu0 %657 }
 0x2d4   :  { %4408 = vst [vmem:[#allocation50_spill] sm:$0xff] %v3306_v21 }
 0x2d7   :  { %v3308_v20 = vpop.permute.xlu0 %659 }
 0x2d8   :  { %4409 = vst [vmem:[#allocation51_spill] sm:$0xff] %v3308_v20 }
 0x2db   :  { %v3310_v35 = vpop.permute.xlu0 %713 }
 0x2dc   :  { %4410 = vst [vmem:[#allocation52_spill] sm:$0xff] %v3310_v35 }
 0x2df   :  { %v3312_v8 = vpop.permute.xlu0 %715 }
 0x2e3   :  { %v3314_v11 = vpop.permute.xlu0 %717 }
 0x2e4   :  { %4411 = vst [vmem:[#allocation53_spill] sm:$0xff] %v3314_v11 }
 0x2e7   :  { %v3316_v13 = vpop.permute.xlu0 %719 }
 0x2e8   :  { %4412 = vst [vmem:[#allocation54_spill] sm:$0xff] %v3316_v13 }
 0x30a   :  { %v3318_v37 = vpop.permute.xlu0 %773 }
 0x30b   :  { %4413 = vst [vmem:[#allocation55_spill] sm:$0xff] %v3318_v37 }
 0x30e   :  { %v3320_v38 = vpop.permute.xlu0 %775 }
 0x30f   :  { %4414 = vst [vmem:[#allocation56_spill] sm:$0xff] %v3320_v38 }
 0x312   :  { %v3322_v18 = vpop.permute.xlu0 %777 }
 0x313   :  { %4415 = vst [vmem:[#allocation57_spill] sm:$0xff] %v3322_v18 }
 0x316   :  { %v3324_v17 = vpop.permute.xlu0 %779 }
 0x317   :  { %4416 = vst [vmem:[#allocation58_spill] sm:$0xff] %v3324_v17 }
 0x350   :  { %v794_v19 = vpop.xlane.xlu0 %793 }
 0x351   :  { %v795_v21 = vmul.f32 %v794_v19, %v3156_v29  ;;  %v796_v20 = vmul.f32 %v794_v19, %v3160_v33  ;;  %v797_v11 = vmul.f32 %v794_v19, %v3165_v25  ;;  %v798_v13 = vmul.f32 %v794_v19, %v3170_v4 }
 0x353   :  { %803 = vrot.lane.b32.xlu1 %v795_v21, %s2509_s19 }
 0x357   :  { %805 = vrot.lane.b32.xlu1 %v796_v20, %s2509_s19 }
 0x35b   :  { %807 = vrot.lane.b32.xlu1 %v797_v11, %s2509_s19 }
 0x35f   :  { %809 = vrot.lane.b32.xlu1 %v798_v13, %s2509_s19  ;;  %s2539_s19 = smov 9  }
 0x383   :  { %823 = vadd.xlane.f32.xlu1 %v2886_v39 }
 0x3c5   :  { %v3331_v37 = vpop.permute.xlu1 %803 }
 0x3c6   :  { %4417 = vst [vmem:[#allocation59_spill] sm:$0xff] %v3331_v37 }
 0x3c9   :  { %v3333_v18 = vpop.permute.xlu1 %805 }
 0x3cd   :  { %v3335_v17 = vpop.permute.xlu1 %807 }
 0x3ce   :  { %4418 = vst [vmem:[#allocation60_spill] sm:$0xff] %v3335_v17 }
 0x3d1   :  { %v3337_v38 = vpop.permute.xlu1 %809 }
 0x3d2   :  { %4419 = vst [vmem:[#allocation61_spill] sm:$0xff] %v3337_v38 }
 0x410   :  { %v824_v21 = vpop.xlane.xlu1 %823 }
 0x411   :  { %v825_v35 = vmul.f32 %v824_v21, %v3156_v29  ;;  %v826_v20 = vmul.f32 %v824_v21, %v3160_v33  ;;  %v827_v13 = vmul.f32 %v824_v21, %v3165_v25  ;;  %v828_v39 = vmul.f32 %v824_v21, %v3170_v4 }
 0x413   :  { %833 = vrot.lane.b32.xlu0 %v825_v35, %s2510_s20 }
 0x417   :  { %835 = vrot.lane.b32.xlu0 %v826_v20, %s2510_s20 }
 0x41b   :  { %837 = vrot.lane.b32.xlu0 %v827_v13, %s2510_s20 }
 0x41f   :  { %839 = vrot.lane.b32.xlu0 %v828_v39, %s2510_s20  ;;  %s2540_s20 = smov 8  }
 0x43e   :  { %853 = vadd.xlane.f32.xlu0 %v2891_v40 }
 0x485   :  { %v3344_v19 = vpop.permute.xlu0 %833 }
 0x486   :  { %4420 = vst [vmem:[#allocation62_spill] sm:$0xff] %v3344_v19 }
 0x489   :  { %v3346_v11 = vpop.permute.xlu0 %835 }
 0x48d   :  { %v3348_v38 = vpop.permute.xlu0 %837 }
 0x48e   :  { %4421 = vst [vmem:[#allocation63_spill] sm:$0xff] %v3348_v38 }
 0x491   :  { %v3350_v17 = vpop.permute.xlu0 %839 }
 0x492   :  { %4422 = vst [vmem:[#allocation64_spill] sm:$0xff] %v3350_v17 }
 0x4cb   :  { %v854_v35 = vpop.xlane.xlu0 %853 }
 0x4cc   :  { %v855_v37 = vmul.f32 %v854_v35, %v3156_v29  ;;  %v856_v20 = vmul.f32 %v854_v35, %v3160_v33  ;;  %v857_v21 = vmul.f32 %v854_v35, %v3165_v25  ;;  %v858_v40 = vmul.f32 %v854_v35, %v3170_v4 }
 0x4ce   :  { %863 = vrot.lane.b32.xlu1 %v855_v37, %s2511_s21 }
 0x4d2   :  { %865 = vrot.lane.b32.xlu1 %v856_v20, %s2511_s21 }
 0x4d6   :  { %867 = vrot.lane.b32.xlu1 %v857_v21, %s2511_s21 }
 0x4da   :  { %869 = vrot.lane.b32.xlu1 %v858_v40, %s2511_s21  ;;  %s2541_s21 = smov 7  }
 0x4fe   :  { %883 = vadd.xlane.f32.xlu1 %v2896_v41 }
 0x540   :  { %v3357_v13 = vpop.permute.xlu1 %863 }
 0x541   :  { %4423 = vst [vmem:[#allocation65_spill] sm:$0xff] %v3357_v13 }
 0x544   :  { %v3359_v39 = vpop.permute.xlu1 %865 }
 0x548   :  { %v3361_v17 = vpop.permute.xlu1 %867 }
 0x549   :  { %4424 = vst [vmem:[#allocation66_spill] sm:$0xff] %v3361_v17 }
 0x54c   :  { %v3363_v38 = vpop.permute.xlu1 %869 }
 0x54d   :  { %4425 = vst [vmem:[#allocation67_spill] sm:$0xff] %v3363_v38 }
 0x58b   :  { %v884_v37 = vpop.xlane.xlu1 %883 }
 0x58c   :  { %v885_v19 = vmul.f32 %v884_v37, %v3156_v29  ;;  %v886_v20 = vmul.f32 %v884_v37, %v3160_v33  ;;  %v887_v35 = vmul.f32 %v884_v37, %v3165_v25  ;;  %v888_v41 = vmul.f32 %v884_v37, %v3170_v4 }
 0x58e   :  { %893 = vrot.lane.b32.xlu0 %v885_v19, %s2512_s3 }
 0x592   :  { %895 = vrot.lane.b32.xlu0 %v886_v20, %s2512_s3 }
 0x596   :  { %897 = vrot.lane.b32.xlu0 %v887_v35, %s2512_s3 }
 0x59a   :  { %899 = vrot.lane.b32.xlu0 %v888_v41, %s2512_s3  ;;  %s2542_s3 = smov 6  }
 0x5b9   :  { %913 = vadd.xlane.f32.xlu0 %v2907_v42 }
 0x600   :  { %v3370_v21 = vpop.permute.xlu0 %893 }
 0x601   :  { %4426 = vst [vmem:[#allocation68_spill] sm:$0xff] %v3370_v21 }
 0x604   :  { %v3372_v40 = vpop.permute.xlu0 %895 }
 0x608   :  { %v3374_v38 = vpop.permute.xlu0 %897 }
 0x609   :  { %4427 = vst [vmem:[#allocation69_spill] sm:$0xff] %v3374_v38 }
 0x60c   :  { %v3376_v17 = vpop.permute.xlu0 %899 }
 0x60d   :  { %4428 = vst [vmem:[#allocation70_spill] sm:$0xff] %v3376_v17 }
 0x646   :  { %v914_v19 = vpop.xlane.xlu0 %913 }
 0x647   :  { %v915_v13 = vmul.f32 %v914_v19, %v3156_v29  ;;  %v916_v20 = vmul.f32 %v914_v19, %v3160_v33  ;;  %v917_v37 = vmul.f32 %v914_v19, %v3165_v25  ;;  %v918_v42 = vmul.f32 %v914_v19, %v3170_v4 }
 0x649   :  { %923 = vrot.lane.b32.xlu1 %v915_v13, %s2513_s22 }
 0x64d   :  { %925 = vrot.lane.b32.xlu1 %v916_v20, %s2513_s22 }
 0x651   :  { %927 = vrot.lane.b32.xlu1 %v917_v37, %s2513_s22 }
 0x655   :  { %929 = vrot.lane.b32.xlu1 %v918_v42, %s2513_s22  ;;  %s2543_s22 = smov 118  }
 0x679   :  { %943 = vadd.xlane.f32.xlu1 %v2912_v43 }
 0x6bb   :  { %v3383_v35 = vpop.permute.xlu1 %923 }
 0x6bc   :  { %4429 = vst [vmem:[#allocation71_spill] sm:$0xff] %v3383_v35 }
 0x6bf   :  { %v3385_v41 = vpop.permute.xlu1 %925 }
 0x6c3   :  { %v3387_v17 = vpop.permute.xlu1 %927 }
 0x6c4   :  { %4430 = vst [vmem:[#allocation72_spill] sm:$0xff] %v3387_v17 }
 0x6c7   :  { %v3389_v38 = vpop.permute.xlu1 %929 }
 0x6c8   :  { %4431 = vst [vmem:[#allocation73_spill] sm:$0xff] %v3389_v38 }
 0x706   :  { %v944_v13 = vpop.xlane.xlu1 %943 }
 0x707   :  { %v945_v21 = vmul.f32 %v944_v13, %v3156_v29  ;;  %v946_v20 = vmul.f32 %v944_v13, %v3160_v33  ;;  %v947_v19 = vmul.f32 %v944_v13, %v3165_v25  ;;  %v948_v43 = vmul.f32 %v944_v13, %v3170_v4 }
 0x709   :  { %953 = vrot.lane.b32.xlu0 %v945_v21, %s2514_s23 }
 0x70d   :  { %955 = vrot.lane.b32.xlu0 %v946_v20, %s2514_s23 }
 0x711   :  { %957 = vrot.lane.b32.xlu0 %v947_v19, %s2514_s23 }
 0x715   :  { %959 = vrot.lane.b32.xlu0 %v948_v43, %s2514_s23  ;;  %s2544_s23 = smov 117  }
 0x734   :  { %973 = vadd.xlane.f32.xlu0 %v2917_v44 }
 0x77b   :  { %v3396_v37 = vpop.permute.xlu0 %953 }
 0x77c   :  { %4432 = vst [vmem:[#allocation74_spill] sm:$0xff] %v3396_v37 }
 0x77f   :  { %v3398_v42 = vpop.permute.xlu0 %955 }
 0x783   :  { %v3400_v38 = vpop.permute.xlu0 %957 }
 0x784   :  { %4433 = vst [vmem:[#allocation75_spill] sm:$0xff] %v3400_v38 }
 0x787   :  { %v3402_v17 = vpop.permute.xlu0 %959 }
 0x788   :  { %4434 = vst [vmem:[#allocation76_spill] sm:$0xff] %v3402_v17 }
 0x7c1   :  { %v974_v21 = vpop.xlane.xlu0 %973 }
 0x7c2   :  { %v975_v35 = vmul.f32 %v974_v21, %v3156_v29  ;;  %v976_v20 = vmul.f32 %v974_v21, %v3160_v33  ;;  %v977_v13 = vmul.f32 %v974_v21, %v3165_v25  ;;  %v978_v44 = vmul.f32 %v974_v21, %v3170_v4 }
 0x7c4   :  { %983 = vrot.lane.b32.xlu1 %v975_v35, %s2515_s24 }
 0x7c8   :  { %985 = vrot.lane.b32.xlu1 %v976_v20, %s2515_s24 }
 0x7cc   :  { %987 = vrot.lane.b32.xlu1 %v977_v13, %s2515_s24 }
 0x7d0   :  { %989 = vrot.lane.b32.xlu1 %v978_v44, %s2515_s24  ;;  %s2545_s24 = smov 116  }
 0x7f4   :  { %1003 = vadd.xlane.f32.xlu1 %v2922_v45 }
 0x836   :  { %v3409_v19 = vpop.permute.xlu1 %983 }
 0x837   :  { %4435 = vst [vmem:[#allocation77_spill] sm:$0xff] %v3409_v19 }
 0x83a   :  { %v3411_v43 = vpop.permute.xlu1 %985 }
 0x83e   :  { %v3413_v17 = vpop.permute.xlu1 %987 }
 0x83f   :  { %4436 = vst [vmem:[#allocation78_spill] sm:$0xff] %v3413_v17 }
 0x842   :  { %v3415_v38 = vpop.permute.xlu1 %989 }
 0x843   :  { %4437 = vst [vmem:[#allocation79_spill] sm:$0xff] %v3415_v38 }
 0x881   :  { %v1004_v35 = vpop.xlane.xlu1 %1003 }
 0x882   :  { %v1005_v37 = vmul.f32 %v1004_v35, %v3156_v29  ;;  %v1006_v20 = vmul.f32 %v1004_v35, %v3160_v33  ;;  %v1007_v21 = vmul.f32 %v1004_v35, %v3165_v25  ;;  %v1008_v45 = vmul.f32 %v1004_v35, %v3170_v4 }
 0x884   :  { %1013 = vrot.lane.b32.xlu0 %v1005_v37, %s2516_s25 }
 0x888   :  { %1015 = vrot.lane.b32.xlu0 %v1006_v20, %s2516_s25 }
 0x88c   :  { %1017 = vrot.lane.b32.xlu0 %v1007_v21, %s2516_s25 }
 0x890   :  { %1019 = vrot.lane.b32.xlu0 %v1008_v45, %s2516_s25  ;;  %s2546_s25 = smov 115  }
 0x8af   :  { %1033 = vadd.xlane.f32.xlu0 %v2929_v46 }
 0x8f6   :  { %v3422_v13 = vpop.permute.xlu0 %1013 }
 0x8f7   :  { %4438 = vst [vmem:[#allocation80_spill] sm:$0xff] %v3422_v13 }
 0x8fa   :  { %v3424_v44 = vpop.permute.xlu0 %1015 }
 0x8fe   :  { %v3426_v38 = vpop.permute.xlu0 %1017 }
 0x8ff   :  { %4439 = vst [vmem:[#allocation81_spill] sm:$0xff] %v3426_v38 }
 0x902   :  { %v3428_v17 = vpop.permute.xlu0 %1019 }
 0x903   :  { %4440 = vst [vmem:[#allocation82_spill] sm:$0xff] %v3428_v17 }
 0x93c   :  { %v1034_v37 = vpop.xlane.xlu0 %1033 }
 0x93d   :  { %v1035_v19 = vmul.f32 %v1034_v37, %v3156_v29  ;;  %v1036_v20 = vmul.f32 %v1034_v37, %v3160_v33  ;;  %v1037_v35 = vmul.f32 %v1034_v37, %v3165_v25  ;;  %v1038_v46 = vmul.f32 %v1034_v37, %v3170_v4 }
 0x93f   :  { %1043 = vrot.lane.b32.xlu1 %v1035_v19, %s2517_s0 }
 0x943   :  { %1045 = vrot.lane.b32.xlu1 %v1036_v20, %s2517_s0 }
 0x947   :  { %1047 = vrot.lane.b32.xlu1 %v1037_v35, %s2517_s0 }
 0x94b   :  { %1049 = vrot.lane.b32.xlu1 %v1038_v46, %s2517_s0  ;;  %s2547_s0 = smov 114  }
 0x96f   :  { %1063 = vadd.xlane.f32.xlu1 %v2934_v47 }
 0x9b1   :  { %v3435_v21 = vpop.permute.xlu1 %1043 }
 0x9b2   :  { %4441 = vst [vmem:[#allocation83_spill] sm:$0xff] %v3435_v21 }
 0x9b5   :  { %v3437_v45 = vpop.permute.xlu1 %1045 }
 0x9b9   :  { %v3439_v17 = vpop.permute.xlu1 %1047 }
 0x9ba   :  { %4442 = vst [vmem:[#allocation84_spill] sm:$0xff] %v3439_v17 }
 0x9bd   :  { %v3441_v38 = vpop.permute.xlu1 %1049 }
 0x9be   :  { %4443 = vst [vmem:[#allocation85_spill] sm:$0xff] %v3441_v38 }
 0x9fc   :  { %v1064_v19 = vpop.xlane.xlu1 %1063 }
 0x9fd   :  { %v1065_v13 = vmul.f32 %v1064_v19, %v3156_v29  ;;  %v1066_v20 = vmul.f32 %v1064_v19, %v3160_v33  ;;  %v1067_v37 = vmul.f32 %v1064_v19, %v3165_v25  ;;  %v1068_v47 = vmul.f32 %v1064_v19, %v3170_v4 }
 0x9ff   :  { %1073 = vrot.lane.b32.xlu0 %v1065_v13, %s2518_s26 }
 0xa03   :  { %1075 = vrot.lane.b32.xlu0 %v1066_v20, %s2518_s26 }
 0xa07   :  { %1077 = vrot.lane.b32.xlu0 %v1067_v37, %s2518_s26 }
 0xa0b   :  { %1079 = vrot.lane.b32.xlu0 %v1068_v47, %s2518_s26  ;;  %s2548_s26 = smov 113  }
 0xa2a   :  { %1093 = vadd.xlane.f32.xlu0 %v2939_v48 }
 0xa71   :  { %v3448_v35 = vpop.permute.xlu0 %1073 }
 0xa72   :  { %4444 = vst [vmem:[#allocation86_spill] sm:$0xff] %v3448_v35 }
 0xa75   :  { %v3450_v46 = vpop.permute.xlu0 %1075 }
 0xa79   :  { %v3452_v38 = vpop.permute.xlu0 %1077 }
 0xa7a   :  { %4445 = vst [vmem:[#allocation87_spill] sm:$0xff] %v3452_v38 }
 0xa7d   :  { %v3454_v17 = vpop.permute.xlu0 %1079 }
 0xa7e   :  { %4446 = vst [vmem:[#allocation88_spill] sm:$0xff] %v3454_v17 }
 0xab7   :  { %v1094_v13 = vpop.xlane.xlu0 %1093 }
 0xab8   :  { %v1095_v21 = vmul.f32 %v1094_v13, %v3156_v29  ;;  %v1096_v20 = vmul.f32 %v1094_v13, %v3160_v33  ;;  %v1097_v19 = vmul.f32 %v1094_v13, %v3165_v25  ;;  %v1098_v48 = vmul.f32 %v1094_v13, %v3170_v4 }
 0xaba   :  { %1103 = vrot.lane.b32.xlu1 %v1095_v21, %s2519_s27 }
 0xabe   :  { %1105 = vrot.lane.b32.xlu1 %v1096_v20, %s2519_s27 }
 0xac2   :  { %1107 = vrot.lane.b32.xlu1 %v1097_v19, %s2519_s27 }
 0xac6   :  { %1109 = vrot.lane.b32.xlu1 %v1098_v48, %s2519_s27  ;;  %s2549_s27 = smov 112  }
 0xaea   :  { %1123 = vadd.xlane.f32.xlu1 %v2944_v49 }
 0xb2c   :  { %v3461_v37 = vpop.permute.xlu1 %1103 }
 0xb2d   :  { %4447 = vst [vmem:[#allocation89_spill] sm:$0xff] %v3461_v37 }
 0xb30   :  { %v3463_v47 = vpop.permute.xlu1 %1105 }
 0xb34   :  { %v3465_v17 = vpop.permute.xlu1 %1107 }
 0xb35   :  { %4448 = vst [vmem:[#allocation90_spill] sm:$0xff] %v3465_v17 }
 0xb38   :  { %v3467_v38 = vpop.permute.xlu1 %1109 }
 0xb39   :  { %4449 = vst [vmem:[#allocation91_spill] sm:$0xff] %v3467_v38 }
 0xb77   :  { %v1124_v21 = vpop.xlane.xlu1 %1123 }
 0xb78   :  { %v1125_v35 = vmul.f32 %v1124_v21, %v3156_v29  ;;  %v1126_v20 = vmul.f32 %v1124_v21, %v3160_v33  ;;  %v1127_v13 = vmul.f32 %v1124_v21, %v3165_v25  ;;  %v1128_v49 = vmul.f32 %v1124_v21, %v3170_v4 }
 0xb7a   :  { %1133 = vrot.lane.b32.xlu0 %v1125_v35, %s2520_s28 }
 0xb7e   :  { %1135 = vrot.lane.b32.xlu0 %v1126_v20, %s2520_s28 }
 0xb82   :  { %1137 = vrot.lane.b32.xlu0 %v1127_v13, %s2520_s28 }
 0xb86   :  { %1139 = vrot.lane.b32.xlu0 %v1128_v49, %s2520_s28  ;;  %s2550_s28 = smov 111  }
 0xba5   :  { %1153 = vadd.xlane.f32.xlu0 %v2949_v50 }
 0xbec   :  { %v3474_v19 = vpop.permute.xlu0 %1133 }
 0xbed   :  { %4450 = vst [vmem:[#allocation92_spill] sm:$0xff] %v3474_v19 }
 0xbf0   :  { %v3476_v48 = vpop.permute.xlu0 %1135 }
 0xbf4   :  { %v3478_v38 = vpop.permute.xlu0 %1137 }
 0xbf5   :  { %4451 = vst [vmem:[#allocation93_spill] sm:$0xff] %v3478_v38 }
 0xbf8   :  { %v3480_v17 = vpop.permute.xlu0 %1139 }
 0xbf9   :  { %4452 = vst [vmem:[#allocation94_spill] sm:$0xff] %v3480_v17 }
 0xc32   :  { %v1154_v35 = vpop.xlane.xlu0 %1153 }
 0xc33   :  { %v1155_v37 = vmul.f32 %v1154_v35, %v3156_v29  ;;  %v1156_v20 = vmul.f32 %v1154_v35, %v3160_v33  ;;  %v1157_v21 = vmul.f32 %v1154_v35, %v3165_v25  ;;  %v1158_v50 = vmul.f32 %v1154_v35, %v3170_v4 }
 0xc35   :  { %1163 = vrot.lane.b32.xlu1 %v1155_v37, %s2521_s29 }
 0xc39   :  { %1165 = vrot.lane.b32.xlu1 %v1156_v20, %s2521_s29 }
 0xc3d   :  { %1167 = vrot.lane.b32.xlu1 %v1157_v21, %s2521_s29 }
 0xc41   :  { %1169 = vrot.lane.b32.xlu1 %v1158_v50, %s2521_s29  ;;  %s2551_s29 = smov 95  }
 0xc65   :  { %1183 = vadd.xlane.f32.xlu1 %v2954_v51 }
 0xca7   :  { %v3487_v13 = vpop.permute.xlu1 %1163 }
 0xca8   :  { %4453 = vst [vmem:[#allocation95_spill] sm:$0xff] %v3487_v13 }
 0xcab   :  { %v3489_v49 = vpop.permute.xlu1 %1165 }
 0xcaf   :  { %v3491_v17 = vpop.permute.xlu1 %1167 }
 0xcb0   :  { %4454 = vst [vmem:[#allocation96_spill] sm:$0xff] %v3491_v17 }
 0xcb3   :  { %v3493_v38 = vpop.permute.xlu1 %1169 }
 0xcb4   :  { %4455 = vst [vmem:[#allocation97_spill] sm:$0xff] %v3493_v38 }
 0xcf2   :  { %v1184_v37 = vpop.xlane.xlu1 %1183 }
 0xcf3   :  { %v1185_v19 = vmul.f32 %v1184_v37, %v3156_v29  ;;  %v1186_v20 = vmul.f32 %v1184_v37, %v3160_v33  ;;  %v1187_v35 = vmul.f32 %v1184_v37, %v3165_v25  ;;  %v1188_v51 = vmul.f32 %v1184_v37, %v3170_v4 }
 0xcf5   :  { %1193 = vrot.lane.b32.xlu0 %v1185_v19, %s2522_s30 }
 0xcf9   :  { %1195 = vrot.lane.b32.xlu0 %v1186_v20, %s2522_s30 }
 0xcfd   :  { %1197 = vrot.lane.b32.xlu0 %v1187_v35, %s2522_s30 }
 0xd01   :  { %1199 = vrot.lane.b32.xlu0 %v1188_v51, %s2522_s30  ;;  %s2552_s30 = smov 94  }
 0xd20   :  { %1213 = vadd.xlane.f32.xlu0 %v2959_v52 }
 0xd67   :  { %v3500_v21 = vpop.permute.xlu0 %1193 }
 0xd68   :  { %4456 = vst [vmem:[#allocation98_spill] sm:$0xff] %v3500_v21 }
 0xd6b   :  { %v3502_v50 = vpop.permute.xlu0 %1195 }
 0xd6f   :  { %v3504_v38 = vpop.permute.xlu0 %1197 }
 0xd70   :  { %4457 = vst [vmem:[#allocation99_spill] sm:$0xff] %v3504_v38 }
 0xd73   :  { %v3506_v17 = vpop.permute.xlu0 %1199 }
 0xd74   :  { %4458 = vst [vmem:[#allocation100_spill] sm:$0xff] %v3506_v17 }
 0xdad   :  { %v1214_v19 = vpop.xlane.xlu0 %1213 }
 0xdae   :  { %v1215_v13 = vmul.f32 %v1214_v19, %v3156_v29  ;;  %v1216_v20 = vmul.f32 %v1214_v19, %v3160_v33  ;;  %v1217_v37 = vmul.f32 %v1214_v19, %v3165_v25  ;;  %v1218_v52 = vmul.f32 %v1214_v19, %v3170_v4 }
 0xdb0   :  { %1223 = vrot.lane.b32.xlu1 %v1215_v13, %s2523_s1 }
 0xdb4   :  { %1225 = vrot.lane.b32.xlu1 %v1216_v20, %s2523_s1 }
 0xdb8   :  { %1227 = vrot.lane.b32.xlu1 %v1217_v37, %s2523_s1 }
 0xdbc   :  { %1229 = vrot.lane.b32.xlu1 %v1218_v52, %s2523_s1  ;;  %s2553_s1 = smov 93  }
 0xde0   :  { %1243 = vadd.xlane.f32.xlu1 %v2964_v53 }
 0xe22   :  { %v3513_v35 = vpop.permute.xlu1 %1223 }
 0xe23   :  { %4459 = vst [vmem:[#allocation101_spill] sm:$0xff] %v3513_v35 }
 0xe26   :  { %v3515_v51 = vpop.permute.xlu1 %1225 }
 0xe2a   :  { %v3517_v17 = vpop.permute.xlu1 %1227 }
 0xe2b   :  { %4460 = vst [vmem:[#allocation102_spill] sm:$0xff] %v3517_v17 }
 0xe2e   :  { %v3519_v38 = vpop.permute.xlu1 %1229 }
 0xe2f   :  { %4461 = vst [vmem:[#allocation103_spill] sm:$0xff] %v3519_v38 }
 0xe6d   :  { %v1244_v13 = vpop.xlane.xlu1 %1243 }
 0xe6e   :  { %v1245_v21 = vmul.f32 %v1244_v13, %v3156_v29  ;;  %v1246_v20 = vmul.f32 %v1244_v13, %v3160_v33  ;;  %v1247_v19 = vmul.f32 %v1244_v13, %v3165_v25  ;;  %v1248_v53 = vmul.f32 %v1244_v13, %v3170_v4 }
 0xe70   :  { %1253 = vrot.lane.b32.xlu0 %v1245_v21, %s2524_s7 }
 0xe74   :  { %1255 = vrot.lane.b32.xlu0 %v1246_v20, %s2524_s7 }
 0xe78   :  { %1257 = vrot.lane.b32.xlu0 %v1247_v19, %s2524_s7 }
 0xe7c   :  { %1259 = vrot.lane.b32.xlu0 %v1248_v53, %s2524_s7  ;;  %s2554_s7 = smov 92  }
 0xe9b   :  { %1273 = vadd.xlane.f32.xlu0 %v2969_v54 }
 0xee2   :  { %v3526_v37 = vpop.permute.xlu0 %1253 }
 0xee3   :  { %4462 = vst [vmem:[#allocation104_spill] sm:$0xff] %v3526_v37 }
 0xee6   :  { %v3528_v52 = vpop.permute.xlu0 %1255 }
 0xeea   :  { %v3530_v38 = vpop.permute.xlu0 %1257 }
 0xeeb   :  { %4463 = vst [vmem:[#allocation105_spill] sm:$0xff] %v3530_v38 }
 0xeee   :  { %v3532_v17 = vpop.permute.xlu0 %1259 }
 0xeef   :  { %4464 = vst [vmem:[#allocation106_spill] sm:$0xff] %v3532_v17 }
 0xf28   :  { %v1274_v21 = vpop.xlane.xlu0 %1273 }
 0xf29   :  { %v1275_v35 = vmul.f32 %v1274_v21, %v3156_v29  ;;  %v1276_v20 = vmul.f32 %v1274_v21, %v3160_v33  ;;  %v1277_v13 = vmul.f32 %v1274_v21, %v3165_v25  ;;  %v1278_v54 = vmul.f32 %v1274_v21, %v3170_v4 }
 0xf2b   :  { %1283 = vrot.lane.b32.xlu1 %v1275_v35, %s2525_s8 }
 0xf2f   :  { %1285 = vrot.lane.b32.xlu1 %v1276_v20, %s2525_s8 }
 0xf33   :  { %1287 = vrot.lane.b32.xlu1 %v1277_v13, %s2525_s8 }
 0xf37   :  { %1289 = vrot.lane.b32.xlu1 %v1278_v54, %s2525_s8  ;;  %s2555_s8 = smov 91  }
 0xf5b   :  { %1303 = vadd.xlane.f32.xlu1 %v2974_v55 }
 0xf9d   :  { %v3539_v19 = vpop.permute.xlu1 %1283 }
 0xf9e   :  { %4465 = vst [vmem:[#allocation107_spill] sm:$0xff] %v3539_v19 }
 0xfa1   :  { %v3541_v53 = vpop.permute.xlu1 %1285 }
 0xfa5   :  { %v3543_v17 = vpop.permute.xlu1 %1287 }
 0xfa6   :  { %4466 = vst [vmem:[#allocation108_spill] sm:$0xff] %v3543_v17 }
 0xfa9   :  { %v3545_v38 = vpop.permute.xlu1 %1289 }
 0xfaa   :  { %4467 = vst [vmem:[#allocation109_spill] sm:$0xff] %v3545_v38 }
 0xfe8   :  { %v1304_v35 = vpop.xlane.xlu1 %1303 }
 0xfe9   :  { %v1305_v37 = vmul.f32 %v1304_v35, %v3156_v29  ;;  %v1306_v20 = vmul.f32 %v1304_v35, %v3160_v33  ;;  %v1307_v21 = vmul.f32 %v1304_v35, %v3165_v25  ;;  %v1308_v55 = vmul.f32 %v1304_v35, %v3170_v4 }
 0xfeb   :  { %1313 = vrot.lane.b32.xlu0 %v1305_v37, %s2526_s5 }
 0xfef   :  { %1315 = vrot.lane.b32.xlu0 %v1306_v20, %s2526_s5 }
 0xff3   :  { %1317 = vrot.lane.b32.xlu0 %v1307_v21, %s2526_s5 }
 0xff7   :  { %1319 = vrot.lane.b32.xlu0 %v1308_v55, %s2526_s5  ;;  %s2556_s5 = smov 90  }
0x1016   :  { %1333 = vadd.xlane.f32.xlu0 %v2979_v56 }
0x105d   :  { %v3552_v13 = vpop.permute.xlu0 %1313 }
0x105e   :  { %4468 = vst [vmem:[#allocation110_spill] sm:$0xff] %v3552_v13 }
0x1061   :  { %v3554_v54 = vpop.permute.xlu0 %1315 }
0x1065   :  { %v3556_v38 = vpop.permute.xlu0 %1317 }
0x1066   :  { %4469 = vst [vmem:[#allocation111_spill] sm:$0xff] %v3556_v38 }
0x1069   :  { %v3558_v17 = vpop.permute.xlu0 %1319 }
0x106a   :  { %4470 = vst [vmem:[#allocation112_spill] sm:$0xff] %v3558_v17 }
0x10a3   :  { %v1334_v37 = vpop.xlane.xlu0 %1333 }
0x10a4   :  { %v1335_v19 = vmul.f32 %v1334_v37, %v3156_v29  ;;  %v1336_v20 = vmul.f32 %v1334_v37, %v3160_v33  ;;  %v1337_v35 = vmul.f32 %v1334_v37, %v3165_v25  ;;  %v1338_v56 = vmul.f32 %v1334_v37, %v3170_v4 }
0x10a6   :  { %1343 = vrot.lane.b32.xlu1 %v1335_v19, %s2527_s2 }
0x10aa   :  { %1345 = vrot.lane.b32.xlu1 %v1336_v20, %s2527_s2 }
0x10ae   :  { %1347 = vrot.lane.b32.xlu1 %v1337_v35, %s2527_s2 }
0x10b2   :  { %1349 = vrot.lane.b32.xlu1 %v1338_v56, %s2527_s2  ;;  %s2557_s2 = smov 89  }
0x10d6   :  { %1363 = vadd.xlane.f32.xlu1 %v2984_v57 }
0x1118   :  { %v3565_v21 = vpop.permute.xlu1 %1343 }
0x1119   :  { %4471 = vst [vmem:[#allocation113_spill] sm:$0xff] %v3565_v21 }
0x111c   :  { %v3567_v55 = vpop.permute.xlu1 %1345 }
0x1120   :  { %v3569_v17 = vpop.permute.xlu1 %1347 }
0x1121   :  { %4472 = vst [vmem:[#allocation114_spill] sm:$0xff] %v3569_v17 }
0x1124   :  { %v3571_v38 = vpop.permute.xlu1 %1349 }
0x1125   :  { %4473 = vst [vmem:[#allocation115_spill] sm:$0xff] %v3571_v38 }
0x1163   :  { %v1364_v19 = vpop.xlane.xlu1 %1363 }
0x1164   :  { %v1365_v13 = vmul.f32 %v1364_v19, %v3156_v29  ;;  %v1366_v20 = vmul.f32 %v1364_v19, %v3160_v33  ;;  %v1367_v37 = vmul.f32 %v1364_v19, %v3165_v25  ;;  %v1368_v57 = vmul.f32 %v1364_v19, %v3170_v4 }
0x1166   :  { %1373 = vrot.lane.b32.xlu0 %v1365_v13, %s2528_s9 }
0x116a   :  { %1375 = vrot.lane.b32.xlu0 %v1366_v20, %s2528_s9 }
0x116e   :  { %1377 = vrot.lane.b32.xlu0 %v1367_v37, %s2528_s9 }
0x1172   :  { %1379 = vrot.lane.b32.xlu0 %v1368_v57, %s2528_s9  ;;  %s2558_s9 = smov 88  }
0x1191   :  { %1393 = vadd.xlane.f32.xlu0 %v2989_v58 }
0x11d8   :  { %v3578_v35 = vpop.permute.xlu0 %1373 }
0x11d9   :  { %4474 = vst [vmem:[#allocation116_spill] sm:$0xff] %v3578_v35 }
0x11dc   :  { %v3580_v56 = vpop.permute.xlu0 %1375 }
0x11e0   :  { %v3582_v38 = vpop.permute.xlu0 %1377 }
0x11e1   :  { %4475 = vst [vmem:[#allocation117_spill] sm:$0xff] %v3582_v38 }
0x11e4   :  { %v3584_v17 = vpop.permute.xlu0 %1379 }
0x11e5   :  { %4476 = vst [vmem:[#allocation118_spill] sm:$0xff] %v3584_v17 }
0x121e   :  { %v1394_v13 = vpop.xlane.xlu0 %1393 }
0x121f   :  { %v1395_v21 = vmul.f32 %v1394_v13, %v3156_v29  ;;  %v1396_v20 = vmul.f32 %v1394_v13, %v3160_v33  ;;  %v1397_v19 = vmul.f32 %v1394_v13, %v3165_v25  ;;  %v1398_v58 = vmul.f32 %v1394_v13, %v3170_v4 }
0x1221   :  { %1403 = vrot.lane.b32.xlu1 %v1395_v21, %s2529_s10 }
0x1225   :  { %1405 = vrot.lane.b32.xlu1 %v1396_v20, %s2529_s10 }
0x1229   :  { %1407 = vrot.lane.b32.xlu1 %v1397_v19, %s2529_s10 }
0x122d   :  { %1409 = vrot.lane.b32.xlu1 %v1398_v58, %s2529_s10 }
0x1251   :  { %1423 = vadd.xlane.f32.xlu1 %v2994_v59 }
0x1293   :  { %v3591_v37 = vpop.permute.xlu1 %1403 }
0x1294   :  { %4477 = vst [vmem:[#allocation119_spill] sm:$0xff] %v3591_v37 }
0x1297   :  { %v3593_v57 = vpop.permute.xlu1 %1405 }
0x129b   :  { %v3595_v17 = vpop.permute.xlu1 %1407 }
0x129c   :  { %4478 = vst [vmem:[#allocation120_spill] sm:$0xff] %v3595_v17 }
0x129f   :  { %v3597_v38 = vpop.permute.xlu1 %1409 }
0x12a0   :  { %4479 = vst [vmem:[#allocation121_spill] sm:$0xff] %v3597_v38 }
0x12de   :  { %v1424_v21 = vpop.xlane.xlu1 %1423 }
0x12df   :  { %v1425_v35 = vmul.f32 %v1424_v21, %v3156_v29  ;;  %v1426_v20 = vmul.f32 %v1424_v21, %v3160_v33  ;;  %v1427_v13 = vmul.f32 %v1424_v21, %v3165_v25  ;;  %v1428_v59 = vmul.f32 %v1424_v21, %v3170_v4 }
0x12e1   :  { %1433 = vrot.lane.b32.xlu0 %v1425_v35, %s2530_s11 }
0x12e5   :  { %1435 = vrot.lane.b32.xlu0 %v1426_v20, %s2530_s11 }
0x12e9   :  { %1437 = vrot.lane.b32.xlu0 %v1427_v13, %s2530_s11 }
0x12ed   :  { %1439 = vrot.lane.b32.xlu0 %v1428_v59, %s2530_s11 }
0x130c   :  { %1453 = vadd.xlane.f32.xlu0 %v2999_v60 }
0x1353   :  { %v3604_v19 = vpop.permute.xlu0 %1433 }
0x1354   :  { %4480 = vst [vmem:[#allocation122_spill] sm:$0xff] %v3604_v19 }
0x1357   :  { %v3606_v58 = vpop.permute.xlu0 %1435 }
0x135b   :  { %v3608_v38 = vpop.permute.xlu0 %1437 }
0x135c   :  { %4481 = vst [vmem:[#allocation123_spill] sm:$0xff] %v3608_v38 }
0x135f   :  { %v3610_v17 = vpop.permute.xlu0 %1439 }
0x1360   :  { %4482 = vst [vmem:[#allocation124_spill] sm:$0xff] %v3610_v17 }
0x1399   :  { %v1454_v35 = vpop.xlane.xlu0 %1453 }
0x139a   :  { %v1455_v37 = vmul.f32 %v1454_v35, %v3156_v29  ;;  %v1456_v20 = vmul.f32 %v1454_v35, %v3160_v33  ;;  %v1457_v21 = vmul.f32 %v1454_v35, %v3165_v25  ;;  %v1458_v60 = vmul.f32 %v1454_v35, %v3170_v4 }
0x139c   :  { %1463 = vrot.lane.b32.xlu1 %v1455_v37, %s2531_s12 }
0x13a0   :  { %1465 = vrot.lane.b32.xlu1 %v1456_v20, %s2531_s12 }
0x13a4   :  { %1467 = vrot.lane.b32.xlu1 %v1457_v21, %s2531_s12 }
0x13a8   :  { %1469 = vrot.lane.b32.xlu1 %v1458_v60, %s2531_s12 }
0x13cc   :  { %1483 = vadd.xlane.f32.xlu1 %v3004_v61 }
0x140e   :  { %v3617_v13 = vpop.permute.xlu1 %1463 }
0x140f   :  { %4483 = vst [vmem:[#allocation125_spill] sm:$0xff] %v3617_v13 }
0x1412   :  { %v3619_v59 = vpop.permute.xlu1 %1465 }
0x1416   :  { %v3621_v17 = vpop.permute.xlu1 %1467 }
0x1417   :  { %4484 = vst [vmem:[#allocation126_spill] sm:$0xff] %v3621_v17 }
0x141a   :  { %v3623_v38 = vpop.permute.xlu1 %1469 }
0x141b   :  { %4485 = vst [vmem:[#allocation127_spill] sm:$0xff] %v3623_v38 }
0x1459   :  { %v1484_v37 = vpop.xlane.xlu1 %1483 }
0x145a   :  { %v1485_v19 = vmul.f32 %v1484_v37, %v3156_v29  ;;  %v1486_v20 = vmul.f32 %v1484_v37, %v3160_v33  ;;  %v1487_v35 = vmul.f32 %v1484_v37, %v3165_v25  ;;  %v1488_v61 = vmul.f32 %v1484_v37, %v3170_v4 }
0x145c   :  { %1493 = vrot.lane.b32.xlu0 %v1485_v19, %s2532_s13 }
0x1460   :  { %1495 = vrot.lane.b32.xlu0 %v1486_v20, %s2532_s13 }
0x1464   :  { %1497 = vrot.lane.b32.xlu0 %v1487_v35, %s2532_s13 }
0x1468   :  { %1499 = vrot.lane.b32.xlu0 %v1488_v61, %s2532_s13 }
0x1487   :  { %1513 = vadd.xlane.f32.xlu0 %v3009_v62 }
0x14ce   :  { %v3630_v21 = vpop.permute.xlu0 %1493 }
0x14cf   :  { %4486 = vst [vmem:[#allocation128_spill] sm:$0xff] %v3630_v21 }
0x14d2   :  { %v3632_v60 = vpop.permute.xlu0 %1495 }
0x14d6   :  { %v3634_v38 = vpop.permute.xlu0 %1497 }
0x14d7   :  { %4487 = vst [vmem:[#allocation129_spill] sm:$0xff] %v3634_v38 }
0x14da   :  { %v3636_v17 = vpop.permute.xlu0 %1499 }
0x14db   :  { %4488 = vst [vmem:[#allocation130_spill] sm:$0xff] %v3636_v17 }
0x1514   :  { %v1514_v19 = vpop.xlane.xlu0 %1513 }
0x1515   :  { %v1515_v13 = vmul.f32 %v1514_v19, %v3156_v29  ;;  %v1516_v20 = vmul.f32 %v1514_v19, %v3160_v33  ;;  %v1517_v37 = vmul.f32 %v1514_v19, %v3165_v25  ;;  %v1518_v62 = vmul.f32 %v1514_v19, %v3170_v4 }
0x1517   :  { %1523 = vrot.lane.b32.xlu1 %v1515_v13, %s2533_s14 }
0x151b   :  { %1525 = vrot.lane.b32.xlu1 %v1516_v20, %s2533_s14 }
0x151f   :  { %1527 = vrot.lane.b32.xlu1 %v1517_v37, %s2533_s14 }
0x1523   :  { %1529 = vrot.lane.b32.xlu1 %v1518_v62, %s2533_s14 }
0x1547   :  { %1543 = vadd.xlane.f32.xlu1 %v3014_v63 }
0x1589   :  { %v3643_v35 = vpop.permute.xlu1 %1523 }
0x158a   :  { %4489 = vst [vmem:[#allocation131_spill] sm:$0xff] %v3643_v35 }
0x158d   :  { %v3645_v61 = vpop.permute.xlu1 %1525 }
0x1591   :  { %v3647_v17 = vpop.permute.xlu1 %1527 }
0x1592   :  { %4490 = vst [vmem:[#allocation132_spill] sm:$0xff] %v3647_v17 }
0x1595   :  { %v3649_v38 = vpop.permute.xlu1 %1529 }
0x1596   :  { %4491 = vst [vmem:[#allocation133_spill] sm:$0xff] %v3649_v38 }
0x15d4   :  { %v1544_v13 = vpop.xlane.xlu1 %1543 }
0x15d5   :  { %v1545_v21 = vmul.f32 %v1544_v13, %v3156_v29  ;;  %v1546_v20 = vmul.f32 %v1544_v13, %v3160_v33  ;;  %v1547_v19 = vmul.f32 %v1544_v13, %v3165_v25  ;;  %v1548_v63 = vmul.f32 %v1544_v13, %v3170_v4 }
0x15d7   :  { %1553 = vrot.lane.b32.xlu0 %v1545_v21, %s2534_s4 }
0x15db   :  { %1555 = vrot.lane.b32.xlu0 %v1546_v20, %s2534_s4 }
0x15df   :  { %1557 = vrot.lane.b32.xlu0 %v1547_v19, %s2534_s4 }
0x15e3   :  { %1559 = vrot.lane.b32.xlu0 %v1548_v63, %s2534_s4 }
0x1602   :  { %1573 = vadd.xlane.f32.xlu0 %v3019_v1 }
0x1649   :  { %v3656_v37 = vpop.permute.xlu0 %1553 }
0x164a   :  { %4492 = vst [vmem:[#allocation134_spill] sm:$0xff] %v3656_v37 }
0x164d   :  { %v3658_v62 = vpop.permute.xlu0 %1555 }
0x1651   :  { %v3660_v38 = vpop.permute.xlu0 %1557 }
0x1652   :  { %4493 = vst [vmem:[#allocation135_spill] sm:$0xff] %v3660_v38 }
0x1655   :  { %v3662_v17 = vpop.permute.xlu0 %1559 }
0x1656   :  { %4494 = vst [vmem:[#allocation136_spill] sm:$0xff] %v3662_v17 }
0x168f   :  { %v1574_v21 = vpop.xlane.xlu0 %1573 }
0x1690   :  { %v1575_v35 = vmul.f32 %v1574_v21, %v3156_v29  ;;  %v1576_v20 = vmul.f32 %v1574_v21, %v3160_v33  ;;  %v1577_v13 = vmul.f32 %v1574_v21, %v3165_v25  ;;  %v1578_v1 = vmul.f32 %v1574_v21, %v3170_v4 }
0x1692   :  { %1583 = vrot.lane.b32.xlu1 %v1575_v35, %s2535_s15 }
0x1696   :  { %1585 = vrot.lane.b32.xlu1 %v1576_v20, %s2535_s15 }
0x169a   :  { %1587 = vrot.lane.b32.xlu1 %v1577_v13, %s2535_s15 }
0x169e   :  { %1589 = vrot.lane.b32.xlu1 %v1578_v1, %s2535_s15 }
0x16c2   :  { %1603 = vadd.xlane.f32.xlu1 %v3024_v2 }
0x1704   :  { %v3669_v19 = vpop.permute.xlu1 %1583 }
0x1705   :  { %4495 = vst [vmem:[#allocation137_spill] sm:$0xff] %v3669_v19 }
0x1708   :  { %v3671_v63 = vpop.permute.xlu1 %1585 }
0x170c   :  { %v3673_v17 = vpop.permute.xlu1 %1587 }
0x170d   :  { %4496 = vst [vmem:[#allocation138_spill] sm:$0xff] %v3673_v17 }
0x1710   :  { %v3675_v38 = vpop.permute.xlu1 %1589 }
0x1711   :  { %4497 = vst [vmem:[#allocation139_spill] sm:$0xff] %v3675_v38 }
0x174f   :  { %v1604_v35 = vpop.xlane.xlu1 %1603 }
0x1750   :  { %v1605_v37 = vmul.f32 %v1604_v35, %v3156_v29  ;;  %v1606_v20 = vmul.f32 %v1604_v35, %v3160_v33  ;;  %v1607_v21 = vmul.f32 %v1604_v35, %v3165_v25  ;;  %v1608_v2 = vmul.f32 %v1604_v35, %v3170_v4 }
0x1752   :  { %1613 = vrot.lane.b32.xlu0 %v1605_v37, %s2536_s16 }
0x1756   :  { %1615 = vrot.lane.b32.xlu0 %v1606_v20, %s2536_s16 }
0x175a   :  { %1617 = vrot.lane.b32.xlu0 %v1607_v21, %s2536_s16 }
0x175e   :  { %1619 = vrot.lane.b32.xlu0 %v1608_v2, %s2536_s16 }
0x177d   :  { %1633 = vadd.xlane.f32.xlu0 %v3029_v3 }
0x17c4   :  { %v3682_v13 = vpop.permute.xlu0 %1613 }
0x17c5   :  { %4498 = vst [vmem:[#allocation140_spill] sm:$0xff] %v3682_v13 }
0x17c8   :  { %v3684_v1 = vpop.permute.xlu0 %1615 }
0x17cc   :  { %v3686_v38 = vpop.permute.xlu0 %1617 }
0x17cd   :  { %4499 = vst [vmem:[#allocation141_spill] sm:$0xff] %v3686_v38 }
0x17d0   :  { %v3688_v17 = vpop.permute.xlu0 %1619 }
0x17d1   :  { %4500 = vst [vmem:[#allocation142_spill] sm:$0xff] %v3688_v17 }
0x180a   :  { %v1634_v37 = vpop.xlane.xlu0 %1633 }
0x180b   :  { %v1635_v19 = vmul.f32 %v1634_v37, %v3156_v29  ;;  %v1636_v20 = vmul.f32 %v1634_v37, %v3160_v33  ;;  %v1637_v35 = vmul.f32 %v1634_v37, %v3165_v25  ;;  %v1638_v3 = vmul.f32 %v1634_v37, %v3170_v4 }
0x180d   :  { %1643 = vrot.lane.b32.xlu1 %v1635_v19, %s2537_s17 }
0x1811   :  { %1645 = vrot.lane.b32.xlu1 %v1636_v20, %s2537_s17 }
0x1815   :  { %1647 = vrot.lane.b32.xlu1 %v1637_v35, %s2537_s17 }
0x1819   :  { %1649 = vrot.lane.b32.xlu1 %v1638_v3, %s2537_s17 }
0x183d   :  { %1663 = vadd.xlane.f32.xlu1 %v3034_v5 }
0x187f   :  { %v3695_v21 = vpop.permute.xlu1 %1643 }
0x1883   :  { %v3697_v2 = vpop.permute.xlu1 %1645 }
0x1887   :  { %v3699_v17 = vpop.permute.xlu1 %1647 }
0x1888   :  { %4501 = vst [vmem:[#allocation143_spill] sm:$0xff] %v3699_v17 }
0x188b   :  { %v3701_v38 = vpop.permute.xlu1 %1649 }
0x188c   :  { %4502 = vst [vmem:[#allocation144_spill] sm:$0xff] %v3701_v38 }
0x18ca   :  { %v1664_v19 = vpop.xlane.xlu1 %1663 }
0x18cb   :  { %v1665_v13 = vmul.f32 %v1664_v19, %v3156_v29  ;;  %v1666_v20 = vmul.f32 %v1664_v19, %v3160_v33  ;;  %v1667_v37 = vmul.f32 %v1664_v19, %v3165_v25  ;;  %v1668_v5 = vmul.f32 %v1664_v19, %v3170_v4 }
0x18cd   :  { %1673 = vrot.lane.b32.xlu0 %v1665_v13, %s2538_s18 }
0x18d1   :  { %1675 = vrot.lane.b32.xlu0 %v1666_v20, %s2538_s18 }
0x18d5   :  { %1677 = vrot.lane.b32.xlu0 %v1667_v37, %s2538_s18 }
0x18d9   :  { %1679 = vrot.lane.b32.xlu0 %v1668_v5, %s2538_s18 }
0x18f8   :  { %1693 = vadd.xlane.f32.xlu0 %v3039_v6 }
0x193f   :  { %v3708_v35 = vpop.permute.xlu0 %1673 }
0x1940   :  { %4503 = vst [vmem:[#allocation145_spill] sm:$0xff] %v3708_v35 }
0x1943   :  { %v3710_v3 = vpop.permute.xlu0 %1675 }
0x1944   :  { %4504 = vst [vmem:[#allocation146_spill] sm:$0xff] %v3710_v3 }
0x1947   :  { %v1678_v38 = vpop.permute.xlu0 %1677 }
0x1948   :  { %v3714_v13 = vsel %vm1681_vm3, %v3710_v3, %v1678_v38 }
0x1949   :  { %4505 = vst [vmem:[#allocation147_spill] sm:$0xff] %v3714_v13 }
0x194b   :  { %v1680_v17 = vpop.permute.xlu0 %1679 }
0x194c   :  { %v3717_v20 = vsel %vm1681_vm3, %v1678_v38, %v1680_v17 }
0x194d   :  { %4506 = vst [vmem:[#allocation148_spill] sm:$0xff] %v3717_v20 }
0x1985   :  { %v1694_v37 = vpop.xlane.xlu0 %1693 }
0x1986   :  { %v1695_v19 = vmul.f32 %v1694_v37, %v3156_v29  ;;  %v1696_v6 = vmul.f32 %v1694_v37, %v3160_v33  ;;  %v1697_v5 = vmul.f32 %v1694_v37, %v3165_v25  ;;  %v1698_v35 = vmul.f32 %v1694_v37, %v3170_v4 }
0x1987   :  { %v422_v37 = vsel %vm421_vm9, %v3273_v32, %v3216_v34  ;;  %v395_v32 = vmul.f32 %v3152_v26, %v3160_v33 }
0x1988   :  { %1703 = vrot.lane.b32.xlu1 %v1695_v19, %s2539_s19 }
0x198c   :  { %1705 = vrot.lane.b32.xlu1 %v1696_v6, %s2539_s19 }
0x1990   :  { %1707 = vrot.lane.b32.xlu1 %v1697_v5, %s2539_s19  ;;  %v394_v5 = vmul.f32 %v3152_v26, %v3156_v29 }
0x1994   :  { %1709 = vrot.lane.b32.xlu1 %v1698_v35, %s2539_s19 }
0x19b8   :  { %1723 = vadd.xlane.f32.xlu1 %v3044_v7 }
0x19fa   :  { %v3724_v13 = vpop.permute.xlu1 %1703 }
0x19fe   :  { %v3726_v17 = vpop.permute.xlu1 %1705 }
0x1a02   :  { %v3728_v38 = vpop.permute.xlu1 %1707 }
0x1a06   :  { %v3730_v20 = vpop.permute.xlu1 %1709 }
0x1a45   :  { %v1724_v19 = vpop.xlane.xlu1 %1723 }
0x1a46   :  { %v1725_v3 = vmul.f32 %v1724_v19, %v3156_v29  ;;  %v1726_v6 = vmul.f32 %v1724_v19, %v3160_v33  ;;  %v1727_v35 = vmul.f32 %v1724_v19, %v3165_v25  ;;  %v1728_v7 = vmul.f32 %v1724_v19, %v3170_v4 }
0x1a47   :  { %v423_v19 = vsel %vm421_vm9, %v3216_v34, %v3275_v31  ;;  %v453_v4 = vsel %vm451_vm10, %v3220_v24, %v3223_v23  ;;  %v396_v34 = vmul.f32 %v3152_v26, %v3165_v25  ;;  %v513_v26 = vsel %vm511_vm12, %v3231_v28, %v3233_v27 }
0x1a48   :  { %1733 = vrot.lane.b32.xlu0 %v1725_v3, %s2540_s20  ;;  %v452_v3 = vsel %vm451_vm10, %v3218_v22, %v3220_v24  ;;  %v512_v22 = vsel %vm511_vm12, %v3229_v0, %v3231_v28  ;;  %v454_v24 = vsel %vm451_vm10, %v3223_v23, %v3225_v36  ;;  %vm901_vm10 = vcmask 662528  }
0x1a4c   :  { %1735 = vrot.lane.b32.xlu0 %v1726_v6, %s2540_s20  ;;  %v428_v6 = vadd.f32 %v422_v37, %v394_v5  ;;  %v429_v37 = vadd.f32 %v423_v19, %v395_v32 }
0x1a50   :  { %1737 = vrot.lane.b32.xlu0 %v1727_v35, %s2540_s20  ;;  %v482_v35 = vsel %vm481_vm11, %v3280_v10, %v3282_v16  ;;  %v424_v10 = vsel %vm421_vm9, %v3275_v31, %v3278_v9  ;;  %v484_v9 = vsel %vm481_vm11, %v3284_v14, %v3227_v30  ;;  %v4507_v31 = vld [vmem:[#allocation27_spill] sm:$0xff]  ;;  %vm871_vm9 = vcmask 670720  }
0x1a51   :  { %v430_v0 = vadd.f32 %v424_v10, %v396_v34 }
0x1a53   :  { %v460_v32 = vadd.f32 %v454_v24, %v430_v0  ;;  %v4514_v24 = vld [vmem:[#allocation31_spill] sm:$0xff] }
0x1a54   :  { %1739 = vrot.lane.b32.xlu0 %v1728_v7, %s2540_s20  ;;  %v458_v7 = vadd.f32 %v452_v3, %v428_v6  ;;  %v483_v3 = vsel %vm481_vm11, %v3282_v16, %v3284_v14  ;;  %v459_v6 = vadd.f32 %v453_v4, %v429_v37  ;;  %v542_v4 = vsel %vm541_vm5, %v3286_v15, %v3288_v12  ;;  %v4508_v16 = vld [vmem:[#allocation26_spill] sm:$0xff]  ;;  %v4511_v15 = vld [vmem:[#allocation28_spill] sm:$0xff] }
0x1a55   :  { %v4510_v14 = vld [vmem:[#allocation42_spill] sm:$0xff]  ;;  %vm931_vm11 = vcmask 654336  }
0x1a56   :  { %v488_v5 = vadd.f32 %v482_v35, %v458_v7  ;;  %v489_v19 = vadd.f32 %v483_v3, %v459_v6  ;;  %v572_v35 = vsel %vm571_vm2, %v4508_v16, %v4507_v31  ;;  %v4509_v7 = vld [vmem:[#allocation25_spill] sm:$0xff]  ;;  %v543_v30 = vsel %vm541_vm5, %v3288_v12, %v4510_v14  ;;  %v4513_v3 = vld [vmem:[#allocation44_spill] sm:$0xff] }
0x1a57   :  { %v514_v28 = vsel %vm511_vm12, %v3233_v27, %v4509_v7  ;;  %v4515_v27 = vld [vmem:[#allocation30_spill] sm:$0xff]  ;;  %vm961_vm12 = vcmask 646144  }
0x1a58   :  { %v518_v33 = vadd.f32 %v512_v22, %v488_v5  ;;  %v519_v36 = vadd.f32 %v513_v26, %v489_v19  ;;  %v490_v22 = vadd.f32 %v484_v9, %v460_v32  ;;  %v573_v5 = vsel %vm571_vm2, %v4507_v31, %v4511_v15  ;;  %v4516_v9 = vld [vmem:[#allocation43_spill] sm:$0xff]  ;;  %v4518_v32 = vld [vmem:[#allocation46_spill] sm:$0xff] }
0x1a59   :  { %v632_v26 = vsel %vm631_vm15, %v4515_v27, %v4514_v24  ;;  %v544_v12 = vsel %vm541_vm5, %v4510_v14, %v4516_v9  ;;  %v4521_v14 = vld [vmem:[#allocation49_spill] sm:$0xff]  ;;  %v4525_v27 = vld [vmem:[#allocation47_spill] sm:$0xff]  ;;  %v4527_v9 = vld [vmem:[#allocation50_spill] sm:$0xff]  ;;  %vm991_vm5 = vcmask 637952  }
0x1a5a   :  { %v548_v23 = vadd.f32 %v542_v4, %v518_v33  ;;  %v549_v34 = vadd.f32 %v543_v30, %v519_v36  ;;  %v520_v10 = vadd.f32 %v514_v28, %v490_v22  ;;  %v4512_v33 = vld [vmem:[#allocation45_spill] sm:$0xff]  ;;  %v4519_v36 = vld [vmem:[#allocation32_spill] sm:$0xff]  ;;  %v4520_v28 = vld [vmem:[#allocation3_spill] sm:$0xff] }
0x1a5b   :  { %v602_v6 = vsel %vm601_vm13, %v4513_v3, %v4512_v33  ;;  %v4517_v4 = vld [vmem:[#allocation29_spill] sm:$0xff]  ;;  %v633_v7 = vsel %vm631_vm15, %v4514_v24, %v4519_v36  ;;  %v4522_v30 = vld [vmem:[#allocation48_spill] sm:$0xff] }
0x1a5c   :  { %v578_v37 = vadd.f32 %v572_v35, %v548_v23  ;;  %v579_v19 = vadd.f32 %v573_v5, %v549_v34  ;;  %v574_v31 = vsel %vm571_vm2, %v4511_v15, %v4517_v4  ;;  %v550_v16 = vadd.f32 %v544_v12, %v520_v10  ;;  %v4523_v5 = vld [vmem:[#allocation35_spill] sm:$0xff]  ;;  %v4524_v34 = vld [vmem:[#allocation34_spill] sm:$0xff]  ;;  %v4528_v4 = vld [vmem:[#allocation36_spill] sm:$0xff] }
0x1a5d   :  { %v603_v23 = vsel %vm601_vm13, %v4512_v33, %v4518_v32  ;;  %v662_v15 = vsel %vm661_vm1, %v4522_v30, %v4521_v14  ;;  %v692_v10 = vsel %vm691_vm0, %v4524_v34, %v4523_v5  ;;  %v604_v33 = vsel %vm601_vm13, %v4518_v32, %v4525_v27  ;;  %v4529_v32 = vld [vmem:[#allocation52_spill] sm:$0xff]  ;;  %v4532_v30 = vld [vmem:[#allocation51_spill] sm:$0xff] }
0x1a5e   :  { %v608_v0 = vadd.f32 %v602_v6, %v578_v37  ;;  %v609_v22 = vadd.f32 %v603_v23, %v579_v19  ;;  %v580_v37 = vadd.f32 %v574_v31, %v550_v16  ;;  %v663_v12 = vsel %vm661_vm1, %v4521_v14, %v4527_v9  ;;  %v4534_v34 = vld [vmem:[#allocation56_spill] sm:$0xff] }
0x1a5f   :  { %v693_v31 = vsel %vm691_vm0, %v4523_v5, %v4528_v4  ;;  %v722_v23 = vsel %vm721_vm7, %v4529_v32, %v3312_v8  ;;  %v664_v14 = vsel %vm661_vm1, %v4527_v9, %v4532_v30  ;;  %v4540_v32 = vld [vmem:[#allocation62_spill] sm:$0xff]  ;;  %v4543_v30 = vld [vmem:[#allocation60_spill] sm:$0xff]  ;;  %vm1021_vm2 = vcmask 629760  }
0x1a60   :  { %v638_v35 = vadd.f32 %v632_v26, %v608_v0  ;;  %v639_v6 = vadd.f32 %v633_v7, %v609_v22  ;;  %v4526_v26 = vld [vmem:[#allocation33_spill] sm:$0xff]  ;;  %v610_v0 = vadd.f32 %v604_v33, %v580_v37  ;;  %v4531_v7 = vld [vmem:[#allocation38_spill] sm:$0xff]  ;;  %vm1051_vm13 = vcmask 621568  }
0x1a61   :  { %v634_v24 = vsel %vm631_vm15, %v4519_v36, %v4526_v26  ;;  %v4530_v36 = vld [vmem:[#allocation39_spill] sm:$0xff]  ;;  %v4536_v33 = vld [vmem:[#allocation53_spill] sm:$0xff]  ;;  %vm1081_vm15 = vcmask 613376   ;;  %vm1111_vm1 = vcmask 482304  }
0x1a62   :  { %v668_v3 = vadd.f32 %v662_v15, %v638_v35  ;;  %v669_v16 = vadd.f32 %v663_v12, %v639_v6  ;;  %v640_v35 = vadd.f32 %v634_v24, %v610_v0  ;;  %v4533_v15 = vld [vmem:[#allocation37_spill] sm:$0xff]  ;;  %v723_v26 = vsel %vm721_vm7, %v3312_v8, %v4536_v33  ;;  %v4537_v24 = vld [vmem:[#allocation40_spill] sm:$0xff] }
0x1a63   :  { %v694_v5 = vsel %vm691_vm0, %v4528_v4, %v4533_v15  ;;  %v753_v0 = vsel %vm751_vm8, %v4530_v36, %v4537_v24  ;;  %v842_v8 = vsel %vm841_vm6, %v4540_v32, %v3346_v11  ;;  %v4544_v15 = vld [vmem:[#allocation65_spill] sm:$0xff]  ;;  %vm1141_vm0 = vcmask 474112  }
0x1a64   :  { %v698_v19 = vadd.f32 %v692_v10, %v668_v3  ;;  %v699_v37 = vadd.f32 %v693_v31, %v669_v16  ;;  %v4535_v10 = vld [vmem:[#allocation55_spill] sm:$0xff]  ;;  %v670_v6 = vadd.f32 %v664_v14, %v640_v35  ;;  %v4539_v16 = vld [vmem:[#allocation57_spill] sm:$0xff]  ;;  %v813_v14 = vsel %vm811_vm4, %v3333_v18, %v4543_v30 }
0x1a65   :  { %v782_v3 = vsel %vm781_vm14, %v4535_v10, %v4534_v34  ;;  %v783_v35 = vsel %vm781_vm14, %v4534_v34, %v4539_v16 }
0x1a66   :  { %v728_v22 = vadd.f32 %v722_v23, %v698_v19  ;;  %v4538_v19 = vld [vmem:[#allocation59_spill] sm:$0xff]  ;;  %v729_v12 = vadd.f32 %v723_v26, %v699_v37  ;;  %v700_v4 = vadd.f32 %v694_v5, %v670_v6  ;;  %v872_v5 = vsel %vm871_vm9, %v4544_v15, %v3359_v39  ;;  %v4545_v6 = vld [vmem:[#allocation58_spill] sm:$0xff] }
0x1a67   :  { %v812_v9 = vsel %vm811_vm4, %v4538_v19, %v3333_v18 }
0x1a68   :  { %v759_v23 = vadd.f32 %v753_v0, %v729_v12  ;;  %v4548_v12 = vld [vmem:[#allocation61_spill] sm:$0xff] }
0x1a6a   :  { %v789_v10 = vadd.f32 %v783_v35, %v759_v23  ;;  %v4550_v35 = vld [vmem:[#allocation71_spill] sm:$0xff] }
0x1a6c   :  { %v819_v19 = vadd.f32 %v813_v14, %v789_v10  ;;  %v4555_v10 = vld [vmem:[#allocation72_spill] sm:$0xff] }
0x1a73   :  { %1753 = vadd.xlane.f32.xlu0 %v4520_v28  ;;  %v752_v28 = vsel %vm751_vm8, %v4531_v7, %v4530_v36  ;;  %v4541_v36 = vld [vmem:[#allocation54_spill] sm:$0xff] }
0x1a74   :  { %v758_v27 = vadd.f32 %v752_v28, %v728_v22  ;;  %v724_v28 = vsel %vm721_vm7, %v4536_v33, %v4541_v36  ;;  %v4542_v22 = vld [vmem:[#allocation41_spill] sm:$0xff]  ;;  %v4546_v33 = vld [vmem:[#allocation63_spill] sm:$0xff]  ;;  %vm1171_vm7 = vcmask 465920  }
0x1a75   :  { %v754_v37 = vsel %vm751_vm8, %v4537_v24, %v4542_v22  ;;  %v730_v34 = vadd.f32 %v724_v28, %v700_v4  ;;  %v843_v26 = vsel %vm841_vm6, %v3346_v11, %v4546_v33  ;;  %v4547_v24 = vld [vmem:[#allocation68_spill] sm:$0xff]  ;;  %v814_v4 = vsel %vm811_vm4, %v4543_v30, %v4548_v12  ;;  %v4552_v28 = vld [vmem:[#allocation69_spill] sm:$0xff] }
0x1a76   :  { %v788_v31 = vadd.f32 %v782_v3, %v758_v27  ;;  %v784_v27 = vsel %vm781_vm14, %v4539_v16, %v4545_v6  ;;  %v902_v18 = vsel %vm901_vm10, %v4547_v24, %v3372_v40  ;;  %v932_v11 = vsel %vm931_vm11, %v4550_v35, %v3385_v41  ;;  %v4556_v6 = vld [vmem:[#allocation77_spill] sm:$0xff]  ;;  %v4557_v24 = vld [vmem:[#allocation70_spill] sm:$0xff] }
0x1a77   :  { %v760_v0 = vadd.f32 %v754_v37, %v730_v34  ;;  %v903_v22 = vsel %vm901_vm10, %v3372_v40, %v4552_v28  ;;  %v4553_v37 = vld [vmem:[#allocation74_spill] sm:$0xff]  ;;  %v992_v40 = vsel %vm991_vm5, %v4556_v6, %v3411_v43  ;;  %vm1201_vm8 = vcmask 457728  }
0x1a78   :  { %v818_v7 = vadd.f32 %v812_v9, %v788_v31  ;;  %v4549_v31 = vld [vmem:[#allocation66_spill] sm:$0xff]  ;;  %vm1231_vm14 = vcmask 449536   ;;  %vm1261_vm4 = vcmask 441344  }
0x1a79   :  { %v873_v16 = vsel %vm871_vm9, %v3359_v39, %v4549_v31  ;;  %v790_v32 = vadd.f32 %v784_v27, %v760_v0  ;;  %v962_v39 = vsel %vm961_vm12, %v4553_v37, %v3398_v42  ;;  %v4558_v0 = vld [vmem:[#allocation75_spill] sm:$0xff]  ;;  %v4564_v37 = vld [vmem:[#allocation81_spill] sm:$0xff] }
0x1a7a   :  { %v848_v3 = vadd.f32 %v842_v8, %v818_v7  ;;  %v849_v8 = vadd.f32 %v843_v26, %v819_v19  ;;  %v4551_v7 = vld [vmem:[#allocation64_spill] sm:$0xff]  ;;  %v963_v19 = vsel %vm961_vm12, %v3398_v42, %v4558_v0 }
0x1a7b   :  { %v844_v36 = vsel %vm841_vm6, %v4546_v33, %v4551_v7  ;;  %v820_v30 = vadd.f32 %v814_v4, %v790_v32  ;;  %vm1291_vm6 = vcmask 433152  }
0x1a7c   :  { %v878_v9 = vadd.f32 %v872_v5, %v848_v3  ;;  %v879_v14 = vadd.f32 %v873_v16, %v849_v8  ;;  %v4554_v5 = vld [vmem:[#allocation67_spill] sm:$0xff]  ;;  %v933_v3 = vsel %vm931_vm11, %v3385_v41, %v4555_v10  ;;  %v4560_v16 = vld [vmem:[#allocation73_spill] sm:$0xff] }
0x1a7d   :  { %v874_v34 = vsel %vm871_vm9, %v4549_v31, %v4554_v5  ;;  %v850_v27 = vadd.f32 %v844_v36, %v820_v30  ;;  %v934_v35 = vsel %vm931_vm11, %v4555_v10, %v4560_v16  ;;  %v4562_v8 = vld [vmem:[#allocation83_spill] sm:$0xff]  ;;  %v4565_v30 = vld [vmem:[#allocation86_spill] sm:$0xff]  ;;  %vm1321_vm9 = vcmask 424960  }
0x1a7e   :  { %v908_v23 = vadd.f32 %v902_v18, %v878_v9  ;;  %v909_v33 = vadd.f32 %v903_v22, %v879_v14  ;;  %v904_v18 = vsel %vm901_vm10, %v4552_v28, %v4557_v24  ;;  %v4559_v9 = vld [vmem:[#allocation80_spill] sm:$0xff]  ;;  %v1052_v42 = vsel %vm1051_vm13, %v4562_v8, %v3437_v45  ;;  %v4569_v24 = vld [vmem:[#allocation82_spill] sm:$0xff] }
0x1a7f   :  { %v1022_v41 = vsel %vm1021_vm2, %v4559_v9, %v3424_v44  ;;  %v880_v12 = vadd.f32 %v874_v34, %v850_v27  ;;  %v4563_v28 = vld [vmem:[#allocation76_spill] sm:$0xff]  ;;  %v4566_v34 = vld [vmem:[#allocation79_spill] sm:$0xff]  ;;  %vm1351_vm10 = vcmask 293888   ;;  %vm1381_vm11 = vcmask 285696  }
0x1a80   :  { %v938_v15 = vadd.f32 %v932_v11, %v908_v23  ;;  %v939_v4 = vadd.f32 %v933_v3, %v909_v33  ;;  %v4561_v11 = vld [vmem:[#allocation78_spill] sm:$0xff]  ;;  %v964_v22 = vsel %vm961_vm12, %v4558_v0, %v4563_v28  ;;  %v4567_v3 = vld [vmem:[#allocation84_spill] sm:$0xff]  ;;  %v4570_v0 = vld [vmem:[#allocation87_spill] sm:$0xff]  ;;  %vm1411_vm12 = vcmask 277504  }
0x1a81   :  { %v993_v32 = vsel %vm991_vm5, %v3411_v43, %v4561_v11  ;;  %v910_v23 = vadd.f32 %v904_v18, %v880_v12  ;;  %v1082_v43 = vsel %vm1081_vm15, %v4565_v30, %v3450_v46  ;;  %v994_v10 = vsel %vm991_vm5, %v4561_v11, %v4566_v34  ;;  %v4571_v9 = vld [vmem:[#allocation92_spill] sm:$0xff]  ;;  %v4576_v28 = vld [vmem:[#allocation93_spill] sm:$0xff] }
0x1a82   :  { %v968_v26 = vadd.f32 %v962_v39, %v938_v15  ;;  %v969_v7 = vadd.f32 %v963_v19, %v939_v4  ;;  %v1023_v39 = vsel %vm1021_vm2, %v3424_v44, %v4564_v37  ;;  %v1053_v6 = vsel %vm1051_vm13, %v3437_v45, %v4567_v3 }
0x1a83   :  { %v940_v14 = vadd.f32 %v934_v35, %v910_v23  ;;  %v1024_v18 = vsel %vm1021_vm2, %v4564_v37, %v4569_v24  ;;  %v1083_v19 = vsel %vm1081_vm15, %v3450_v46, %v4570_v0  ;;  %v1142_v45 = vsel %vm1141_vm0, %v4571_v9, %v3476_v48  ;;  %v4573_v35 = vld [vmem:[#allocation90_spill] sm:$0xff]  ;;  %v4583_v24 = vld [vmem:[#allocation104_spill] sm:$0xff]  ;;  %v4584_v9 = vld [vmem:[#allocation97_spill] sm:$0xff] }
0x1a84   :  { %v998_v31 = vadd.f32 %v992_v40, %v968_v26  ;;  %v999_v15 = vadd.f32 %v993_v32, %v969_v7  ;;  %v4568_v40 = vld [vmem:[#allocation89_spill] sm:$0xff]  ;;  %v1113_v11 = vsel %vm1111_vm1, %v3463_v47, %v4573_v35  ;;  %v4574_v32 = vld [vmem:[#allocation95_spill] sm:$0xff]  ;;  %v4575_v7 = vld [vmem:[#allocation88_spill] sm:$0xff]  ;;  %vm1441_vm5 = vcmask 269312  }
0x1a85   :  { %v1112_v44 = vsel %vm1111_vm1, %v4568_v40, %v3463_v47  ;;  %v970_v27 = vadd.f32 %v964_v22, %v940_v14  ;;  %v1172_v46 = vsel %vm1171_vm7, %v4574_v32, %v3489_v49  ;;  %v1143_v22 = vsel %vm1141_vm0, %v3476_v48, %v4576_v28  ;;  %v4577_v37 = vld [vmem:[#allocation98_spill] sm:$0xff]  ;;  %v4578_v14 = vld [vmem:[#allocation91_spill] sm:$0xff] }
0x1a86   :  { %v1028_v36 = vadd.f32 %v1022_v41, %v998_v31  ;;  %v1029_v33 = vadd.f32 %v1023_v39, %v999_v15  ;;  %v4572_v31 = vld [vmem:[#allocation85_spill] sm:$0xff]  ;;  %v1202_v47 = vsel %vm1201_vm8, %v4577_v37, %v3502_v50  ;;  %v1114_v15 = vsel %vm1111_vm1, %v4573_v35, %v4578_v14  ;;  %v4591_v37 = vld [vmem:[#allocation108_spill] sm:$0xff] }
0x1a87   :  { %v1000_v41 = vadd.f32 %v994_v10, %v970_v27  ;;  %v1054_v16 = vsel %vm1051_vm13, %v4567_v3, %v4572_v31  ;;  %v4580_v10 = vld [vmem:[#allocation101_spill] sm:$0xff]  ;;  %vm1471_vm2 = vcmask 261120   ;;  %vm1501_vm13 = vcmask 252928  }
0x1a88   :  { %v1058_v5 = vadd.f32 %v1052_v42, %v1028_v36  ;;  %v1059_v12 = vadd.f32 %v1053_v6, %v1029_v33  ;;  %v1084_v36 = vsel %vm1081_vm15, %v4570_v0, %v4575_v7  ;;  %v1232_v48 = vsel %vm1231_vm14, %v4580_v10, %v3515_v51  ;;  %v4582_v33 = vld [vmem:[#allocation99_spill] sm:$0xff] }
0x1a89   :  { %v1030_v8 = vadd.f32 %v1024_v18, %v1000_v41  ;;  %v4585_v41 = vld [vmem:[#allocation102_spill] sm:$0xff]  ;;  %vm1531_vm15 = vcmask 244736   ;;  %vm1561_vm1 = vcmask 236544  }
0x1a8a   :  { %v1088_v26 = vadd.f32 %v1082_v43, %v1058_v5  ;;  %v1089_v42 = vadd.f32 %v1083_v19, %v1059_v12  ;;  %v4579_v5 = vld [vmem:[#allocation96_spill] sm:$0xff]  ;;  %v1233_v12 = vsel %vm1231_vm14, %v3515_v51, %v4585_v41 }
0x1a8b   :  { %v1060_v39 = vadd.f32 %v1054_v16, %v1030_v8  ;;  %v1173_v34 = vsel %vm1171_vm7, %v3489_v49, %v4579_v5  ;;  %v1262_v49 = vsel %vm1261_vm4, %v4583_v24, %v3528_v52  ;;  %v4598_v24 = vld [vmem:[#allocation119_spill] sm:$0xff] }
0x1a8c   :  { %v1118_v4 = vadd.f32 %v1112_v44, %v1088_v26  ;;  %v1119_v30 = vadd.f32 %v1113_v11, %v1089_v42  ;;  %v4581_v44 = vld [vmem:[#allocation94_spill] sm:$0xff]  ;;  %v1203_v26 = vsel %vm1201_vm8, %v3502_v50, %v4582_v33  ;;  %v4587_v11 = vld [vmem:[#allocation100_spill] sm:$0xff] }
0x1a8d   :  { %v1090_v3 = vadd.f32 %v1084_v36, %v1060_v39  ;;  %v1144_v27 = vsel %vm1141_vm0, %v4576_v28, %v4581_v44  ;;  %v1204_v32 = vsel %vm1201_vm8, %v4582_v33, %v4587_v11  ;;  %v4589_v42 = vld [vmem:[#allocation110_spill] sm:$0xff]  ;;  %v4590_v28 = vld [vmem:[#allocation103_spill] sm:$0xff]  ;;  %v4592_v39 = vld [vmem:[#allocation113_spill] sm:$0xff]  ;;  %vm1591_vm0 = vcmask 105472  }
0x1a8e   :  { %v1148_v23 = vadd.f32 %v1142_v45, %v1118_v4  ;;  %v1149_v6 = vadd.f32 %v1143_v22, %v1119_v30  ;;  %v1174_v45 = vsel %vm1171_vm7, %v4579_v5, %v4584_v9  ;;  %v4586_v4 = vld [vmem:[#allocation107_spill] sm:$0xff]  ;;  %v1322_v51 = vsel %vm1321_vm9, %v4589_v42, %v3554_v54  ;;  %v4596_v44 = vld [vmem:[#allocation109_spill] sm:$0xff]  ;;  %v4597_v33 = vld [vmem:[#allocation114_spill] sm:$0xff] }
0x1a8f   :  { %v1120_v18 = vadd.f32 %v1114_v15, %v1090_v3  ;;  %v1292_v50 = vsel %vm1291_vm6, %v4586_v4, %v3541_v53  ;;  %v1234_v22 = vsel %vm1231_vm14, %v4585_v41, %v4590_v28  ;;  %v4593_v15 = vld [vmem:[#allocation106_spill] sm:$0xff]  ;;  %v4603_v11 = vld [vmem:[#allocation120_spill] sm:$0xff]  ;;  %vm1621_vm7 = vcmask 97280  }
0x1a90   :  { %v1178_v43 = vadd.f32 %v1172_v46, %v1148_v23  ;;  %v1179_v0 = vadd.f32 %v1173_v34, %v1149_v6  ;;  %v4588_v46 = vld [vmem:[#allocation105_spill] sm:$0xff]  ;;  %v4594_v34 = vld [vmem:[#allocation111_spill] sm:$0xff]  ;;  %vm1651_vm8 = vcmask 89088   ;;  %vm1711_vm14 = vcmask 72704  }
0x1a91   :  { %v1150_v31 = vadd.f32 %v1144_v27, %v1120_v18  ;;  %v1263_v8 = vsel %vm1261_vm4, %v3528_v52, %v4588_v46  ;;  %v1352_v52 = vsel %vm1351_vm10, %v4592_v39, %v3567_v55  ;;  %v1264_v5 = vsel %vm1261_vm4, %v4588_v46, %v4593_v15  ;;  %v4604_v46 = vld [vmem:[#allocation125_spill] sm:$0xff]  ;;  %v4610_v15 = vld [vmem:[#allocation131_spill] sm:$0xff] }
0x1a92   :  { %v1208_v40 = vadd.f32 %v1202_v47, %v1178_v43  ;;  %v1209_v16 = vadd.f32 %v1203_v26, %v1179_v0  ;;  %v1293_v47 = vsel %vm1291_vm6, %v3541_v53, %v4591_v37  ;;  %v1323_v10 = vsel %vm1321_vm9, %v3554_v54, %v4594_v34 }
0x1a93   :  { %v1180_v23 = vadd.f32 %v1174_v45, %v1150_v31  ;;  %v1294_v27 = vsel %vm1291_vm6, %v4591_v37, %v4596_v44  ;;  %v1353_v26 = vsel %vm1351_vm10, %v3567_v55, %v4597_v33  ;;  %v1412_v54 = vsel %vm1411_vm12, %v4598_v24, %v3593_v57  ;;  %v4600_v45 = vld [vmem:[#allocation117_spill] sm:$0xff] }
0x1a94   :  { %v1238_v19 = vadd.f32 %v1232_v48, %v1208_v40  ;;  %v1239_v7 = vadd.f32 %v1233_v12, %v1209_v16  ;;  %v4595_v48 = vld [vmem:[#allocation116_spill] sm:$0xff]  ;;  %v1383_v41 = vsel %vm1381_vm11, %v3580_v56, %v4600_v45  ;;  %v4601_v12 = vld [vmem:[#allocation122_spill] sm:$0xff]  ;;  %v4602_v16 = vld [vmem:[#allocation115_spill] sm:$0xff]  ;;  %vm1771_vm4 = vcmask 56320  }
0x1a95   :  { %v1210_v30 = vadd.f32 %v1204_v32, %v1180_v23  ;;  %v1382_v53 = vsel %vm1381_vm11, %v4595_v48, %v3580_v56  ;;  %v1442_v55 = vsel %vm1441_vm5, %v4601_v12, %v3606_v58  ;;  %v1413_v32 = vsel %vm1411_vm12, %v3593_v57, %v4603_v11  ;;  %v4605_v23 = vld [vmem:[#allocation118_spill] sm:$0xff]  ;;  %v4611_v48 = vld [vmem:[#allocation124_spill] sm:$0xff]  ;;  %v4618_v12 = vld [vmem:[#allocation135_spill] sm:$0xff] }
0x1a96   :  { %v1268_v35 = vadd.f32 %v1262_v49, %v1238_v19  ;;  %v1269_v43 = vadd.f32 %v1263_v8, %v1239_v7  ;;  %v4599_v19 = vld [vmem:[#allocation112_spill] sm:$0xff]  ;;  %v1472_v56 = vsel %vm1471_vm2, %v4604_v46, %v3619_v59  ;;  %v1384_v7 = vsel %vm1381_vm11, %v4600_v45, %v4605_v23  ;;  %v4617_v45 = vld [vmem:[#allocation130_spill] sm:$0xff] }
0x1a97   :  { %v1240_v3 = vadd.f32 %v1234_v22, %v1210_v30  ;;  %v1324_v9 = vsel %vm1321_vm9, %v4594_v34, %v4599_v19  ;;  %v4607_v22 = vld [vmem:[#allocation128_spill] sm:$0xff]  ;;  %vm1801_vm6 = vcmask 48128   ;;  %vm1835_vm9 = vcmask 965632  }
0x1a98   :  { %v1298_v36 = vadd.f32 %v1292_v50, %v1268_v35  ;;  %v1299_v6 = vadd.f32 %v1293_v47, %v1269_v43  ;;  %v1354_v35 = vsel %vm1351_vm10, %v4597_v33, %v4602_v16  ;;  %v1502_v57 = vsel %vm1501_vm13, %v4607_v22, %v3632_v60  ;;  %v4609_v43 = vld [vmem:[#allocation126_spill] sm:$0xff]  ;;  %v4625_v22 = vld [vmem:[#allocation145_spill] sm:$0xff] }
0x1a99   :  { %v1270_v49 = vadd.f32 %v1264_v5, %v1240_v3  ;;  %v4612_v3 = vld [vmem:[#allocation129_spill] sm:$0xff]  ;;  %vm1865_vm10 = vcmask 957440   ;;  %vm1895_vm11 = vcmask 949248  }
0x1a9a   :  { %v1328_v14 = vadd.f32 %v1322_v51, %v1298_v36  ;;  %v1329_v18 = vadd.f32 %v1323_v10, %v1299_v6  ;;  %v4606_v36 = vld [vmem:[#allocation123_spill] sm:$0xff]  ;;  %v1503_v6 = vsel %vm1501_vm13, %v3632_v60, %v4612_v3 }
0x1a9b   :  { %v1300_v4 = vadd.f32 %v1294_v27, %v1270_v49  ;;  %v1443_v28 = vsel %vm1441_vm5, %v3606_v58, %v4606_v36  ;;  %v1532_v58 = vsel %vm1531_vm15, %v4610_v15, %v3645_v61 }
0x1a9c   :  { %v1358_v40 = vadd.f32 %v1352_v52, %v1328_v14  ;;  %v1359_v50 = vadd.f32 %v1353_v26, %v1329_v18  ;;  %v4608_v52 = vld [vmem:[#allocation121_spill] sm:$0xff]  ;;  %v1473_v14 = vsel %vm1471_vm2, %v3619_v59, %v4609_v43  ;;  %v4614_v26 = vld [vmem:[#allocation127_spill] sm:$0xff] }
0x1a9d   :  { %v1330_v8 = vadd.f32 %v1324_v9, %v1300_v4  ;;  %v1414_v30 = vsel %vm1411_vm12, %v4603_v11, %v4608_v52  ;;  %v1474_v24 = vsel %vm1471_vm2, %v4609_v43, %v4614_v26  ;;  %v4616_v18 = vld [vmem:[#allocation137_spill] sm:$0xff]  ;;  %v4619_v4 = vld [vmem:[#allocation140_spill] sm:$0xff]  ;;  %vm1925_vm12 = vcmask 941056  }
0x1a9e   :  { %v1388_v0 = vadd.f32 %v1382_v53, %v1358_v40  ;;  %v1389_v42 = vadd.f32 %v1383_v41, %v1359_v50  ;;  %v1444_v53 = vsel %vm1441_vm5, %v4606_v36, %v4611_v48  ;;  %v4613_v40 = vld [vmem:[#allocation134_spill] sm:$0xff]  ;;  %v1592_v60 = vsel %vm1591_vm0, %v4616_v18, %v3671_v63 }
0x1a9f   :  { %v1360_v37 = vadd.f32 %v1354_v35, %v1330_v8  ;;  %v1562_v59 = vsel %vm1561_vm1, %v4613_v40, %v3658_v62  ;;  %v1504_v41 = vsel %vm1501_vm13, %v4612_v3, %v4617_v45  ;;  %v4620_v35 = vld [vmem:[#allocation133_spill] sm:$0xff]  ;;  %vm1955_vm5 = vcmask 932864  }
0x1aa0   :  { %v1418_v31 = vadd.f32 %v1412_v54, %v1388_v0  ;;  %v1419_v47 = vadd.f32 %v1413_v32, %v1389_v42  ;;  %v4615_v54 = vld [vmem:[#allocation132_spill] sm:$0xff]  ;;  %v4621_v32 = vld [vmem:[#allocation138_spill] sm:$0xff]  ;;  %vm1985_vm2 = vcmask 924672   ;;  %vm2015_vm13 = vcmask 916480  }
0x1aa1   :  { %v1390_v5 = vadd.f32 %v1384_v7, %v1360_v37  ;;  %v1533_v49 = vsel %vm1531_vm15, %v3645_v61, %v4615_v54  ;;  %v1622_v61 = vsel %vm1621_vm7, %v4619_v4, %v3684_v1  ;;  %v1534_v11 = vsel %vm1531_vm15, %v4615_v54, %v4620_v35  ;;  %v4623_v7 = vld [vmem:[#allocation141_spill] sm:$0xff]  ;;  %v4632_v4 = vld [vmem:[#allocation23_spill] sm:$0xff] }
0x1aa2   :  { %v1448_v51 = vadd.f32 %v1442_v55, %v1418_v31  ;;  %v1449_v34 = vadd.f32 %v1443_v28, %v1419_v47  ;;  %v1563_v55 = vsel %vm1561_vm1, %v3658_v62, %v4618_v12  ;;  %v1593_v46 = vsel %vm1591_vm0, %v3671_v63, %v4621_v32  ;;  %v4624_v28 = vld [vmem:[#allocation146_spill] sm:$0xff] }
0x1aa3   :  { %v1420_v44 = vadd.f32 %v1414_v30, %v1390_v5  ;;  %v1623_v36 = vsel %vm1621_vm7, %v3684_v1, %v4623_v7  ;;  %v1682_v63 = vsel %vm1681_vm3, %v4625_v22, %v4624_v28  ;;  %v4627_v30 = vld [vmem:[#allocation143_spill] sm:$0xff]  ;;  %v1712_v1 = vsel %vm1711_vm14, %v3724_v13, %v3726_v17  ;;  %v4628_v5 = vld [vmem:[#allocation142_spill] sm:$0xff] }
0x1aa4   :  { %v1478_v39 = vadd.f32 %v1472_v56, %v1448_v51  ;;  %v1479_v27 = vadd.f32 %v1473_v14, %v1449_v34  ;;  %v1652_v56 = vsel %vm1651_vm8, %v3695_v21, %v3697_v2  ;;  %v4622_v51 = vld [vmem:[#allocation136_spill] sm:$0xff]  ;;  %v1653_v43 = vsel %vm1651_vm8, %v3697_v2, %v4627_v30 }
0x1aa5   :  { %v1450_v0 = vadd.f32 %v1444_v53, %v1420_v44  ;;  %v1564_v23 = vsel %vm1561_vm1, %v4618_v12, %v4622_v51  ;;  %vm1741_vm3 = vcmask 64512   ;;  %v1624_v34 = vsel %vm1621_vm7, %v4623_v7, %v4628_v5  ;;  %v4630_v44 = vld [vmem:[#allocation147_spill] sm:$0xff] }
0x1aa6   :  { %v1508_v10 = vadd.f32 %v1502_v57, %v1478_v39  ;;  %v1509_v19 = vadd.f32 %v1503_v6, %v1479_v27  ;;  %v4626_v39 = vld [vmem:[#allocation139_spill] sm:$0xff]  ;;  %v4629_v6 = vld [vmem:[#allocation144_spill] sm:$0xff]  ;;  %v1713_v13 = vsel %vm1711_vm14, %v3726_v17, %v3728_v38  ;;  %vm2045_vm15 = vcmask 908288  }
0x1aa7   :  { %v1480_v50 = vadd.f32 %v1474_v24, %v1450_v0  ;;  %v1594_v52 = vsel %vm1591_vm0, %v4621_v32, %v4626_v39  ;;  %v1654_v2 = vsel %vm1651_vm8, %v4627_v30, %v4629_v6  ;;  %vm2075_vm1 = vcmask 777216  }
0x1aa8   :  { %v1538_v33 = vadd.f32 %v1532_v58, %v1508_v10  ;;  %v1539_v31 = vadd.f32 %v1533_v49, %v1509_v19  ;;  %v1714_v49 = vsel %vm1711_vm14, %v3728_v38, %v3730_v20  ;;  %v4633_v38 = vld [vmem:[#allocation24_spill] sm:$0xff]  ;;  %vm2105_vm0 = vcmask 769024  }
0x1aa9   :  { %v1510_v62 = vadd.f32 %v1504_v41, %v1480_v50  ;;  %vm2135_vm7 = vcmask 760832   ;;  %vm2165_vm8 = vcmask 752640   ;;  %vm2195_vm14 = vcmask 744448  }
0x1aaa   :  { %v1568_v9 = vadd.f32 %v1562_v59, %v1538_v33  ;;  %v1569_v8 = vadd.f32 %v1563_v55, %v1539_v31  ;;  %v4634_v31 = vld [vmem:[#allocation4_spill] sm:$0xff] }
0x1aab   :  { %v1540_v57 = vadd.f32 %v1534_v11, %v1510_v62 }
0x1aac   :  { %v1598_v16 = vadd.f32 %v1592_v60, %v1568_v9  ;;  %v1599_v37 = vadd.f32 %v1593_v46, %v1569_v8  ;;  %v4631_v60 = vld [vmem:[#allocation148_spill] sm:$0xff] }
0x1aad   :  { %v1570_v14 = vadd.f32 %v1564_v23, %v1540_v57 }
0x1aae   :  { %v1628_v42 = vadd.f32 %v1622_v61, %v1598_v16  ;;  %v1629_v15 = vadd.f32 %v1623_v36, %v1599_v37 }
0x1aaf   :  { %v1600_v10 = vadd.f32 %v1594_v52, %v1570_v14 }
0x1ab0   :  { %v1658_v47 = vadd.f32 %v1652_v56, %v1628_v42  ;;  %v1659_v48 = vadd.f32 %v1653_v43, %v1629_v15 }
0x1ab1   :  { %v1630_v59 = vadd.f32 %v1624_v34, %v1600_v10  ;;  %v4636_v34 = vld [vmem:[#allocation22_spill] sm:$0xff]  ;;  %v4637_v10 = vld [vmem:[#allocation21_spill] sm:$0xff] }
0x1ab2   :  { %v1688_v58 = vadd.f32 %v1682_v63, %v1658_v47  ;;  %v1689_v27 = vadd.f32 %v4630_v44, %v1659_v48  ;;  %v4635_v63 = vld [vmem:[#allocation5_spill] sm:$0xff]  ;;  %v4153_v48 = vadd.f32 %v4637_v10, %v4636_v34 }
0x1ab3   :  { %v1660_v26 = vadd.f32 %v1654_v2, %v1630_v59 }
0x1ab4   :  { %v1718_v53 = vadd.f32 %v1712_v1, %v1688_v58  ;;  %v1719_v24 = vadd.f32 %v1713_v13, %v1689_v27 }
0x1ab5   :  { %v1690_v0 = vadd.f32 %v4631_v60, %v1660_v26 }
0x1ab7   :  { %v1720_v9 = vadd.f32 %v1714_v49, %v1690_v0 }
0x1aba   :  { %v1734_v21 = vpop.permute.xlu0 %1733 }
0x1abe   :  { %v1736_v3 = vpop.permute.xlu0 %1735 }
0x1abf   :  { %v1742_v40 = vsel %vm1741_vm3, %v1734_v21, %v1736_v3 }
0x1ac0   :  { %v1748_v33 = vadd.f32 %v1742_v40, %v1718_v53 }
0x1ac2   :  { %v1738_v54 = vpop.permute.xlu0 %1737 }
0x1ac3   :  { %v1743_v18 = vsel %vm1741_vm3, %v1736_v3, %v1738_v54  ;;  %v4638_v3 = vld [vmem:[#allocation6_spill] sm:$0xff] }
0x1ac4   :  { %v1749_v19 = vadd.f32 %v1743_v18, %v1719_v24 }
0x1ac6   :  { %v1740_v17 = vpop.permute.xlu0 %1739 }
0x1ac7   :  { %v1744_v45 = vsel %vm1741_vm3, %v1738_v54, %v1740_v17  ;;  %vm2225_vm3 = vcmask 736256  }
0x1ac8   :  { %v1750_v41 = vadd.f32 %v1744_v45, %v1720_v9 }
0x1b00   :  { %v1754_v12 = vpop.xlane.xlu0 %1753 }
0x1b01   :  { %v1755_v55 = vmul.f32 %v1754_v12, %v3156_v29  ;;  %v1756_v61 = vmul.f32 %v1754_v12, %v4632_v4  ;;  %v1757_v20 = vmul.f32 %v1754_v12, %v3165_v25  ;;  %v1758_v50 = vmul.f32 %v1754_v12, %v4633_v38 }
0x1b03   :  { %1763 = vrot.lane.b32.xlu1 %v1755_v55, %s2541_s21 }
0x1b07   :  { %1765 = vrot.lane.b32.xlu1 %v1756_v61, %s2541_s21 }
0x1b0b   :  { %1767 = vrot.lane.b32.xlu1 %v1757_v20, %s2541_s21 }
0x1b0f   :  { %1769 = vrot.lane.b32.xlu1 %v1758_v50, %s2541_s21 }
0x1b33   :  { %1783 = vadd.xlane.f32.xlu1 %v4634_v31 }
0x1b75   :  { %v1764_v16 = vpop.permute.xlu1 %1763 }
0x1b79   :  { %v1766_v35 = vpop.permute.xlu1 %1765 }
0x1b7a   :  { %v1772_v11 = vsel %vm1771_vm4, %v1764_v16, %v1766_v35 }
0x1b7b   :  { %v1778_v32 = vadd.f32 %v1772_v11, %v1748_v33 }
0x1b7d   :  { %v1768_v46 = vpop.permute.xlu1 %1767 }
0x1b7e   :  { %v1773_v56 = vsel %vm1771_vm4, %v1766_v35, %v1768_v46 }
0x1b7f   :  { %v1779_v62 = vadd.f32 %v1773_v56, %v1749_v19  ;;  %v4639_v19 = vld [vmem:[#allocation7_spill] sm:$0xff]  ;;  %v4640_v56 = vld [vmem:[#allocation8_spill] sm:$0xff] }
0x1b81   :  { %v1770_v8 = vpop.permute.xlu1 %1769 }
0x1b82   :  { %v1774_v42 = vsel %vm1771_vm4, %v1768_v46, %v1770_v8  ;;  %vm2255_vm4 = vcmask 728064  }
0x1b83   :  { %v1780_v51 = vadd.f32 %v1774_v42, %v1750_v41 }
0x1bc0   :  { %v1784_v23 = vpop.xlane.xlu1 %1783 }
0x1bc1   :  { %v1785_v7 = vmul.f32 %v1784_v23, %v3156_v29  ;;  %v1786_v36 = vmul.f32 %v1784_v23, %v4632_v4  ;;  %v1787_v28 = vmul.f32 %v1784_v23, %v3165_v25  ;;  %v1788_v22 = vmul.f32 %v1784_v23, %v4633_v38 }
0x1bc3   :  { %1793 = vrot.lane.b32.xlu0 %v1785_v7, %s2542_s3 }
0x1bc7   :  { %1795 = vrot.lane.b32.xlu0 %v1786_v36, %s2542_s3 }
0x1bcb   :  { %1797 = vrot.lane.b32.xlu0 %v1787_v28, %s2542_s3 }
0x1bcf   :  { %1799 = vrot.lane.b32.xlu0 %v1788_v22, %s2542_s3 }
0x1bee   :  { %1813 = vadd.xlane.f32.xlu0 %v4635_v63 }
0x1c35   :  { %v1794_v57 = vpop.permute.xlu0 %1793 }
0x1c39   :  { %v1796_v37 = vpop.permute.xlu0 %1795 }
0x1c3a   :  { %v1802_v47 = vsel %vm1801_vm6, %v1794_v57, %v1796_v37 }
0x1c3b   :  { %v1808_v21 = vadd.f32 %v1802_v47, %v1778_v32 }
0x1c3d   :  { %v1798_v39 = vpop.permute.xlu0 %1797 }
0x1c3e   :  { %v1803_v29 = vsel %vm1801_vm6, %v1796_v37, %v1798_v39 }
0x1c3f   :  { %v1809_v52 = vadd.f32 %v1803_v29, %v1779_v62  ;;  %v4641_v29 = vld [vmem:[#allocation9_spill] sm:$0xff] }
0x1c41   :  { %v1800_v30 = vpop.permute.xlu0 %1799 }
0x1c42   :  { %v1804_v43 = vsel %vm1801_vm6, %v1798_v39, %v1800_v30  ;;  %vm2285_vm6 = vcmask 719872  }
0x1c43   :  { %v1810_v1 = vadd.f32 %v1804_v43, %v1780_v51 }
0x1c7b   :  { %v1814_v14 = vpop.xlane.xlu0 %1813 }
0x1c7c   :  { %v1819_v15 = vmul.f32 %v1814_v14, %v4632_v4  ;;  %v1820_v58 = vmul.f32 %v1814_v14, %v3165_v25  ;;  %v1821_v5 = vmul.f32 %v1814_v14, %v4633_v38  ;;  %v1822_v53 = vmul.f32 %v1814_v14, %v4153_v48 }
0x1c7e   :  { %1827 = vrot.lane.b32.xlu1 %v1819_v15, %s2543_s22 }
0x1c82   :  { %1829 = vrot.lane.b32.xlu1 %v1820_v58, %s2543_s22 }
0x1c86   :  { %1831 = vrot.lane.b32.xlu1 %v1821_v5, %s2543_s22 }
0x1c8a   :  { %1833 = vrot.lane.b32.xlu1 %v1822_v53, %s2543_s22 }
0x1cae   :  { %1847 = vadd.xlane.f32.xlu1 %v4638_v3 }
0x1cf0   :  { %v1828_v6 = vpop.permute.xlu1 %1827 }
0x1cf4   :  { %v1830_v2 = vpop.permute.xlu1 %1829 }
0x1cf5   :  { %v1836_v13 = vsel %vm1835_vm9, %v1828_v6, %v1830_v2 }
0x1cf6   :  { %v1842_v40 = vadd.f32 %v1836_v13, %v1808_v21 }
0x1cf8   :  { %v1832_v59 = vpop.permute.xlu1 %1831 }
0x1cf9   :  { %v1837_v44 = vsel %vm1835_vm9, %v1830_v2, %v1832_v59 }
0x1cfa   :  { %v1843_v27 = vadd.f32 %v1837_v44, %v1809_v52 }
0x1cfc   :  { %v1834_v33 = vpop.permute.xlu1 %1833 }
0x1cfd   :  { %v1838_v26 = vsel %vm1835_vm9, %v1832_v59, %v1834_v33 }
0x1cfe   :  { %v1844_v24 = vadd.f32 %v1838_v26, %v1810_v1 }
0x1d3b   :  { %v1848_v54 = vpop.xlane.xlu1 %1847 }
0x1d3c   :  { %v1849_v49 = vmul.f32 %v1848_v54, %v4632_v4  ;;  %v1850_v18 = vmul.f32 %v1848_v54, %v3165_v25  ;;  %v1851_v60 = vmul.f32 %v1848_v54, %v4633_v38  ;;  %v1852_v0 = vmul.f32 %v1848_v54, %v4153_v48 }
0x1d3e   :  { %1857 = vrot.lane.b32.xlu0 %v1849_v49, %s2544_s23 }
0x1d42   :  { %1859 = vrot.lane.b32.xlu0 %v1850_v18, %s2544_s23 }
0x1d46   :  { %1861 = vrot.lane.b32.xlu0 %v1851_v60, %s2544_s23 }
0x1d4a   :  { %1863 = vrot.lane.b32.xlu0 %v1852_v0, %s2544_s23 }
0x1d69   :  { %1877 = vadd.xlane.f32.xlu0 %v4639_v19 }
0x1db0   :  { %v1858_v9 = vpop.permute.xlu0 %1857 }
0x1db4   :  { %v1860_v17 = vpop.permute.xlu0 %1859 }
0x1db5   :  { %v1866_v45 = vsel %vm1865_vm10, %v1858_v9, %v1860_v17 }
0x1db6   :  { %v1872_v41 = vadd.f32 %v1866_v45, %v1842_v40  ;;  %v4642_v40 = vld [vmem:[#allocation10_spill] sm:$0xff] }
0x1db8   :  { %v1862_v12 = vpop.permute.xlu0 %1861 }
0x1db9   :  { %v1867_v55 = vsel %vm1865_vm10, %v1860_v17, %v1862_v12 }
0x1dba   :  { %v1873_v61 = vadd.f32 %v1867_v55, %v1843_v27 }
0x1dbc   :  { %v1864_v20 = vpop.permute.xlu0 %1863 }
0x1dbd   :  { %v1868_v50 = vsel %vm1865_vm10, %v1862_v12, %v1864_v20 }
0x1dbe   :  { %v1874_v31 = vadd.f32 %v1868_v50, %v1844_v24 }
0x1df6   :  { %v1878_v16 = vpop.xlane.xlu0 %1877 }
0x1df7   :  { %v1879_v35 = vmul.f32 %v1878_v16, %v4632_v4  ;;  %v1880_v11 = vmul.f32 %v1878_v16, %v3165_v25  ;;  %v1881_v32 = vmul.f32 %v1878_v16, %v4633_v38  ;;  %v1882_v46 = vmul.f32 %v1878_v16, %v4153_v48 }
0x1df9   :  { %1887 = vrot.lane.b32.xlu1 %v1879_v35, %s2545_s24 }
0x1dfd   :  { %1889 = vrot.lane.b32.xlu1 %v1880_v11, %s2545_s24 }
0x1e01   :  { %1891 = vrot.lane.b32.xlu1 %v1881_v32, %s2545_s24 }
0x1e05   :  { %1893 = vrot.lane.b32.xlu1 %v1882_v46, %s2545_s24 }
0x1e29   :  { %1907 = vadd.xlane.f32.xlu1 %v4640_v56 }
0x1e6b   :  { %v1888_v62 = vpop.permute.xlu1 %1887 }
0x1e6f   :  { %v1890_v8 = vpop.permute.xlu1 %1889 }
0x1e70   :  { %v1896_v42 = vsel %vm1895_vm11, %v1888_v62, %v1890_v8 }
0x1e71   :  { %v1902_v51 = vadd.f32 %v1896_v42, %v1872_v41  ;;  %v4643_v41 = vld [vmem:[#allocation11_spill] sm:$0xff] }
0x1e73   :  { %v1892_v23 = vpop.permute.xlu1 %1891 }
0x1e74   :  { %v1897_v7 = vsel %vm1895_vm11, %v1890_v8, %v1892_v23 }
0x1e75   :  { %v1903_v36 = vadd.f32 %v1897_v7, %v1873_v61 }
0x1e77   :  { %v1894_v28 = vpop.permute.xlu1 %1893 }
0x1e78   :  { %v1898_v22 = vsel %vm1895_vm11, %v1892_v23, %v1894_v28 }
0x1e79   :  { %v1904_v63 = vadd.f32 %v1898_v22, %v1874_v31 }
0x1eb6   :  { %v1908_v57 = vpop.xlane.xlu1 %1907 }
0x1eb7   :  { %v1909_v37 = vmul.f32 %v1908_v57, %v4632_v4  ;;  %v1910_v47 = vmul.f32 %v1908_v57, %v3165_v25  ;;  %v1911_v21 = vmul.f32 %v1908_v57, %v4633_v38  ;;  %v1912_v39 = vmul.f32 %v1908_v57, %v4153_v48 }
0x1eb9   :  { %1917 = vrot.lane.b32.xlu0 %v1909_v37, %s2546_s25 }
0x1ebd   :  { %1919 = vrot.lane.b32.xlu0 %v1910_v47, %s2546_s25 }
0x1ec1   :  { %1921 = vrot.lane.b32.xlu0 %v1911_v21, %s2546_s25 }
0x1ec5   :  { %1923 = vrot.lane.b32.xlu0 %v1912_v39, %s2546_s25 }
0x1ee4   :  { %1937 = vadd.xlane.f32.xlu0 %v4641_v29 }
0x1f2b   :  { %v1918_v52 = vpop.permute.xlu0 %1917 }
0x1f2f   :  { %v1920_v30 = vpop.permute.xlu0 %1919 }
0x1f30   :  { %v1926_v43 = vsel %vm1925_vm12, %v1918_v52, %v1920_v30 }
0x1f31   :  { %v1932_v1 = vadd.f32 %v1926_v43, %v1902_v51  ;;  %v4644_v51 = vld [vmem:[#allocation12_spill] sm:$0xff] }
0x1f33   :  { %v1922_v14 = vpop.permute.xlu0 %1921 }
0x1f34   :  { %v1927_v15 = vsel %vm1925_vm12, %v1920_v30, %v1922_v14 }
0x1f35   :  { %v1933_v58 = vadd.f32 %v1927_v15, %v1903_v36 }
0x1f37   :  { %v1924_v5 = vpop.permute.xlu0 %1923 }
0x1f38   :  { %v1928_v34 = vsel %vm1925_vm12, %v1922_v14, %v1924_v5 }
0x1f39   :  { %v1934_v10 = vadd.f32 %v1928_v34, %v1904_v63 }
0x1f71   :  { %v1938_v53 = vpop.xlane.xlu0 %1937 }
0x1f72   :  { %v1939_v3 = vmul.f32 %v1938_v53, %v4632_v4  ;;  %v1940_v6 = vmul.f32 %v1938_v53, %v3165_v25  ;;  %v1941_v2 = vmul.f32 %v1938_v53, %v4633_v38  ;;  %v1942_v13 = vmul.f32 %v1938_v53, %v4153_v48 }
0x1f74   :  { %1947 = vrot.lane.b32.xlu1 %v1939_v3, %s2547_s0 }
0x1f78   :  { %1949 = vrot.lane.b32.xlu1 %v1940_v6, %s2547_s0 }
0x1f7c   :  { %1951 = vrot.lane.b32.xlu1 %v1941_v2, %s2547_s0 }
0x1f80   :  { %1953 = vrot.lane.b32.xlu1 %v1942_v13, %s2547_s0 }
0x1fa4   :  { %1967 = vadd.xlane.f32.xlu1 %v4642_v40 }
0x1fe6   :  { %v1948_v59 = vpop.permute.xlu1 %1947 }
0x1fea   :  { %v1950_v44 = vpop.permute.xlu1 %1949 }
0x1feb   :  { %v1956_v27 = vsel %vm1955_vm5, %v1948_v59, %v1950_v44 }
0x1fec   :  { %v1962_v33 = vadd.f32 %v1956_v27, %v1932_v1  ;;  %v4645_v1 = vld [vmem:[#allocation13_spill] sm:$0xff] }
0x1fee   :  { %v1952_v26 = vpop.permute.xlu1 %1951 }
0x1fef   :  { %v1957_v24 = vsel %vm1955_vm5, %v1950_v44, %v1952_v26 }
0x1ff0   :  { %v1963_v54 = vadd.f32 %v1957_v24, %v1933_v58 }
0x1ff2   :  { %v1954_v49 = vpop.permute.xlu1 %1953 }
0x1ff3   :  { %v1958_v18 = vsel %vm1955_vm5, %v1952_v26, %v1954_v49 }
0x1ff4   :  { %v1964_v60 = vadd.f32 %v1958_v18, %v1934_v10 }
0x2031   :  { %v1968_v0 = vpop.xlane.xlu1 %1967 }
0x2032   :  { %v1969_v19 = vmul.f32 %v1968_v0, %v4632_v4  ;;  %v1970_v9 = vmul.f32 %v1968_v0, %v3165_v25  ;;  %v1971_v17 = vmul.f32 %v1968_v0, %v4633_v38  ;;  %v1972_v45 = vmul.f32 %v1968_v0, %v4153_v48 }
0x2034   :  { %1977 = vrot.lane.b32.xlu0 %v1969_v19, %s2548_s26 }
0x2038   :  { %1979 = vrot.lane.b32.xlu0 %v1970_v9, %s2548_s26 }
0x203c   :  { %1981 = vrot.lane.b32.xlu0 %v1971_v17, %s2548_s26 }
0x2040   :  { %1983 = vrot.lane.b32.xlu0 %v1972_v45, %s2548_s26 }
0x205f   :  { %1997 = vadd.xlane.f32.xlu0 %v4643_v41 }
0x20a6   :  { %v1978_v12 = vpop.permute.xlu0 %1977 }
0x20aa   :  { %v1980_v55 = vpop.permute.xlu0 %1979 }
0x20ab   :  { %v1986_v61 = vsel %vm1985_vm2, %v1978_v12, %v1980_v55 }
0x20ac   :  { %v1992_v20 = vadd.f32 %v1986_v61, %v1962_v33  ;;  %v4646_v33 = vld [vmem:[#allocation14_spill] sm:$0xff] }
0x20ae   :  { %v1982_v50 = vpop.permute.xlu0 %1981 }
0x20af   :  { %v1987_v31 = vsel %vm1985_vm2, %v1980_v55, %v1982_v50 }
0x20b0   :  { %v1993_v16 = vadd.f32 %v1987_v31, %v1963_v54 }
0x20b2   :  { %v1984_v35 = vpop.permute.xlu0 %1983 }
0x20b3   :  { %v1988_v11 = vsel %vm1985_vm2, %v1982_v50, %v1984_v35 }
0x20b4   :  { %v1994_v32 = vadd.f32 %v1988_v11, %v1964_v60 }
0x20ec   :  { %v1998_v46 = vpop.xlane.xlu0 %1997 }
0x20ed   :  { %v1999_v56 = vmul.f32 %v1998_v46, %v4632_v4  ;;  %v2000_v62 = vmul.f32 %v1998_v46, %v3165_v25  ;;  %v2001_v8 = vmul.f32 %v1998_v46, %v4633_v38  ;;  %v2002_v42 = vmul.f32 %v1998_v46, %v4153_v48 }
0x20ef   :  { %2007 = vrot.lane.b32.xlu1 %v1999_v56, %s2549_s27 }
0x20f3   :  { %2009 = vrot.lane.b32.xlu1 %v2000_v62, %s2549_s27 }
0x20f7   :  { %2011 = vrot.lane.b32.xlu1 %v2001_v8, %s2549_s27 }
0x20fb   :  { %2013 = vrot.lane.b32.xlu1 %v2002_v42, %s2549_s27 }
0x211f   :  { %2027 = vadd.xlane.f32.xlu1 %v4644_v51 }
0x2161   :  { %v2008_v23 = vpop.permute.xlu1 %2007 }
0x2165   :  { %v2010_v7 = vpop.permute.xlu1 %2009 }
0x2166   :  { %v2016_v36 = vsel %vm2015_vm13, %v2008_v23, %v2010_v7 }
0x2167   :  { %v2022_v28 = vadd.f32 %v2016_v36, %v1992_v20  ;;  %v4647_v20 = vld [vmem:[#allocation15_spill] sm:$0xff] }
0x2169   :  { %v2012_v22 = vpop.permute.xlu1 %2011 }
0x216a   :  { %v2017_v63 = vsel %vm2015_vm13, %v2010_v7, %v2012_v22 }
0x216b   :  { %v2023_v57 = vadd.f32 %v2017_v63, %v1993_v16  ;;  %v4650_v63 = vld [vmem:[#allocation18_spill] sm:$0xff] }
0x216d   :  { %v2014_v37 = vpop.permute.xlu1 %2013 }
0x216e   :  { %v2018_v47 = vsel %vm2015_vm13, %v2012_v22, %v2014_v37  ;;  %v4649_v22 = vld [vmem:[#allocation17_spill] sm:$0xff] }
0x216f   :  { %v2024_v21 = vadd.f32 %v2018_v47, %v1994_v32 }
0x21ac   :  { %v2028_v39 = vpop.xlane.xlu1 %2027 }
0x21ad   :  { %v2029_v29 = vmul.f32 %v2028_v39, %v4632_v4  ;;  %v2030_v52 = vmul.f32 %v2028_v39, %v3165_v25  ;;  %v2031_v30 = vmul.f32 %v2028_v39, %v4633_v38  ;;  %v2032_v43 = vmul.f32 %v2028_v39, %v4153_v48 }
0x21af   :  { %2037 = vrot.lane.b32.xlu0 %v2029_v29, %s2550_s28 }
0x21b3   :  { %2039 = vrot.lane.b32.xlu0 %v2030_v52, %s2550_s28 }
0x21b7   :  { %2041 = vrot.lane.b32.xlu0 %v2031_v30, %s2550_s28 }
0x21bb   :  { %2043 = vrot.lane.b32.xlu0 %v2032_v43, %s2550_s28 }
0x21da   :  { %2057 = vadd.xlane.f32.xlu0 %v4645_v1 }
0x2221   :  { %v2038_v14 = vpop.permute.xlu0 %2037 }
0x2225   :  { %v2040_v15 = vpop.permute.xlu0 %2039 }
0x2226   :  { %v2046_v58 = vsel %vm2045_vm15, %v2038_v14, %v2040_v15 }
0x2227   :  { %v2052_v5 = vadd.f32 %v2046_v58, %v2022_v28  ;;  %v4648_v28 = vld [vmem:[#allocation16_spill] sm:$0xff] }
0x2229   :  { %v2042_v34 = vpop.permute.xlu0 %2041 }
0x222a   :  { %v2047_v10 = vsel %vm2045_vm15, %v2040_v15, %v2042_v34 }
0x222b   :  { %v2053_v53 = vadd.f32 %v2047_v10, %v2023_v57  ;;  %v4651_v57 = vld [vmem:[#allocation19_spill] sm:$0xff]  ;;  %v4652_v10 = vld [vmem:[#allocation20_spill] sm:$0xff] }
0x222d   :  { %v2044_v3 = vpop.permute.xlu0 %2043 }
0x222e   :  { %v2048_v6 = vsel %vm2045_vm15, %v2042_v34, %v2044_v3 }
0x222f   :  { %v2054_v2 = vadd.f32 %v2048_v6, %v2024_v21 }
0x2267   :  { %v2058_v13 = vpop.xlane.xlu0 %2057 }
0x2268   :  { %v2059_v40 = vmul.f32 %v2058_v13, %v4632_v4  ;;  %v2060_v59 = vmul.f32 %v2058_v13, %v3165_v25  ;;  %v2061_v44 = vmul.f32 %v2058_v13, %v4633_v38  ;;  %v2062_v27 = vmul.f32 %v2058_v13, %v4153_v48 }
0x226a   :  { %2067 = vrot.lane.b32.xlu1 %v2059_v40, %s2551_s29 }
0x226e   :  { %2069 = vrot.lane.b32.xlu1 %v2060_v59, %s2551_s29 }
0x2272   :  { %2071 = vrot.lane.b32.xlu1 %v2061_v44, %s2551_s29 }
0x2276   :  { %2073 = vrot.lane.b32.xlu1 %v2062_v27, %s2551_s29 }
0x229a   :  { %2087 = vadd.xlane.f32.xlu1 %v4646_v33 }
0x22dc   :  { %v2068_v26 = vpop.permute.xlu1 %2067 }
0x22e0   :  { %v2070_v24 = vpop.permute.xlu1 %2069 }
0x22e1   :  { %v2076_v54 = vsel %vm2075_vm1, %v2068_v26, %v2070_v24 }
0x22e2   :  { %v2082_v49 = vadd.f32 %v2076_v54, %v2052_v5 }
0x22e4   :  { %v2072_v18 = vpop.permute.xlu1 %2071 }
0x22e5   :  { %v2077_v60 = vsel %vm2075_vm1, %v2070_v24, %v2072_v18 }
0x22e6   :  { %v2083_v0 = vadd.f32 %v2077_v60, %v2053_v53 }
0x22e8   :  { %v2074_v19 = vpop.permute.xlu1 %2073 }
0x22e9   :  { %v2078_v9 = vsel %vm2075_vm1, %v2072_v18, %v2074_v19 }
0x22ea   :  { %v2084_v17 = vadd.f32 %v2078_v9, %v2054_v2 }
0x2327   :  { %v2088_v45 = vpop.xlane.xlu1 %2087 }
0x2328   :  { %v2089_v41 = vmul.f32 %v2088_v45, %v4632_v4  ;;  %v2090_v12 = vmul.f32 %v2088_v45, %v3165_v25  ;;  %v2091_v55 = vmul.f32 %v2088_v45, %v4633_v38  ;;  %v2092_v61 = vmul.f32 %v2088_v45, %v4153_v48 }
0x232a   :  { %2097 = vrot.lane.b32.xlu0 %v2089_v41, %s2552_s30 }
0x232e   :  { %2099 = vrot.lane.b32.xlu0 %v2090_v12, %s2552_s30 }
0x2332   :  { %2101 = vrot.lane.b32.xlu0 %v2091_v55, %s2552_s30 }
0x2336   :  { %2103 = vrot.lane.b32.xlu0 %v2092_v61, %s2552_s30 }
0x2355   :  { %2117 = vadd.xlane.f32.xlu0 %v4647_v20 }
0x239c   :  { %v2098_v50 = vpop.permute.xlu0 %2097 }
0x23a0   :  { %v2100_v31 = vpop.permute.xlu0 %2099 }
0x23a1   :  { %v2106_v16 = vsel %vm2105_vm0, %v2098_v50, %v2100_v31 }
0x23a2   :  { %v2112_v35 = vadd.f32 %v2106_v16, %v2082_v49 }
0x23a4   :  { %v2102_v11 = vpop.permute.xlu0 %2101 }
0x23a5   :  { %v2107_v32 = vsel %vm2105_vm0, %v2100_v31, %v2102_v11 }
0x23a6   :  { %v2113_v46 = vadd.f32 %v2107_v32, %v2083_v0 }
0x23a8   :  { %v2104_v56 = vpop.permute.xlu0 %2103 }
0x23a9   :  { %v2108_v62 = vsel %vm2105_vm0, %v2102_v11, %v2104_v56 }
0x23aa   :  { %v2114_v8 = vadd.f32 %v2108_v62, %v2084_v17 }
0x23e2   :  { %v2118_v42 = vpop.xlane.xlu0 %2117 }
0x23e3   :  { %v2119_v51 = vmul.f32 %v2118_v42, %v4632_v4  ;;  %v2120_v23 = vmul.f32 %v2118_v42, %v3165_v25  ;;  %v2121_v7 = vmul.f32 %v2118_v42, %v4633_v38  ;;  %v2122_v36 = vmul.f32 %v2118_v42, %v4153_v48 }
0x23e5   :  { %2127 = vrot.lane.b32.xlu1 %v2119_v51, %s2553_s1 }
0x23e9   :  { %2129 = vrot.lane.b32.xlu1 %v2120_v23, %s2553_s1 }
0x23ed   :  { %2131 = vrot.lane.b32.xlu1 %v2121_v7, %s2553_s1 }
0x23f1   :  { %2133 = vrot.lane.b32.xlu1 %v2122_v36, %s2553_s1 }
0x2415   :  { %2147 = vadd.xlane.f32.xlu1 %v4648_v28 }
0x2419   :  { %2207 = vadd.xlane.f32.xlu1 %v4649_v22 }
0x241d   :  { %2237 = vadd.xlane.f32.xlu1 %v4650_v63 }
0x2421   :  { %2267 = vadd.xlane.f32.xlu1 %v4651_v57 }
0x2457   :  { %v2128_v37 = vpop.permute.xlu1 %2127 }
0x245b   :  { %v2130_v47 = vpop.permute.xlu1 %2129 }
0x245c   :  { %v2136_v21 = vsel %vm2135_vm7, %v2128_v37, %v2130_v47 }
0x245d   :  { %v2142_v39 = vadd.f32 %v2136_v21, %v2112_v35 }
0x245f   :  { %v2132_v29 = vpop.permute.xlu1 %2131 }
0x2460   :  { %v2137_v52 = vsel %vm2135_vm7, %v2130_v47, %v2132_v29 }
0x2461   :  { %v4210_v30 = vadd.f32 %v2137_v52, %v2113_v46 }
0x2463   :  { %v2134_v43 = vpop.permute.xlu1 %2133 }
0x2464   :  { %v2138_v1 = vsel %vm2135_vm7, %v2132_v29, %v2134_v43 }
0x2465   :  { %v4212_v14 = vadd.f32 %v2138_v1, %v2114_v8 }
0x24a2   :  { %v2148_v15 = vpop.xlane.xlu1 %2147 }
0x24a3   :  { %v2149_v58 = vmul.f32 %v2148_v15, %v4632_v4  ;;  %v2150_v5 = vmul.f32 %v2148_v15, %v3165_v25  ;;  %v2152_v34 = vmul.f32 %v2148_v15, %v4153_v48  ;;  %v2151_v53 = vmul.f32 %v2148_v15, %v4633_v38 }
0x24a5   :  { %2159 = vrot.lane.b32.xlu1 %v2150_v5, %s2554_s7  ;;  %2157 = vrot.lane.b32.xlu0 %v2149_v58, %s2554_s7 }
0x24a6   :  { %v2208_v3 = vpop.xlane.xlu1 %2207 }
0x24a7   :  { %v2209_v24 = vmul.f32 %v2208_v3, %v4632_v4  ;;  %v2211_v49 = vmul.f32 %v2208_v3, %v4633_v38  ;;  %v2210_v60 = vmul.f32 %v2208_v3, %v3165_v25  ;;  %v2212_v19 = vmul.f32 %v2208_v3, %v4153_v48 }
0x24a9   :  { %2163 = vrot.lane.b32.xlu1 %v2152_v34, %s2554_s7 }
0x24aa   :  { %v2238_v6 = vpop.xlane.xlu1 %2237 }
0x24ab   :  { %v2239_v0 = vmul.f32 %v2238_v6, %v4632_v4  ;;  %v2241_v9 = vmul.f32 %v2238_v6, %v4633_v38  ;;  %v2240_v17 = vmul.f32 %v2238_v6, %v3165_v25  ;;  %v2242_v41 = vmul.f32 %v2238_v6, %v4153_v48 }
0x24ae   :  { %v2268_v2 = vpop.xlane.xlu1 %2267 }
0x24af   :  { %v2269_v45 = vmul.f32 %v2268_v2, %v4632_v4  ;;  %v2271_v12 = vmul.f32 %v2268_v2, %v4633_v38  ;;  %v2270_v55 = vmul.f32 %v2268_v2, %v3165_v25  ;;  %v2272_v61 = vmul.f32 %v2268_v2, %v4153_v48 }
0x24c4   :  { %2177 = vadd.xlane.f32.xlu0 %v4652_v10 }
0x24da   :  { %2161 = vrot.lane.b32.xlu0 %v2151_v53, %s2554_s7 }
0x2517   :  { %v2158_v13 = vpop.permute.xlu0 %2157  ;;  %v2160_v40 = vpop.permute.xlu1 %2159 }
0x2518   :  { %v2166_v59 = vsel %vm2165_vm8, %v2158_v13, %v2160_v40 }
0x2519   :  { %v4220_v44 = vadd.f32 %v2166_v59, %v2142_v39 }
0x251b   :  { %v2164_v20 = vpop.permute.xlu1 %2163 }
0x2551   :  { %v2178_v27 = vpop.xlane.xlu0 %2177 }
0x2552   :  { %v2179_v33 = vmul.f32 %v2178_v27, %v4632_v4  ;;  %v2181_v26 = vmul.f32 %v2178_v27, %v4633_v38  ;;  %v2180_v54 = vmul.f32 %v2178_v27, %v3165_v25  ;;  %v2182_v18 = vmul.f32 %v2178_v27, %v4153_v48 }
0x2554   :  { %2191 = vrot.lane.b32.xlu0 %v2181_v26, %s2555_s8  ;;  %2187 = vrot.lane.b32.xlu1 %v2179_v33, %s2555_s8 }
0x2555   :  { %v2162_v50 = vpop.permute.xlu0 %2161 }
0x2556   :  { %v2167_v8 = vsel %vm2165_vm8, %v2160_v40, %v2162_v50  ;;  %v2168_v7 = vsel %vm2165_vm8, %v2162_v50, %v2164_v20 }
0x2557   :  { %v2173_v51 = vadd.f32 %v2167_v8, %v4210_v30  ;;  %v2174_v39 = vadd.f32 %v2168_v7, %v4212_v14 }
0x2558   :  { %2189 = vrot.lane.b32.xlu1 %v2180_v54, %s2555_s8  ;;  %2217 = vrot.lane.b32.xlu0 %v2209_v24, %s2556_s5 }
0x255c   :  { %2193 = vrot.lane.b32.xlu1 %v2182_v18, %s2555_s8  ;;  %2221 = vrot.lane.b32.xlu0 %v2211_v49, %s2556_s5 }
0x2560   :  { %2219 = vrot.lane.b32.xlu1 %v2210_v60, %s2556_s5  ;;  %2247 = vrot.lane.b32.xlu0 %v2239_v0, %s2557_s2 }
0x2564   :  { %2223 = vrot.lane.b32.xlu1 %v2212_v19, %s2556_s5  ;;  %2251 = vrot.lane.b32.xlu0 %v2241_v9, %s2557_s2 }
0x2568   :  { %2249 = vrot.lane.b32.xlu1 %v2240_v17, %s2557_s2  ;;  %2277 = vrot.lane.b32.xlu0 %v2269_v45, %s2558_s9 }
0x256c   :  { %2253 = vrot.lane.b32.xlu1 %v2242_v41, %s2557_s2  ;;  %2281 = vrot.lane.b32.xlu0 %v2271_v12, %s2558_s9 }
0x2570   :  { %2279 = vrot.lane.b32.xlu1 %v2270_v55, %s2558_s9 }
0x2574   :  { %2283 = vrot.lane.b32.xlu1 %v2272_v61, %s2558_s9 }
0x25c6   :  { %v2192_v31 = vpop.permute.xlu0 %2191  ;;  %v2188_v16 = vpop.permute.xlu1 %2187 }
0x25ca   :  { %v2218_v4 = vpop.permute.xlu0 %2217  ;;  %v2190_v35 = vpop.permute.xlu1 %2189 }
0x25cb   :  { %v2196_v42 = vsel %vm2195_vm14, %v2188_v16, %v2190_v35  ;;  %v2197_v48 = vsel %vm2195_vm14, %v2190_v35, %v2192_v31 }
0x25cc   :  { %v2202_v22 = vadd.f32 %v2196_v42, %v4220_v44  ;;  %v2203_v63 = vadd.f32 %v2197_v48, %v2173_v51 }
0x25ce   :  { %v2222_v11 = vpop.permute.xlu0 %2221  ;;  %v2194_v32 = vpop.permute.xlu1 %2193 }
0x25cf   :  { %v2198_v37 = vsel %vm2195_vm14, %v2192_v31, %v2194_v32 }
0x25d0   :  { %v2204_v43 = vadd.f32 %v2198_v37, %v2174_v39 }
0x25d2   :  { %v2248_v46 = vpop.permute.xlu0 %2247  ;;  %v2220_v56 = vpop.permute.xlu1 %2219 }
0x25d3   :  { %v2226_v36 = vsel %vm2225_vm3, %v2218_v4, %v2220_v56  ;;  %v2227_v28 = vsel %vm2225_vm3, %v2220_v56, %v2222_v11 }
0x25d4   :  { %v2232_v29 = vadd.f32 %v2226_v36, %v2202_v22  ;;  %v2233_v52 = vadd.f32 %v2227_v28, %v2203_v63 }
0x25d6   :  { %v2252_v62 = vpop.permute.xlu0 %2251  ;;  %v2224_v38 = vpop.permute.xlu1 %2223 }
0x25d7   :  { %v2228_v30 = vsel %vm2225_vm3, %v2222_v11, %v2224_v38 }
0x25d8   :  { %v2234_v3 = vadd.f32 %v2228_v30, %v2204_v43 }
0x25da   :  { %v2250_v25 = vpop.permute.xlu1 %2249  ;;  %v2278_v23 = vpop.permute.xlu0 %2277 }
0x25db   :  { %v2256_v47 = vsel %vm2255_vm4, %v2248_v46, %v2250_v25  ;;  %v2257_v21 = vsel %vm2255_vm4, %v2250_v25, %v2252_v62 }
0x25dc   :  { %v2262_v1 = vadd.f32 %v2256_v47, %v2232_v29  ;;  %v2263_v15 = vadd.f32 %v2257_v21, %v2233_v52 }
0x25de   :  { %v2254_v57 = vpop.permute.xlu1 %2253  ;;  %v2282_v58 = vpop.permute.xlu0 %2281 }
0x25df   :  { %v2258_v34 = vsel %vm2255_vm4, %v2252_v62, %v2254_v57 }
0x25e0   :  { %v2264_v14 = vadd.f32 %v2258_v34, %v2234_v3 }
0x25e2   :  { %v2280_v5 = vpop.permute.xlu1 %2279 }
0x25e3   :  { %v2286_v10 = vsel %vm2285_vm6, %v2278_v23, %v2280_v5  ;;  %v2287_v53 = vsel %vm2285_vm6, %v2280_v5, %v2282_v58 }
0x25e4   :  { %v2292_v6 = vadd.f32 %v2286_v10, %v2262_v1  ;;  %v2293_v2 = vadd.f32 %v2287_v53, %v2263_v15 }
0x25e6   :  { %2295 = vst [vmem:[%s4267_s6] sm:$0xff] %v2292_v6  ;;  %2296 = vst [vmem:[%s4267_s6 + $0x8] sm:$0xff] %v2293_v2  ;;  %v2284_v13 = vpop.permute.xlu1 %2283 }
0x25e7   :  { %v2288_v40 = vsel %vm2285_vm6, %v2282_v58, %v2284_v13 }
0x25e8   :  { %v2294_v59 = vadd.f32 %v2288_v40, %v2264_v14 }
0x25ea   :  { %2297 = vst [vmem:[%s4267_s6 + $0x10] sm:$0xff] %v2294_v59 }

</bundles_post_ra>
